<compile_context>
chip_gen: v6e
topology: v6e:2x2x1
jax: 0.10.0
libtpu: 0.0.40
codegen_flags: <defaults>
</compile_context>

<pallas_src>
import functools

import jax
import jax.numpy as jnp
from jax import lax
from jax.experimental import pallas as pl
from jax.experimental.pallas import tpu as pltpu

_F32_HALF_BITS = 0x3F000000   # IEEE-754 bits of 0.5f (key offset / clip lo)
_F32_SEVEN_BITS = 0x40E00000  # IEEE-754 bits of 7.0f (clip hi)


def _dygraph_edgeconv_kernel(x_ref, w_ref, b_ref, o_ref, sel_ref, *, k):
    """One batch element of DyGraphConv2d.

    x_ref  : (1, N, C)          float32 node features (original, un-normalized)
    w_ref  : (C, 2*Cout_pad)    fused weights [W1 - W2 | W2]
    b_ref  : (1, Cout_pad)      conv bias
    o_ref  : (1, N, Cout_pad)   output (lane-dense)
    sel_ref: (k*N, N)           VMEM scratch holding the k stacked one-hot
                                gather matrices (row block i = i-th neighbor)
    """
    x = x_ref[0]                                     # (N, C)
    n = x.shape[0]
    cout_pad = b_ref.shape[1]

    # --- DenseDilatedKnnGraph: kNN on L2-normalized features ----------------
    sumsq = jnp.sum(x * x, axis=-1, keepdims=True)
    xn = x * lax.rsqrt(jnp.maximum(sumsq, 1e-24))    # F.normalize(x, p=2, dim=C)
    inner = lax.dot_general(xn, xn, (((1,), (1,)), ((), ())),
                            preferred_element_type=jnp.float32)       # (N, N)
    # Rows of xn are unit norm, so true squared distance = 2 - 2*inner; the
    # +1 shift keeps d in [1, 5] (positive, exponent-bounded) for the bitcast
    # key below without changing the per-row ranking.
    d = 3.0 - 2.0 * inner                                              # (N, N)

    # --- packed sort key: (distance, column index) -> one int32 min ---------
    idx_bits = max(1, (n - 1).bit_length())
    col_i = lax.broadcasted_iota(jnp.int32, (n, n), 1)
    # The clip never binds for finite inputs (d in [1,5]); it only guards the
    # positive-float bitcast ordering against NaN/Inf garbage.
    d_bits = pltpu.bitcast(jnp.clip(d, 0.5, 7.0), jnp.int32)
    if ((_F32_SEVEN_BITS - _F32_HALF_BITS) << idx_bits) + (n - 1) < 2 ** 31:
        # Lossless: every mantissa bit of d survives the shift, so one min
        # gives the exact argmin with lowest-index tie-break (matches top_k).
        key = (d_bits - _F32_HALF_BITS) * (1 << idx_bits) + col_i
    else:
        # Large-N fallback (N >= 128 with this clip range): trade the low
        # idx_bits mantissa bits of d for the column index. Still one min and
        # an exact one-hot; ranking error <= 2^(idx_bits-23) relative ulps.
        low_mask = jnp.int32((1 << idx_bits) - 1)
        key = (d_bits & (~low_mask)) | col_i
    big_key = jnp.int32(jnp.iinfo(jnp.int32).max)

    # --- EdgeConv2d: fused weight matmul (one MXU issue, one weight DMA) ----
    xw = jnp.dot(x, w_ref[...], preferred_element_type=jnp.float32)   # (N, 2*Cout_pad)
    base2 = xw[:, :cout_pad] + b_ref[...]            # x @ (W1 - W2) + b
    p = xw[:, cout_pad:]                             # x @ W2

    # --- selection-only loop: stack k exact one-hot gather matrices ---------
    # Each one-hot goes straight to VMEM scratch, so the only live carry is
    # the (N, N) int32 key (a handful of vregs at demo size).
    for i in range(k):
        kmin = jnp.min(key, axis=-1, keepdims=True)  # single (N,N) reduce
        chosen = key == kmin                         # exact one-hot (unique keys)
        sel_ref[i * n:(i + 1) * n, :] = chosen.astype(jnp.float32)
        if i + 1 < k:
            key = jnp.where(chosen, big_key, key)    # mask for next round

    # --- ONE stacked gather matmul + vectorized max / ReLU epilogue ---------
    gathered = jnp.dot(sel_ref[...], p,
                       preferred_element_type=jnp.float32)             # (k*N, Cout_pad)
    gmax = gathered[:n, :]
    for i in range(1, k):
        gmax = jnp.maximum(gmax, gathered[i * n:(i + 1) * n, :])
    # max_j relu(base2 + g_j) == relu(base2 + max_j g_j)  (relu monotone,
    # base2 constant over j), so one add + one relu suffice.
    o_ref[0] = jnp.maximum(base2 + gmax, 0.0).astype(o_ref.dtype)


def dygraph_conv2d(x_nchw, w1, w2, b, *, k=9):
    """x_nchw: (B, C, H, W) -> (B, Cout, H, W).  w1/w2: (C, Cout), b: (Cout,)."""
    B, C, H, W = x_nchw.shape
    N = H * W
    Cout = w1.shape[1]
    if k > N:
        raise ValueError(f"k={k} must be <= number of nodes N={N}")

    # Lane-dense output stores: pad Cout up to a multiple of 128 with zero
    # weight/bias columns (their outputs are zeros, sliced off below).
    Cout_pad = ((Cout + 127) // 128) * 128
    pad = Cout_pad - Cout
    # Fused operand [W1 - W2 | W2]: base2 = x@(W1-W2)+b, p = x@W2 come from a
    # single matmul, sliced at the Cout_pad (128-lane) boundary.
    w_cat = jnp.concatenate(
        [jnp.pad(w1 - w2, ((0, 0), (0, pad))),
         jnp.pad(w2, ((0, 0), (0, pad)))], axis=1)                    # (C, 2*Cout_pad)
    bp = jnp.pad(b.reshape(1, Cout), ((0, 0), (0, pad)))              # (1, Cout_pad)

    x_nodes = jnp.transpose(x_nchw.reshape(B, C, N), (0, 2, 1))       # (B, N, C)

    out = pl.pallas_call(
        functools.partial(_dygraph_edgeconv_kernel, k=k),
        out_shape=jax.ShapeDtypeStruct((B, N, Cout_pad), jnp.float32),
        grid_spec=pltpu.PrefetchScalarGridSpec(
            num_scalar_prefetch=0,
            grid=(B,),
            in_specs=[
                pl.BlockSpec((1, N, C), lambda bi: (bi, 0, 0)),
                pl.BlockSpec((C, 2 * Cout_pad), lambda bi: (0, 0)),
                pl.BlockSpec((1, Cout_pad), lambda bi: (0, 0)),
            ],
            out_specs=pl.BlockSpec((1, N, Cout_pad), lambda bi: (bi, 0, 0)),
            scratch_shapes=[pltpu.VMEM((k * N, N), jnp.float32)],
        ),
        compiler_params=pltpu.CompilerParams(
            # Batch elements are independent -> megacore sharding on v7x.
            # Default scoped-VMEM limit is ample at these block sizes; do not
            # over-reserve (hurts surrounding fusions on v5e).
            dimension_semantics=("parallel",),
        ),
    )(x_nodes, w_cat, bp)

    out = out[:, :, :Cout]                                            # drop channel padding
    return jnp.transpose(out, (0, 2, 1)).reshape(B, Cout, H, W)


def dygraph_conv2d_reference(x_nchw, w1, w2, b, *, k=9):
    """Pure-JAX reference of the PyTorch forward (for correctness check)."""
    B, C, H, W = x_nchw.shape
    N = H * W
    x_nodes = jnp.transpose(x_nchw.reshape(B, C, N), (0, 2, 1))       # (B, N, C)
    nrm = jnp.maximum(jnp.linalg.norm(x_nodes, axis=-1, keepdims=True), 1e-12)
    xn = x_nodes / nrm
    inner = jnp.einsum("bnc,bmc->bnm", xn, xn)
    sq = jnp.sum(xn * xn, axis=-1, keepdims=True)
    dist = sq + jnp.swapaxes(sq, 1, 2) - 2.0 * inner
    _, idx = jax.lax.top_k(-dist, k)                                  # (B, N, k)
    x_j = jax.vmap(lambda xb, ib: xb[ib])(x_nodes, idx)               # (B, N, k, C)
    x_i = x_nodes[:, :, None, :]
    h = jnp.maximum(x_i @ w1 + (x_j - x_i) @ w2 + b, 0.0)             # (B, N, k, Cout)
    out = jnp.max(h, axis=2)                                          # (B, N, Cout)
    return jnp.transpose(out, (0, 2, 1)).reshape(B, -1, H, W)


if __name__ == "__main__":
    B, Cin, Cout, H, W, K = 2, 32, 32, 8, 8, 9

    key = jax.random.PRNGKey(0)
    kx, kw, kb = jax.random.split(key, 3)
    x = jax.random.normal(kx, (B, Cin, H, W), dtype=jnp.float32)

    # Conv2d(2*Cin, Cout, 1, bias=True) default-style init (deterministic).
    bound = 1.0 / (2 * Cin) ** 0.5
    w_full = jax.random.uniform(kw, (2 * Cin, Cout), jnp.float32, -bound, bound)
    bias = jax.random.uniform(kb, (Cout,), jnp.float32, -bound, bound)
    w1, w2 = w_full[:Cin], w_full[Cin:]   # act on x_i and (x_j - x_i) respectively

    out = dygraph_conv2d(x, w1, w2, bias, k=K)
    out = jax.block_until_ready(out)

    ref = dygraph_conv2d_reference(x, w1, w2, bias, k=K)
    assert out.shape == (B, Cout, H, W)
    assert jnp.allclose(out, ref, rtol=1e-3, atol=1e-3), (
        float(jnp.max(jnp.abs(out - ref))))

    print("KERNEL_OK")
</pallas_src>

<mosaic_0001>
module attributes {stable_mosaic.version = 11 : i64} {
  func.func @_dygraph_edgeconv_kernel(%arg0: i32, %arg1: memref<1x64x32xf32, #tpu.memory_space<vmem>>, %arg2: memref<32x256xf32, #tpu.memory_space<vmem>>, %arg3: memref<1x128xf32, #tpu.memory_space<vmem>>, %arg4: memref<1x64x128xf32, #tpu.memory_space<vmem>>, %arg5: memref<576x64xf32, #tpu.memory_space<vmem>>) attributes {dimension_semantics = [#tpu.dimension_semantics<parallel>], iteration_bounds = array<i64: 2>, scalar_prefetch = 0 : i64, scratch_operands = 1 : i64, tpu.core_type = #tpu.core_type<tc>, window_params = [{transform_indices = @transform_0, window_bounds = array<i64: 1, 64, 32>}, {pipeline_mode = #tpu.pipeline_mode<synchronous>, transform_indices = @transform_1, window_bounds = array<i64: 32, 256>}, {pipeline_mode = #tpu.pipeline_mode<synchronous>, transform_indices = @transform_2, window_bounds = array<i64: 1, 128>}, {transform_indices = @transform_3, window_bounds = array<i64: 1, 64, 128>}]} {
    %c0 = arith.constant 0 : index
    %c0_0 = arith.constant 0 : index
    %c0_1 = arith.constant 0 : index
    %0 = vector.load %arg1[%c0, %c0_0, %c0_1] : memref<1x64x32xf32, #tpu.memory_space<vmem>>, vector<1x64x32xf32>
    %1 = vector.shape_cast %0 : vector<1x64x32xf32> to vector<64x32xf32>
    %2 = arith.mulf %1, %1 : vector<64x32xf32>
    %cst = arith.constant dense<0.000000e+00> : vector<64xf32>
    %3 = vector.multi_reduction <add>, %2, %cst [1] : vector<64x32xf32> to vector<64xf32>
    %4 = vector.shape_cast %3 : vector<64xf32> to vector<64x1xf32>
    %cst_2 = arith.constant 1.000000e-24 : f32
    %5 = vector.broadcast %cst_2 : f32 to vector<64x1xf32>
    %6 = arith.maximumf %4, %5 : vector<64x1xf32>
    %7 = math.rsqrt %6 : vector<64x1xf32>
    %8 = vector.broadcast %7 : vector<64x1xf32> to vector<64x32xf32>
    %9 = arith.mulf %1, %8 : vector<64x32xf32>
    %cst_3 = arith.constant dense<0.000000e+00> : vector<64x64xf32>
    %10 = tpu.matmul %9, %9, %cst_3 {dimension_numbers = #tpu.dot_dimension_numbers<[1], [1], [0], [0], [0, 0, 1, 0], [], []>} : vector<64x32xf32>, vector<64x32xf32>, vector<64x64xf32> -> vector<64x64xf32>
    %cst_4 = arith.constant 2.000000e+00 : f32
    %11 = vector.broadcast %cst_4 : f32 to vector<64x64xf32>
    %12 = arith.mulf %11, %10 : vector<64x64xf32>
    %cst_5 = arith.constant 3.000000e+00 : f32
    %13 = vector.broadcast %cst_5 : f32 to vector<64x64xf32>
    %14 = arith.subf %13, %12 : vector<64x64xf32>
    %15 = tpu.iota {dimensions = array<i32: 1>} : vector<64x64xi32>
    %cst_6 = arith.constant 5.000000e-01 : f32
    %cst_7 = arith.constant 7.000000e+00 : f32
    %16 = vector.broadcast %cst_6 : f32 to vector<64x64xf32>
    %17 = arith.maximumf %16, %14 : vector<64x64xf32>
    %18 = vector.broadcast %cst_7 : f32 to vector<64x64xf32>
    %19 = arith.minimumf %18, %17 : vector<64x64xf32>
    %20 = tpu.bitcast %19 : vector<64x64xf32> -> vector<64x64xi32>
    %c1056964608_i32 = arith.constant 1056964608 : i32
    %21 = vector.broadcast %c1056964608_i32 : i32 to vector<64x64xi32>
    %22 = arith.subi %20, %21 : vector<64x64xi32>
    %c64_i32 = arith.constant 64 : i32
    %23 = vector.broadcast %c64_i32 : i32 to vector<64x64xi32>
    %24 = arith.muli %22, %23 : vector<64x64xi32>
    %25 = arith.addi %24, %15 : vector<64x64xi32>
    %c0_8 = arith.constant 0 : index
    %c0_9 = arith.constant 0 : index
    %26 = vector.load %arg2[%c0_8, %c0_9] : memref<32x256xf32, #tpu.memory_space<vmem>>, vector<32x256xf32>
    %cst_10 = arith.constant dense<0.000000e+00> : vector<64x256xf32>
    %27 = tpu.matmul %1, %26, %cst_10 {dimension_numbers = #tpu.dot_dimension_numbers<[1], [0], [0], [1], [0, 0, 1, 1], [], []>} : vector<64x32xf32>, vector<32x256xf32>, vector<64x256xf32> -> vector<64x256xf32>
    %28 = vector.extract_strided_slice %27 {offsets = [0, 0], sizes = [64, 128], strides = [1, 1]} : vector<64x256xf32> to vector<64x128xf32>
    %c0_11 = arith.constant 0 : index
    %c0_12 = arith.constant 0 : index
    %29 = vector.load %arg3[%c0_11, %c0_12] : memref<1x128xf32, #tpu.memory_space<vmem>>, vector<1x128xf32>
    %30 = vector.broadcast %29 : vector<1x128xf32> to vector<64x128xf32>
    %31 = arith.addf %28, %30 : vector<64x128xf32>
    %32 = vector.extract_strided_slice %27 {offsets = [0, 128], sizes = [64, 128], strides = [1, 1]} : vector<64x256xf32> to vector<64x128xf32>
    %cst_13 = arith.constant dense<2147483647> : vector<64xi32>
    %33 = vector.multi_reduction <minsi>, %25, %cst_13 [1] : vector<64x64xi32> to vector<64xi32>
    %34 = vector.shape_cast %33 : vector<64xi32> to vector<64x1xi32>
    %35 = vector.broadcast %34 : vector<64x1xi32> to vector<64x64xi32>
    %36 = arith.cmpi eq, %25, %35 : vector<64x64xi32>
    %37 = arith.extui %36 : vector<64x64xi1> to vector<64x64xi32>
    %38 = arith.sitofp %37 : vector<64x64xi32> to vector<64x64xf32>
    %c0_14 = arith.constant 0 : index
    %c0_15 = arith.constant 0 : index
    %39 = vector.load %arg5[%c0_14, %c0_15] : memref<576x64xf32, #tpu.memory_space<vmem>>, vector<64x64xf32>
    tpu.vector_store %arg5[%c0_14, %c0_15], %38 {strides = array<i32>} : memref<576x64xf32, #tpu.memory_space<vmem>>, vector<64x64xf32>,
    %c2147483647_i32 = arith.constant 2147483647 : i32
    %40 = vector.broadcast %c2147483647_i32 : i32 to vector<64x64xi32>
    %41 = arith.select %36, %40, %25 : vector<64x64xi1>, vector<64x64xi32>
    %cst_16 = arith.constant dense<2147483647> : vector<64xi32>
    %42 = vector.multi_reduction <minsi>, %41, %cst_16 [1] : vector<64x64xi32> to vector<64xi32>
    %43 = vector.shape_cast %42 : vector<64xi32> to vector<64x1xi32>
    %44 = vector.broadcast %43 : vector<64x1xi32> to vector<64x64xi32>
    %45 = arith.cmpi eq, %41, %44 : vector<64x64xi32>
    %46 = arith.extui %45 : vector<64x64xi1> to vector<64x64xi32>
    %47 = arith.sitofp %46 : vector<64x64xi32> to vector<64x64xf32>
    %c64 = arith.constant 64 : index
    %c0_17 = arith.constant 0 : index
    %48 = vector.load %arg5[%c64, %c0_17] : memref<576x64xf32, #tpu.memory_space<vmem>>, vector<64x64xf32>
    tpu.vector_store %arg5[%c64, %c0_17], %47 {strides = array<i32>} : memref<576x64xf32, #tpu.memory_space<vmem>>, vector<64x64xf32>,
    %c2147483647_i32_18 = arith.constant 2147483647 : i32
    %49 = vector.broadcast %c2147483647_i32_18 : i32 to vector<64x64xi32>
    %50 = arith.select %45, %49, %41 : vector<64x64xi1>, vector<64x64xi32>
    %cst_19 = arith.constant dense<2147483647> : vector<64xi32>
    %51 = vector.multi_reduction <minsi>, %50, %cst_19 [1] : vector<64x64xi32> to vector<64xi32>
    %52 = vector.shape_cast %51 : vector<64xi32> to vector<64x1xi32>
    %53 = vector.broadcast %52 : vector<64x1xi32> to vector<64x64xi32>
    %54 = arith.cmpi eq, %50, %53 : vector<64x64xi32>
    %55 = arith.extui %54 : vector<64x64xi1> to vector<64x64xi32>
    %56 = arith.sitofp %55 : vector<64x64xi32> to vector<64x64xf32>
    %c128 = arith.constant 128 : index
    %c0_20 = arith.constant 0 : index
    %57 = vector.load %arg5[%c128, %c0_20] : memref<576x64xf32, #tpu.memory_space<vmem>>, vector<64x64xf32>
    tpu.vector_store %arg5[%c128, %c0_20], %56 {strides = array<i32>} : memref<576x64xf32, #tpu.memory_space<vmem>>, vector<64x64xf32>,
    %c2147483647_i32_21 = arith.constant 2147483647 : i32
    %58 = vector.broadcast %c2147483647_i32_21 : i32 to vector<64x64xi32>
    %59 = arith.select %54, %58, %50 : vector<64x64xi1>, vector<64x64xi32>
    %cst_22 = arith.constant dense<2147483647> : vector<64xi32>
    %60 = vector.multi_reduction <minsi>, %59, %cst_22 [1] : vector<64x64xi32> to vector<64xi32>
    %61 = vector.shape_cast %60 : vector<64xi32> to vector<64x1xi32>
    %62 = vector.broadcast %61 : vector<64x1xi32> to vector<64x64xi32>
    %63 = arith.cmpi eq, %59, %62 : vector<64x64xi32>
    %64 = arith.extui %63 : vector<64x64xi1> to vector<64x64xi32>
    %65 = arith.sitofp %64 : vector<64x64xi32> to vector<64x64xf32>
    %c192 = arith.constant 192 : index
    %c0_23 = arith.constant 0 : index
    %66 = vector.load %arg5[%c192, %c0_23] : memref<576x64xf32, #tpu.memory_space<vmem>>, vector<64x64xf32>
    tpu.vector_store %arg5[%c192, %c0_23], %65 {strides = array<i32>} : memref<576x64xf32, #tpu.memory_space<vmem>>, vector<64x64xf32>,
    %c2147483647_i32_24 = arith.constant 2147483647 : i32
    %67 = vector.broadcast %c2147483647_i32_24 : i32 to vector<64x64xi32>
    %68 = arith.select %63, %67, %59 : vector<64x64xi1>, vector<64x64xi32>
    %cst_25 = arith.constant dense<2147483647> : vector<64xi32>
    %69 = vector.multi_reduction <minsi>, %68, %cst_25 [1] : vector<64x64xi32> to vector<64xi32>
    %70 = vector.shape_cast %69 : vector<64xi32> to vector<64x1xi32>
    %71 = vector.broadcast %70 : vector<64x1xi32> to vector<64x64xi32>
    %72 = arith.cmpi eq, %68, %71 : vector<64x64xi32>
    %73 = arith.extui %72 : vector<64x64xi1> to vector<64x64xi32>
    %74 = arith.sitofp %73 : vector<64x64xi32> to vector<64x64xf32>
    %c256 = arith.constant 256 : index
    %c0_26 = arith.constant 0 : index
    %75 = vector.load %arg5[%c256, %c0_26] : memref<576x64xf32, #tpu.memory_space<vmem>>, vector<64x64xf32>
    tpu.vector_store %arg5[%c256, %c0_26], %74 {strides = array<i32>} : memref<576x64xf32, #tpu.memory_space<vmem>>, vector<64x64xf32>,
    %c2147483647_i32_27 = arith.constant 2147483647 : i32
    %76 = vector.broadcast %c2147483647_i32_27 : i32 to vector<64x64xi32>
    %77 = arith.select %72, %76, %68 : vector<64x64xi1>, vector<64x64xi32>
    %cst_28 = arith.constant dense<2147483647> : vector<64xi32>
    %78 = vector.multi_reduction <minsi>, %77, %cst_28 [1] : vector<64x64xi32> to vector<64xi32>
    %79 = vector.shape_cast %78 : vector<64xi32> to vector<64x1xi32>
    %80 = vector.broadcast %79 : vector<64x1xi32> to vector<64x64xi32>
    %81 = arith.cmpi eq, %77, %80 : vector<64x64xi32>
    %82 = arith.extui %81 : vector<64x64xi1> to vector<64x64xi32>
    %83 = arith.sitofp %82 : vector<64x64xi32> to vector<64x64xf32>
    %c320 = arith.constant 320 : index
    %c0_29 = arith.constant 0 : index
    %84 = vector.load %arg5[%c320, %c0_29] : memref<576x64xf32, #tpu.memory_space<vmem>>, vector<64x64xf32>
    tpu.vector_store %arg5[%c320, %c0_29], %83 {strides = array<i32>} : memref<576x64xf32, #tpu.memory_space<vmem>>, vector<64x64xf32>,
    %c2147483647_i32_30 = arith.constant 2147483647 : i32
    %85 = vector.broadcast %c2147483647_i32_30 : i32 to vector<64x64xi32>
    %86 = arith.select %81, %85, %77 : vector<64x64xi1>, vector<64x64xi32>
    %cst_31 = arith.constant dense<2147483647> : vector<64xi32>
    %87 = vector.multi_reduction <minsi>, %86, %cst_31 [1] : vector<64x64xi32> to vector<64xi32>
    %88 = vector.shape_cast %87 : vector<64xi32> to vector<64x1xi32>
    %89 = vector.broadcast %88 : vector<64x1xi32> to vector<64x64xi32>
    %90 = arith.cmpi eq, %86, %89 : vector<64x64xi32>
    %91 = arith.extui %90 : vector<64x64xi1> to vector<64x64xi32>
    %92 = arith.sitofp %91 : vector<64x64xi32> to vector<64x64xf32>
    %c384 = arith.constant 384 : index
    %c0_32 = arith.constant 0 : index
    %93 = vector.load %arg5[%c384, %c0_32] : memref<576x64xf32, #tpu.memory_space<vmem>>, vector<64x64xf32>
    tpu.vector_store %arg5[%c384, %c0_32], %92 {strides = array<i32>} : memref<576x64xf32, #tpu.memory_space<vmem>>, vector<64x64xf32>,
    %c2147483647_i32_33 = arith.constant 2147483647 : i32
    %94 = vector.broadcast %c2147483647_i32_33 : i32 to vector<64x64xi32>
    %95 = arith.select %90, %94, %86 : vector<64x64xi1>, vector<64x64xi32>
    %cst_34 = arith.constant dense<2147483647> : vector<64xi32>
    %96 = vector.multi_reduction <minsi>, %95, %cst_34 [1] : vector<64x64xi32> to vector<64xi32>
    %97 = vector.shape_cast %96 : vector<64xi32> to vector<64x1xi32>
    %98 = vector.broadcast %97 : vector<64x1xi32> to vector<64x64xi32>
    %99 = arith.cmpi eq, %95, %98 : vector<64x64xi32>
    %100 = arith.extui %99 : vector<64x64xi1> to vector<64x64xi32>
    %101 = arith.sitofp %100 : vector<64x64xi32> to vector<64x64xf32>
    %c448 = arith.constant 448 : index
    %c0_35 = arith.constant 0 : index
    %102 = vector.load %arg5[%c448, %c0_35] : memref<576x64xf32, #tpu.memory_space<vmem>>, vector<64x64xf32>
    tpu.vector_store %arg5[%c448, %c0_35], %101 {strides = array<i32>} : memref<576x64xf32, #tpu.memory_space<vmem>>, vector<64x64xf32>,
    %c2147483647_i32_36 = arith.constant 2147483647 : i32
    %103 = vector.broadcast %c2147483647_i32_36 : i32 to vector<64x64xi32>
    %104 = arith.select %99, %103, %95 : vector<64x64xi1>, vector<64x64xi32>
    %cst_37 = arith.constant dense<2147483647> : vector<64xi32>
    %105 = vector.multi_reduction <minsi>, %104, %cst_37 [1] : vector<64x64xi32> to vector<64xi32>
    %106 = vector.shape_cast %105 : vector<64xi32> to vector<64x1xi32>
    %107 = vector.broadcast %106 : vector<64x1xi32> to vector<64x64xi32>
    %108 = arith.cmpi eq, %104, %107 : vector<64x64xi32>
    %109 = arith.extui %108 : vector<64x64xi1> to vector<64x64xi32>
    %110 = arith.sitofp %109 : vector<64x64xi32> to vector<64x64xf32>
    %c512 = arith.constant 512 : index
    %c0_38 = arith.constant 0 : index
    %111 = vector.load %arg5[%c512, %c0_38] : memref<576x64xf32, #tpu.memory_space<vmem>>, vector<64x64xf32>
    tpu.vector_store %arg5[%c512, %c0_38], %110 {strides = array<i32>} : memref<576x64xf32, #tpu.memory_space<vmem>>, vector<64x64xf32>,
    %c0_39 = arith.constant 0 : index
    %c0_40 = arith.constant 0 : index
    %112 = vector.load %arg5[%c0_39, %c0_40] : memref<576x64xf32, #tpu.memory_space<vmem>>, vector<576x64xf32>
    %cst_41 = arith.constant dense<0.000000e+00> : vector<576x128xf32>
    %113 = tpu.matmul %112, %32, %cst_41 {dimension_numbers = #tpu.dot_dimension_numbers<[1], [0], [0], [1], [0, 0, 1, 1], [], []>} : vector<576x64xf32>, vector<64x128xf32>, vector<576x128xf32> -> vector<576x128xf32>
    %114 = vector.extract_strided_slice %113 {offsets = [0, 0], sizes = [64, 128], strides = [1, 1]} : vector<576x128xf32> to vector<64x128xf32>
    %115 = vector.extract_strided_slice %113 {offsets = [64, 0], sizes = [64, 128], strides = [1, 1]} : vector<576x128xf32> to vector<64x128xf32>
    %116 = arith.maximumf %114, %115 : vector<64x128xf32>
    %117 = vector.extract_strided_slice %113 {offsets = [128, 0], sizes = [64, 128], strides = [1, 1]} : vector<576x128xf32> to vector<64x128xf32>
    %118 = arith.maximumf %116, %117 : vector<64x128xf32>
    %119 = vector.extract_strided_slice %113 {offsets = [192, 0], sizes = [64, 128], strides = [1, 1]} : vector<576x128xf32> to vector<64x128xf32>
    %120 = arith.maximumf %118, %119 : vector<64x128xf32>
    %121 = vector.extract_strided_slice %113 {offsets = [256, 0], sizes = [64, 128], strides = [1, 1]} : vector<576x128xf32> to vector<64x128xf32>
    %122 = arith.maximumf %120, %121 : vector<64x128xf32>
    %123 = vector.extract_strided_slice %113 {offsets = [320, 0], sizes = [64, 128], strides = [1, 1]} : vector<576x128xf32> to vector<64x128xf32>
    %124 = arith.maximumf %122, %123 : vector<64x128xf32>
    %125 = vector.extract_strided_slice %113 {offsets = [384, 0], sizes = [64, 128], strides = [1, 1]} : vector<576x128xf32> to vector<64x128xf32>
    %126 = arith.maximumf %124, %125 : vector<64x128xf32>
    %127 = vector.extract_strided_slice %113 {offsets = [448, 0], sizes = [64, 128], strides = [1, 1]} : vector<576x128xf32> to vector<64x128xf32>
    %128 = arith.maximumf %126, %127 : vector<64x128xf32>
    %129 = vector.extract_strided_slice %113 {offsets = [512, 0], sizes = [64, 128], strides = [1, 1]} : vector<576x128xf32> to vector<64x128xf32>
    %130 = arith.maximumf %128, %129 : vector<64x128xf32>
    %131 = arith.addf %31, %130 : vector<64x128xf32>
    %cst_42 = arith.constant 0.000000e+00 : f32
    %132 = vector.broadcast %cst_42 : f32 to vector<64x128xf32>
    %133 = arith.maximumf %131, %132 : vector<64x128xf32>
    %c0_43 = arith.constant 0 : index
    %c0_44 = arith.constant 0 : index
    %c0_45 = arith.constant 0 : index
    %134 = vector.load %arg4[%c0_43, %c0_44, %c0_45] : memref<1x64x128xf32, #tpu.memory_space<vmem>>, vector<1x64x128xf32>
    %135 = vector.shape_cast %134 : vector<1x64x128xf32> to vector<64x128xf32>
    %136 = vector.shape_cast %133 : vector<64x128xf32> to vector<1x64x128xf32>
    tpu.vector_store %arg4[%c0_43, %c0_44, %c0_45], %136 {strides = array<i32>} : memref<1x64x128xf32, #tpu.memory_space<vmem>>, vector<1x64x128xf32>,
    return
  }
  func.func @transform_0(%arg0: i32) -> (i32, i32, i32) {
    %c0_i32 = arith.constant 0 : i32
    %c0_i32_0 = arith.constant 0 : i32
    %c0_i32_1 = arith.constant 0 : i32
    return %arg0, %c0_i32, %c0_i32_0 : i32, i32, i32
  }
  func.func @transform_1(%arg0: i32) -> (i32, i32) {
    %c0_i32 = arith.constant 0 : i32
    %c0_i32_0 = arith.constant 0 : i32
    %c0_i32_1 = arith.constant 0 : i32
    return %c0_i32, %c0_i32_0 : i32, i32
  }
  func.func @transform_2(%arg0: i32) -> (i32, i32) {
    %c0_i32 = arith.constant 0 : i32
    %c0_i32_0 = arith.constant 0 : i32
    %c0_i32_1 = arith.constant 0 : i32
    return %c0_i32, %c0_i32_0 : i32, i32
  }
  func.func @transform_3(%arg0: i32) -> (i32, i32, i32) {
    %c0_i32 = arith.constant 0 : i32
    %c0_i32_0 = arith.constant 0 : i32
    %c0_i32_1 = arith.constant 0 : i32
    return %arg0, %c0_i32, %c0_i32_0 : i32, i32, i32
  }
}

</mosaic_0001>

<bundles_post_ra>
// kernel: tpu_custom_call.1
= control target key start
LH: loop header
LB: loop body
LE: loop exit
PB: predicated region body
PF: predicated region fallthrough
CT: control target
= control target key end

     0   :  { %8 = vsyncpa [#allocation4], 0  ;;  %s5003_s0 = inlined_call_operand.vmem [shape: f32[2,64,32], index: 0, kind: input, shape index: {}]   ;;  %s5004_s1 = inlined_call_operand.vmem [shape: f32[32,256], index: 1, kind: input, shape index: {}]   ;;  %s5005_s2 = inlined_call_operand.vmem [shape: f32[1,128], index: 2, kind: input, shape index: {}]   ;;  %s5006_s3 = inlined_call_operand.hbm [shape: f32[2,64,128], index: 3, kind: output, shape index: {}]  }
   0x1   :  { %10 = vsyncpa [#allocation4 + $0x1], 0  ;;  %s3498_s12 = smov 0   ;;  %s3500_s13 = smov 0  }
   0x2   :  { %s3502_s14 = smov 0   ;;  %s3504_s15 = smov 0  }
   0x3 LB: > { %s3519_s16 = sadd.s32 4294967295, %s3472_s15   ;;  %s2899_s17 = sadd.s32 4294967294, %s3472_s15   ;;  %s3472_s15 = sphi %s3504_s15, %s5046_s15   ;;  %s3468_s14 = sphi %s3502_s14, %s5045_s14   ;;  %s3464_s13 = sphi %s3500_s13, %s5044_s13   ;;  %s3460_s12 = sphi %s3498_s12, %s5043_s12  }
   0x4   : > { %s3523_s18 = sadd.s32 1, %s3472_s15   ;;  %s91_s19 = sadd.s32 1, %s3468_s14 }
   0x5   : > { %s88_s20 = ssub.s32 %s3472_s15, %s3523_s18  ;;  %p101_p0 = scmp.ne.s32.totalorder %s3468_s14, %s3464_s13 }
   0x6   : > { %p89_p1 = scmp.eq.s32.totalorder %s88_s20, 0  ;;  %p102_p2 = scmp.eq.s32.totalorder %s3519_s16, 1 }
   0x7   : > { %p107_p3 = scmp.ne.s32.totalorder %s3464_s13, %s3460_s12  ;;  %p108_p4 = scmp.eq.s32.totalorder %s2899_s17, 1 }
   0x8   : > { %s3534_s21 = scalar_select %p89_p1, %s3468_s14, %s91_s19  }
   0x9   : > { %p3536_p5 = por %p102_p2, %p101_p0  ;;  %p3540_p6 = por %p108_p4, %p107_p3 }
   0xa   : > { %p2902_p7 = scmp.ge.s32.totalorder %s3472_s15, 1  ;;  %p140_p8 = scmp.lt.s32.totalorder %s3472_s15, 3 }
   0xc   : > { %p141_p9 = pnand %p2902_p7, %p140_p8 }
   0xe   : > { %144 = sbr.rel (%p141_p9) target bundleno = 3264 (0xcc0), region = 32 }
  0x13   : > { %p164_p10 = scmp.lt.s32.totalorder %s3519_s16, 1  ;;  %vm185_vm0 = vcmask 261120   ;;  %v436_v56 = vld [vmem:[%s5004_s1 + $0x38] sm:$0xff]  ;;  %v435_v57 = vld [vmem:[%s5004_s1 + $0x30] sm:$0xff]  ;;  %v434_v58 = vld [vmem:[%s5004_s1 + $0x28] sm:$0xff]  ;;  %v3474_v60 = vmov 0.0  }
  0x14   : > { %485 = vmatprep.subr.mxu1 %v436_v56  ;;  %v433_v59 = vld [vmem:[%s5004_s1 + $0x20] sm:$0xff]  ;;  %525 = vmatprep.mubr.f32.mxu1 %v3474_v60  ;;  %v432_v61 = vld [vmem:[%s5004_s1 + $0x18] sm:$0xff]  ;;  %v431_v62 = vld [vmem:[%s5004_s1 + $0x10] sm:$0xff]  ;;  %vm589_vm1 = vcmask 523264   ;;  %s161_s29 = sand.u32 1, %s3464_s13   ;;  %s3089_s5 = sshll.u32 %s3519_s16, 10 }
  0x15   : > { %s165_s24 = scalar_select %p164_p10, %s3519_s16, 1  ;;  %486 = vmatpush1.msra.mxu1 %v435_v57  ;;  %v430_v63 = vld [vmem:[%s5004_s1 + $0x8] sm:$0xff] }
  0x16   : > { %487 = vmatprep.subr.mxu1 %v434_v58  ;;  %s2903_s30 = sshll.u32 %s161_s29, 6  ;;  %s4955_s9 = scalar_lea.hbm %s5006_s3, %s3089_s5 }
  0x17   : > { %s3088_s25 = sshll.u32 %s165_s24, 6  ;;  %488 = vmatpush1.msra.mxu1 %v433_v59  ;;  %s4924_s4 = scalar_lea.vmem [#allocation3], %s2903_s30 }
  0x18   : > { %s168_s28 = scalar_lea.vmem %s5003_s0, %s3088_s25  ;;  %489 = vmatprep.subr.mxu1 %v432_v61  ;;  %s2837_s6 = sshll.u32 %s4924_s4, 4  ;;  %s4957_s6 = int_to_ptr.vmem [resolvable:$true] %s2837_s6 }
  0x19   : > { %v3551_v0 = vld [vmem:[%s168_s28 + $0x38] sm:$0xff]  ;;  %v3553_v1 = vld [vmem:[%s168_s28 + $0x30] sm:$0xff]  ;;  %v3555_v2 = vld [vmem:[%s168_s28 + $0x28] sm:$0xff]  ;;  %490 = vmatpush1.msra.mxu1 %v431_v62  ;;  %s4963_s10 = scalar_lea.sflag [#allocation4], %s161_s29  ;;  %s3412_s16 = scalar_lea.vmem %s4957_s6, 1024 }
  0x1a   : > { %v184_v3 = vmul.f32 %v3551_v0, %v3551_v0  ;;  %v183_v4 = vmul.f32 %v3553_v1, %v3553_v1  ;;  %v182_v5 = vmul.f32 %v3555_v2, %v3555_v2  ;;  %v3563_v6 = vld [vmem:[%s168_s28 + $0x20] sm:$0xff]  ;;  %v3567_v8 = vld [vmem:[%s168_s28 + $0x18] sm:$0xff]  ;;  %v3569_v9 = vld [vmem:[%s168_s28 + $0x10] sm:$0xff]  ;;  %491 = vmatprep.subr.mxu1 %v430_v63  ;;  %p3413_p11 = scmp.ne.s32.totalorder %s4957_s6, %s3412_s16  ;;  %s3475_s11 = smov [#allocation3]  }
  0x1b   : > { %v181_v7 = vmul.f32 %v3563_v6, %v3563_v6  ;;  %v180_v14 = vmul.f32 %v3567_v8, %v3567_v8  ;;  %v179_v15 = vmul.f32 %v3569_v9, %v3569_v9  ;;  %v3579_v16 = vld [vmem:[%s168_s28 + $0x8] sm:$0xff]  ;;  %v3581_v17 = vld [vmem:[%s168_s28] sm:$0xff]  ;;  %s3416_s17 = sshll.u32 %s3475_s11, 4  ;;  %s3417_s17 = int_to_ptr.vmem [resolvable:$false] %s3416_s17 }
  0x1c   : > { %v207_v10 = vsel %vm185_vm0, %v184_v3, 0.0  ;;  %v201_v11 = vsel %vm185_vm0, %v182_v5, 0.0  ;;  %v204_v12 = vsel %vm185_vm0, %v183_v4, 0.0  ;;  %v178_v20 = vmul.f32 %v3579_v16, %v3579_v16  ;;  %v429_v3 = vld [vmem:[%s5004_s1] sm:$0xff]  ;;  %p3414_p12 = pnand %p3413_p11, %p3536_p5  ;;  %s3418_s19 = scalar_lea.vmem %s3417_s17, 2048 }
  0x1d   : > { %208 = vadd.xlane.f32.xlu0 %v207_v10  ;;  %202 = vadd.xlane.f32.xlu1 %v201_v11  ;;  %v198_v13 = vsel %vm185_vm0, %v181_v7, 0.0  ;;  %v195_v18 = vsel %vm185_vm0, %v180_v14, 0.0  ;;  %v192_v19 = vsel %vm185_vm0, %v179_v15, 0.0  ;;  %v177_v21 = vmul.f32 %v3581_v17, %v3581_v17  ;;  %p3419_p0 = scmp.lt.s32.totalorder %s4957_s6, %s3417_s17  ;;  %p3420_p1 = scmp.lt.s32.totalorder %s3418_s19, %s3412_s16 }
  0x1e   : > { %v189_v22 = vsel %vm185_vm0, %v178_v20, 0.0  ;;  %492 = vmatpush1.msra.mxu1 %v429_v3  ;;  %p3415_p13 = pneg %p3414_p12 }
  0x1f   : > { %v186_v23 = vsel %vm185_vm0, %v177_v21, 0.0  ;;  %2930 = vmatmul.mubr.msk.f32.vlgmr.msra.gmra.mxu1 %vm185_vm0, %v3581_v17  ;;  %p3421_p2 = por %p3420_p1, %p3419_p0 }
  0x20   : > { %531 = vmatprep.mubr.f32.mxu1 %v3474_v60 }
  0x21   : > { %205 = vadd.xlane.f32.xlu0 %v204_v12  ;;  %199 = vadd.xlane.f32.xlu1 %v198_v13  ;;  %p3422_p3 = pnand %p3421_p2, %p3415_p13 }
  0x23   : > { %2931 = vmatmul.mubr.msk.f32.gmra.mxu1 %vm185_vm0, %v3579_v16 }
  0x24   : > { %537 = vmatprep.mubr.f32.mxu1 %v3474_v60 }
  0x25   : > { %196 = vadd.xlane.f32.xlu0 %v195_v18  ;;  %193 = vadd.xlane.f32.xlu1 %v192_v19 }
  0x27   : > { %2932 = vmatmul.mubr.msk.f32.gmra.mxu1 %vm185_vm0, %v3569_v9 }
  0x28   : > { %543 = vmatprep.mubr.f32.mxu1 %v3474_v60 }
  0x29   : > { %190 = vadd.xlane.f32.xlu0 %v189_v22  ;;  %187 = vadd.xlane.f32.xlu1 %v186_v23 }
  0x2b   : > { %2933 = vmatmul.mubr.msk.f32.gmra.mxu1 %vm185_vm0, %v3567_v8 }
  0x2c   : > { %549 = vmatprep.mubr.f32.mxu1 %v3474_v60 }
  0x2f   : > { %2934 = vmatmul.mubr.msk.f32.gmra.mxu1 %vm185_vm0, %v3563_v6 }
  0x30   : > { %555 = vmatprep.mubr.f32.mxu1 %v3474_v60 }
  0x33   : > { %2935 = vmatmul.mubr.msk.f32.gmra.mxu1 %vm185_vm0, %v3555_v2 }
  0x34   : > { %561 = vmatprep.mubr.f32.mxu1 %v3474_v60 }
  0x37   : > { %2936 = vmatmul.mubr.msk.f32.gmra.mxu1 %vm185_vm0, %v3553_v1 }
  0x38   : > { %567 = vmatprep.mubr.f32.mxu1 %v3474_v60 }
  0x3b   : > { %2937 = vmatmul.mubr.msk.f32.gmra.mxu1 %vm185_vm0, %v3551_v0 }
  0xa6   : > { %v209_v24 = vpop.xlane.xlu0 %208  ;;  %v203_v25 = vpop.xlane.xlu1 %202 }
  0xa7   : > { %v217_v26 = vmax.f32 %v209_v24, 1e-24  ;;  %v215_v27 = vmax.f32 %v203_v25, 1e-24 }
  0xa9   : > { %3396 = vrsqrt.f32 %v217_v26 }
  0xaa   : > { %v206_v28 = vpop.xlane.xlu0 %205  ;;  %v200_v29 = vpop.xlane.xlu1 %199  ;;  %3398 = vrsqrt.f32 %v215_v27 }
  0xab   : > { %v216_v30 = vmax.f32 %v206_v28, 1e-24  ;;  %v214_v31 = vmax.f32 %v200_v29, 1e-24 }
  0xad   : > { %3400 = vrsqrt.f32 %v216_v30 }
  0xae   : > { %v197_v32 = vpop.xlane.xlu0 %196  ;;  %v194_v33 = vpop.xlane.xlu1 %193  ;;  %3402 = vrsqrt.f32 %v214_v31 }
  0xaf   : > { %v213_v34 = vmax.f32 %v197_v32, 1e-24  ;;  %v212_v36 = vmax.f32 %v194_v33, 1e-24 }
  0xb1   : > { %3404 = vrsqrt.f32 %v213_v34 }
  0xb2   : > { %v188_v35 = vpop.xlane.xlu1 %187  ;;  %v191_v38 = vpop.xlane.xlu0 %190 }
  0xb3   : > { %v210_v37 = vmax.f32 %v188_v35, 1e-24  ;;  %v211_v41 = vmax.f32 %v191_v38, 1e-24 }
  0xb5   : > { %3406 = vrsqrt.f32 %v210_v37 }
  0xb6   : > { %v3397_v39 = vpop.eup %3396  ;;  %3408 = vrsqrt.f32 %v212_v36 }
  0xb7   : > { %v233_v40 = vmul.f32 %v3397_v39, %v3551_v0  ;;  %v3399_v42 = vpop.eup %3398  ;;  %3410 = vrsqrt.f32 %v211_v41 }
  0xb8   : > { %v231_v45 = vmul.f32 %v3399_v42, %v3555_v2 }
  0xb9   : > { %3186 = vmatprep.subr.msk.mxu0 %vm185_vm0, %v233_v40 }
  0xba   : > { %v3401_v43 = vpop.eup %3400  ;;  %3187 = vmatpush3.xpose.msk.msra.mxu0 %vm185_vm0, %v233_v40 }
  0xbb   : > { %v232_v44 = vmul.f32 %v3401_v43, %v3553_v1  ;;  %v3403_v46 = vpop.eup %3402 }
  0xbc   : > { %v230_v47 = vmul.f32 %v3403_v46, %v3563_v6 }
  0xbd   : > { %3188 = vmatprep.subr.msk.mxu0 %vm185_vm0, %v232_v44 }
  0xbe   : > { %3189 = vmatpush3.xpose.msk.msra.mxu0 %vm185_vm0, %v232_v44  ;;  %v3405_v48 = vpop.eup %3404 }
  0xbf   : > { %3190 = vmatprep.subr.msk.mxu0 %vm185_vm0, %v231_v45  ;;  %v229_v50 = vmul.f32 %v3405_v48, %v3567_v8 }
  0xc2   : > { %3191 = vmatpush3.xpose.msk.msra.mxu0 %vm185_vm0, %v231_v45  ;;  %v3407_v49 = vpop.eup %3406 }
  0xc3   : > { %3192 = vmatprep.subr.msk.mxu0 %vm185_vm0, %v230_v47  ;;  %v3409_v51 = vpop.eup %3408  ;;  %v226_v52 = vmul.f32 %v3407_v49, %v3581_v17 }
  0xc4   : > { %v228_v53 = vmul.f32 %v3409_v51, %v3569_v9  ;;  %v3411_v54 = vpop.eup %3410  ;;  %v379_v9 = vlaneseq }
  0xc5   : > { %3202 = vmatprep.mubr.msk.f32.mxu0 %vm185_vm0, %v226_v52  ;;  %v227_v55 = vmul.f32 %v3411_v54, %v3579_v16 }
  0xc6   : > { %3193 = vmatpush3.xpose.msk.msra.mxu0 %vm185_vm0, %v230_v47  ;;  %v3671_v17 = vand.u32 127, %v379_v9 }
  0xc7   : > { %3194 = vmatprep.subr.msk.mxu0 %vm185_vm0, %v229_v50 }
  0xca   : > { %3195 = vmatpush3.xpose.msk.msra.mxu0 %vm185_vm0, %v229_v50 }
  0xcb   : > { %3196 = vmatprep.subr.msk.mxu0 %vm185_vm0, %v228_v53 }
  0xce   : > { %3197 = vmatpush3.xpose.msk.msra.mxu0 %vm185_vm0, %v228_v53 }
  0xcf   : > { %3198 = vmatprep.subr.msk.mxu0 %vm185_vm0, %v227_v55 }
  0xd2   : > { %3199 = vmatpush3.xpose.msk.msra.mxu0 %vm185_vm0, %v227_v55 }
  0xd3   : > { %3200 = vmatprep.subr.msk.mxu0 %vm185_vm0, %v226_v52 }
  0xd6   : > { %3201 = vmatpush3.xpose.msk.msra.mxu0 %vm185_vm0, %v226_v52 }
  0xd9   : > { %3203 = vmatmul.mubr.msk.f32.vlgmr.msra.gmra.mxu0 %vm185_vm0, %v227_v55 }
  0xda   : > { %3205 = vmatprep.mubr.msk.f32.mxu0 %vm185_vm0, %v228_v53 }
  0xdd   : > { %3206 = vmatmul.mubr.msk.f32.gmra.mxu0 %vm185_vm0, %v229_v50 }
  0xde   : > { %3208 = vmatprep.mubr.msk.f32.mxu0 %vm185_vm0, %v230_v47 }
  0xe1   : > { %3209 = vmatmul.mubr.msk.f32.gmra.mxu0 %vm185_vm0, %v231_v45 }
  0xe2   : > { %3211 = vmatprep.mubr.msk.f32.mxu0 %vm185_vm0, %v232_v44 }
  0xe5   : > { %3212 = vmatmul.mubr.msk.f32.gmra.mxu0 %vm185_vm0, %v233_v40 }
 0x199   : > { %v3204_v4 = vpop.f32.mrf.mxu0 }
 0x19a   : > { %v364_v5 = vmul.f32 2.0, %v3204_v4 }
 0x19b   : > { %v324_v7 = vpop.f32.mrf.mxu0 }
 0x19c   : > { %v372_v8 = vsub.f32 3.0, %v364_v5  ;;  %v363_v6 = vmul.f32 2.0, %v324_v7 }
 0x19d   : > { %v3207_v10 = vpop.f32.mrf.mxu0 }
 0x19e   : > { %v382_v11 = vmax.f32 %v372_v8, 0.5  ;;  %v371_v12 = vsub.f32 3.0, %v363_v6  ;;  %v366_v2 = vmul.f32 2.0, %v3207_v10 }
 0x19f   : > { %v334_v13 = vpop.f32.mrf.mxu0 }
 0x1a0   : > { %v390_v14 = vmin.f32 %v382_v11, 7.0  ;;  %v381_v15 = vmax.f32 %v371_v12, 0.5  ;;  %v374_v16 = vsub.f32 3.0, %v366_v2  ;;  %v365_v1 = vmul.f32 2.0, %v334_v13 }
 0x1a1   : > { %v3210_v18 = vpop.f32.mrf.mxu0 }
 0x1a2   : > { %v2923_v19 = vadd.s32 3238002688, %v390_v14  ;;  %v389_v0 = vmin.f32 %v381_v15, 7.0  ;;  %v384_v20 = vmax.f32 %v374_v16, 0.5  ;;  %v373_v21 = vsub.f32 3.0, %v365_v1 }
 0x1a3   : > { %v368_v22 = vmul.f32 2.0, %v3210_v18  ;;  %v344_v23 = vpop.f32.mrf.mxu0 }
 0x1a4   : > { %v414_v24 = vmul.u32 64, %v2923_v19  ;;  %v2922_v25 = vadd.s32 3238002688, %v389_v0  ;;  %v392_v26 = vmin.f32 %v384_v20, 7.0  ;;  %v383_v27 = vmax.f32 %v373_v21, 0.5 }
 0x1a5   : > { %v376_v28 = vsub.f32 3.0, %v368_v22  ;;  %v367_v29 = vmul.f32 2.0, %v344_v23  ;;  %v3213_v30 = vpop.f32.mrf.mxu0 }
 0x1a6   : > { %v3674_v31 = vadd.s32 %v414_v24, %v3671_v17  ;;  %v413_v32 = vmul.u32 64, %v2922_v25  ;;  %v2925_v33 = vadd.s32 3238002688, %v392_v26  ;;  %v391_v34 = vmin.f32 %v383_v27, 7.0 }
 0x1a7   : > { %v386_v35 = vmax.f32 %v376_v28, 0.5  ;;  %v375_v36 = vsub.f32 3.0, %v367_v29  ;;  %v370_v37 = vmul.f32 2.0, %v3213_v30  ;;  %v354_v38 = vpop.f32.mrf.mxu0  ;;  %v3734_v28 = vpop.f32.mrf.mxu1 }
 0x1a8   : > { %v3677_v39 = vadd.s32 %v413_v32, %v3671_v17  ;;  %v416_v40 = vmul.u32 64, %v2925_v33  ;;  %v2924_v41 = vadd.s32 3238002688, %v391_v34  ;;  %v369_v42 = vmul.f32 2.0, %v354_v38 }
 0x1a9   : > { %v394_v43 = vmin.f32 %v386_v35, 7.0  ;;  %v385_v44 = vmax.f32 %v375_v36, 0.5  ;;  %v378_v45 = vsub.f32 3.0, %v370_v37  ;;  %v3681_v46 = vsel %vm589_vm1, %v3674_v31, 2147483647  ;;  %v3736_v29 = vpop.f32.mrf.mxu1 }
 0x1aa   : > { %v3684_v47 = vadd.s32 %v416_v40, %v3671_v17  ;;  %v415_v48 = vmul.u32 64, %v2924_v41  ;;  %v377_v49 = vsub.f32 3.0, %v369_v42  ;;  %v607_v50 = vshra.s32 %v3681_v46, 16 }
 0x1ab   : > { %v2927_v51 = vadd.s32 3238002688, %v394_v43  ;;  %v393_v52 = vmin.f32 %v385_v44, 7.0  ;;  %v388_v53 = vmax.f32 %v378_v45, 0.5  ;;  %v3689_v54 = vsel %vm589_vm1, %v3677_v39, 2147483647  ;;  %v3738_v30 = vpop.f32.mrf.mxu1 }
 0x1ac   : > { %v3692_v55 = vadd.s32 %v415_v48, %v3671_v17  ;;  %v387_v56 = vmax.f32 %v377_v49, 0.5  ;;  %v609_v57 = vcvt.s32.f32 %v607_v50  ;;  %v592_v58 = vshra.s32 %v3689_v54, 16 }
 0x1ad   : > { %v418_v59 = vmul.u32 64, %v2927_v51  ;;  %v2926_v61 = vadd.s32 3238002688, %v393_v52  ;;  %v396_v62 = vmin.f32 %v388_v53, 7.0  ;;  %v3697_v63 = vsel %vm589_vm1, %v3684_v47, 2147483647  ;;  %v3740_v32 = vpop.f32.mrf.mxu1 }
 0x1ae   : > { %v395_v3 = vmin.f32 %v387_v56, 7.0  ;;  %610 = vmin.xlane.f32.xlu1 %v609_v57  ;;  %v594_v4 = vcvt.s32.f32 %v592_v58  ;;  %v637_v5 = vshra.s32 %v3697_v63, 16  ;;  %v3702_v7 = vsel %vm589_vm1, %v3692_v55, 2147483647 }
 0x1af   : > { %v3705_v8 = vadd.s32 %v418_v59, %v3671_v17  ;;  %v417_v6 = vmul.u32 64, %v2926_v61  ;;  %v2929_v9 = vadd.s32 3238002688, %v396_v62  ;;  %v622_v10 = vshra.s32 %v3702_v7, 16  ;;  %v3742_v33 = vpop.f32.mrf.mxu1 }
 0x1b0   : > { %v2928_v11 = vadd.s32 3238002688, %v395_v3  ;;  %595 = vmin.xlane.f32.xlu0 %v594_v4  ;;  %v639_v12 = vcvt.s32.f32 %v637_v5  ;;  %5009 = vst [vmem:[#allocation6_spill] sm:$0xff] %v3742_v33  ;;  %v606_v40 = vand.u32 65535, %v3681_v46  ;;  %v591_v41 = vand.u32 65535, %v3689_v54 }
 0x1b1   : > { %v3709_v2 = vadd.s32 %v417_v6, %v3671_v17  ;;  %v420_v13 = vmul.u32 64, %v2929_v9  ;;  %v624_v14 = vcvt.s32.f32 %v622_v10  ;;  %v665_v15 = vsel %vm589_vm1, %v3705_v8, 2147483647  ;;  %v3744_v34 = vpop.f32.mrf.mxu1 }
 0x1b2   : > { %v419_v16 = vmul.u32 64, %v2928_v11  ;;  %640 = vmin.xlane.f32.xlu1 %v639_v12  ;;  %v667_v1 = vshra.s32 %v665_v15, 16  ;;  %v608_v44 = vcvt.s32.f32 %v606_v40  ;;  %v636_v45 = vand.u32 65535, %v3697_v63 }
 0x1b3   : > { %v3714_v18 = vadd.s32 %v420_v13, %v3671_v17  ;;  %v650_v19 = vsel %vm589_vm1, %v3709_v2, 2147483647  ;;  %v3746_v35 = vpop.f32.mrf.mxu1  ;;  %v593_v50 = vcvt.s32.f32 %v591_v41  ;;  %v621_v51 = vand.u32 65535, %v3702_v7 }
 0x1b4   : > { %v3719_v0 = vadd.s32 %v419_v16, %v3671_v17  ;;  %625 = vmin.xlane.f32.xlu0 %v624_v14  ;;  %v669_v20 = vcvt.s32.f32 %v667_v1  ;;  %v652_v21 = vshra.s32 %v650_v19, 16  ;;  %v638_v54 = vcvt.s32.f32 %v636_v45 }
 0x1b5   : > { %v3723_v22 = vsel %vm589_vm1, %v3714_v18, 2147483647  ;;  %v3748_v36 = vpop.f32.mrf.mxu1  ;;  %v666_v56 = vand.u32 65535, %v665_v15  ;;  %v623_v59 = vcvt.s32.f32 %v621_v51  ;;  %v651_v61 = vand.u32 65535, %v650_v19 }
 0x1b6   : > { %670 = vmin.xlane.f32.xlu1 %v669_v20  ;;  %v654_v23 = vcvt.s32.f32 %v652_v21  ;;  %v697_v24 = vshra.s32 %v3723_v22, 16  ;;  %v3728_v25 = vsel %vm589_vm1, %v3719_v0, 2147483647  ;;  %v696_v5 = vand.u32 65535, %v3723_v22 }
 0x1b7   : > { %v682_v26 = vshra.s32 %v3728_v25, 16  ;;  %v3750_v37 = vpop.f32.mrf.mxu1  ;;  %v653_v9 = vcvt.s32.f32 %v651_v61  ;;  %v681_v10 = vand.u32 65535, %v3728_v25 }
 0x1b8   : > { %655 = vmin.xlane.f32.xlu0 %v654_v23  ;;  %v699_v17 = vcvt.s32.f32 %v697_v24  ;;  %5010 = vst [vmem:[#allocation7_spill] sm:$0xff] %v3750_v37 }
 0x1b9   : > { %v3731_v27 = vcvt.s32.f32 %v682_v26  ;;  %v3752_v38 = vpop.f32.mrf.mxu1  ;;  %v683_v1 = vcvt.s32.f32 %v681_v10 }
 0x1ba   : > { %700 = vmin.xlane.f32.xlu1 %v699_v17 }
 0x1bb   : > { %v3756_v42 = vpop.f32.mrf.mxu1 }
 0x1bc   : > { %685 = vmin.xlane.f32.xlu0 %v3731_v27  ;;  %5011 = vst [vmem:[#allocation8_spill] sm:$0xff] %v3756_v42 }
 0x1bd   : > { %v559_v46 = vpop.f32.mrf.mxu1 }
 0x1bf   : > { %v3772_v62 = vpop.f32.mrf.mxu1 }
 0x1c0   : > { %5012 = vst [vmem:[#allocation9_spill] sm:$0xff] %v3772_v62 }
 0x1c1   : > { %v565_v11 = vpop.f32.mrf.mxu1 }
 0x1c3   : > { %v3789_v19 = vpop.f32.mrf.mxu1 }
 0x1c4   : > { %5013 = vst [vmem:[#allocation10_spill] sm:$0xff] %v3789_v19 }
 0x1c5   : > { %v571_v21 = vpop.f32.mrf.mxu1 }
 0x1c6   : > { %3214 = vmatprep.subr.mxu0 %v571_v21  ;;  %3338 = vmatprep.subr.mxu1 %v571_v21 }
 0x1c7   : > { %3215 = vmatpush3.msra.mxu0 %v571_v21  ;;  %3346 = vmatpush3.msra.mxu1 %v571_v21 }
 0x1c8   : > { %3216 = vmatprep.subr.mxu0 %v565_v11  ;;  %3339 = vmatprep.subr.mxu1 %v565_v11 }
 0x1c9   : > { %3217 = vmatpush3.msra.mxu0 %v565_v11  ;;  %3347 = vmatpush3.msra.mxu1 %v565_v11 }
 0x1ca   : > { %3218 = vmatprep.subr.mxu0 %v559_v46  ;;  %3340 = vmatprep.subr.mxu1 %v559_v46 }
 0x1cb   : > { %3219 = vmatpush3.msra.mxu0 %v559_v46  ;;  %3348 = vmatpush3.msra.mxu1 %v559_v46 }
 0x1cc   : > { %3220 = vmatprep.subr.mxu0 %v3752_v38  ;;  %3341 = vmatprep.subr.mxu1 %v3752_v38 }
 0x1cd   : > { %3221 = vmatpush3.msra.mxu0 %v3752_v38  ;;  %3349 = vmatpush3.msra.mxu1 %v3752_v38 }
 0x1ce   : > { %3222 = vmatprep.subr.mxu0 %v3748_v36  ;;  %3342 = vmatprep.subr.mxu1 %v3748_v36 }
 0x1cf   : > { %3223 = vmatpush3.msra.mxu0 %v3748_v36  ;;  %3350 = vmatpush3.msra.mxu1 %v3748_v36 }
 0x1d0   : > { %3224 = vmatprep.subr.mxu0 %v3744_v34  ;;  %3343 = vmatprep.subr.mxu1 %v3744_v34 }
 0x1d1   : > { %3225 = vmatpush3.msra.mxu0 %v3744_v34  ;;  %3351 = vmatpush3.msra.mxu1 %v3744_v34 }
 0x1d2   : > { %3226 = vmatprep.subr.mxu0 %v3740_v32  ;;  %3344 = vmatprep.subr.mxu1 %v3740_v32 }
 0x1d3   : > { %3227 = vmatpush3.msra.mxu0 %v3740_v32  ;;  %3352 = vmatpush3.msra.mxu1 %v3740_v32 }
 0x1d4   : > { %3228 = vmatprep.subr.mxu0 %v3736_v29  ;;  %3345 = vmatprep.subr.mxu1 %v3736_v29 }
 0x1d5   : > { %3229 = vmatpush3.msra.mxu0 %v3736_v29  ;;  %3353 = vmatpush3.msra.mxu1 %v3736_v29 }
 0x237   : > { %v3758_v43 = vpop.xlane.xlu1 %610 }
 0x238   : > { %vm612_vm2 = vcmp.eq.f32.partialorder %v609_v57, %v3758_v43  ;;  %v617_v22 = vcvt.f32.s32 %v3758_v43 }
 0x239   : > { %v3762_v48 = vpop.xlane.xlu0 %595  ;;  %v613_v49 = vsel %vm612_vm2, %v608_v44, inf }
 0x23a   : > { %614 = vmin.xlane.f32.xlu1 %v613_v49  ;;  %vm597_vm3 = vcmp.eq.f32.partialorder %v594_v4, %v3762_v48  ;;  %v668_v4 = vcvt.s32.f32 %v666_v56 }
 0x23b   : > { %v3766_v52 = vpop.xlane.xlu1 %640  ;;  %v598_v53 = vsel %vm597_vm3, %v593_v50, inf }
 0x23c   : > { %599 = vmin.xlane.f32.xlu0 %v598_v53  ;;  %vm642_vm4 = vcmp.eq.f32.partialorder %v639_v12, %v3766_v52  ;;  %v647_v24 = vcvt.f32.s32 %v3766_v52 }
 0x23d   : > { %v3769_v58 = vpop.xlane.xlu0 %625  ;;  %v643_v57 = vsel %vm642_vm4, %v638_v54, inf }
 0x23e   : > { %644 = vmin.xlane.f32.xlu1 %v643_v57  ;;  %vm627_vm5 = vcmp.eq.f32.partialorder %v624_v14, %v3769_v58  ;;  %v698_v14 = vcvt.s32.f32 %v696_v5  ;;  %v632_v25 = vcvt.f32.s32 %v3769_v58  ;;  %v648_v43 = vshll.u32 %v647_v24, 16 }
 0x23f   : > { %v3774_v63 = vpop.xlane.xlu1 %670  ;;  %v628_v3 = vsel %vm627_vm5, %v623_v59, inf }
 0x240   : > { %629 = vmin.xlane.f32.xlu0 %v628_v3  ;;  %vm672_vm6 = vcmp.eq.f32.partialorder %v669_v20, %v3774_v63  ;;  %v633_v44 = vshll.u32 %v632_v25, 16 }
 0x241   : > { %v3778_v7 = vpop.xlane.xlu0 %655  ;;  %v673_v6 = vsel %vm672_vm6, %v668_v4, inf }
 0x242   : > { %674 = vmin.xlane.f32.xlu1 %v673_v6  ;;  %vm657_vm7 = vcmp.eq.f32.partialorder %v654_v23, %v3778_v7  ;;  %v602_v23 = vcvt.f32.s32 %v3762_v48  ;;  %v662_v34 = vcvt.f32.s32 %v3778_v7 }
 0x243   : > { %v3782_v12 = vpop.xlane.xlu1 %700  ;;  %v658_v13 = vsel %vm657_vm7, %v653_v9, inf }
 0x244   : > { %659 = vmin.xlane.f32.xlu0 %v658_v13  ;;  %vm702_vm8 = vcmp.eq.f32.partialorder %v699_v17, %v3782_v12  ;;  %v618_v17 = vshll.u32 %v617_v22, 16  ;;  %v707_v36 = vcvt.f32.s32 %v3782_v12  ;;  %v603_v40 = vshll.u32 %v602_v23, 16 }
 0x245   : > { %v3785_v15 = vpop.xlane.xlu0 %685  ;;  %v703_v16 = vsel %vm702_vm8, %v698_v14, inf  ;;  %v663_v46 = vshll.u32 %v662_v34, 16 }
 0x246   : > { %704 = vmin.xlane.f32.xlu1 %v703_v16  ;;  %vm687_vm9 = vcmp.eq.f32.partialorder %v3731_v27, %v3785_v15  ;;  %v677_v27 = vcvt.f32.s32 %v3774_v63  ;;  %v692_v45 = vcvt.f32.s32 %v3785_v15  ;;  %v708_v52 = vshll.u32 %v707_v36, 16 }
 0x247   : > { %v688_v20 = vsel %vm687_vm9, %v683_v1, inf }
 0x248   : > { %689 = vmin.xlane.f32.xlu0 %v688_v20  ;;  %v678_v49 = vshll.u32 %v677_v27, 16  ;;  %v693_v61 = vshll.u32 %v692_v45, 16 }
 0x2c3   : > { %v615_v26 = vpop.xlane.xlu1 %614 }
 0x2c4   : > { %v616_v32 = vcvt.f32.s32 %v615_v26 }
 0x2c5   : > { %v600_v38 = vpop.xlane.xlu0 %599 }
 0x2c6   : > { %v619_v29 = vadd.s32 %v618_v17, %v616_v32  ;;  %v601_v41 = vcvt.f32.s32 %v600_v38 }
 0x2c7   : > { %v645_v48 = vpop.xlane.xlu1 %644 }
 0x2c8   : > { %vm711_vm10 = vcmp.eq.s32.totalorder %v3674_v31, %v619_v29  ;;  %v604_v50 = vadd.s32 %v603_v40, %v601_v41  ;;  %v646_v51 = vcvt.f32.s32 %v645_v48 }
 0x2c9   : > { %v2940_v53 = vsel %vm711_vm10, 1.0, %v3474_v60  ;;  %v630_v54 = vpop.xlane.xlu0 %629  ;;  %v3822_v56 = vsel %vm711_vm10, 2147483647, %v3674_v31 }
 0x2ca   : > { %735 = vst.msk [vmem:[#allocation2 + $0x8] sm:$0xff] %vm589_vm1, %v2940_v53  ;;  %vm710_vm11 = vcmp.eq.s32.totalorder %v3677_v39, %v604_v50  ;;  %v649_v58 = vadd.s32 %v648_v43, %v646_v51  ;;  %v631_v57 = vcvt.f32.s32 %v630_v54  ;;  %v3828_v59 = vsel %vm589_vm1, %v3822_v56, 2147483647 }
 0x2cb   : > { %v2939_v63 = vsel %vm710_vm11, 1.0, %v3474_v60  ;;  %v675_v3 = vpop.xlane.xlu1 %674  ;;  %v767_v4 = vshra.s32 %v3828_v59, 16  ;;  %v3833_v5 = vsel %vm710_vm11, 2147483647, %v3677_v39 }
 0x2cc   : > { %734 = vst.msk [vmem:[#allocation2] sm:$0xff] %vm589_vm1, %v2939_v63  ;;  %vm713_vm12 = vcmp.eq.s32.totalorder %v3684_v47, %v649_v58  ;;  %v634_v31 = vadd.s32 %v633_v44, %v631_v57  ;;  %v676_v7 = vcvt.f32.s32 %v675_v3  ;;  %v3839_v6 = vsel %vm589_vm1, %v3833_v5, 2147483647 }
 0x2cd   : > { %v2942_v9 = vsel %vm713_vm12, 1.0, %v3474_v60  ;;  %v660_v10 = vpop.xlane.xlu0 %659  ;;  %v3842_v11 = vcvt.s32.f32 %v767_v4  ;;  %v752_v12 = vshra.s32 %v3839_v6, 16  ;;  %v3846_v39 = vsel %vm713_vm12, 2147483647, %v3684_v47 }
 0x2ce   : > { %737 = vst.msk [vmem:[#allocation2 + $0x18] sm:$0xff] %vm589_vm1, %v2942_v9  ;;  %vm712_vm13 = vcmp.eq.s32.totalorder %v3692_v55, %v634_v31  ;;  %v679_v13 = vadd.s32 %v678_v49, %v676_v7  ;;  %v661_v14 = vcvt.f32.s32 %v660_v10  ;;  %v3852_v15 = vsel %vm589_vm1, %v3846_v39, 2147483647 }
 0x2cf   : > { %v2941_v16 = vsel %vm712_vm13, 1.0, %v3474_v60  ;;  %770 = vmin.xlane.f32.xlu1 %v3842_v11  ;;  %v705_v1 = vpop.xlane.xlu1 %704  ;;  %v3856_v20 = vcvt.s32.f32 %v752_v12  ;;  %v797_v47 = vshra.s32 %v3852_v15, 16  ;;  %v3860_v21 = vsel %vm712_vm13, 2147483647, %v3692_v55 }
 0x2d0   : > { %736 = vst.msk [vmem:[#allocation2 + $0x10] sm:$0xff] %vm589_vm1, %v2941_v16  ;;  %vm715_vm14 = vcmp.eq.s32.totalorder %v3705_v8, %v679_v13  ;;  %v664_v22 = vadd.s32 %v663_v46, %v661_v14  ;;  %v706_v23 = vcvt.f32.s32 %v705_v1  ;;  %v3866_v24 = vsel %vm589_vm1, %v3860_v21, 2147483647 }
 0x2d1   : > { %v2944_v25 = vsel %vm715_vm14, 1.0, %v3474_v60  ;;  %755 = vmin.xlane.f32.xlu0 %v3856_v20  ;;  %v690_v26 = vpop.xlane.xlu0 %689  ;;  %v3870_v17 = vcvt.s32.f32 %v797_v47  ;;  %v782_v55 = vshra.s32 %v3866_v24, 16  ;;  %v3874_v27 = vsel %vm715_vm14, 2147483647, %v3705_v8  ;;  %v2023_v44 = vld [vmem:[#allocation2 + $0x8] sm:$0xff] }
 0x2d2   : > { %739 = vst.msk [vmem:[#allocation2 + $0x28] sm:$0xff] %vm589_vm1, %v2944_v25  ;;  %vm714_vm15 = vcmp.eq.s32.totalorder %v3709_v2, %v664_v22  ;;  %v709_v32 = vadd.s32 %v708_v52, %v706_v23  ;;  %v691_v34 = vcvt.f32.s32 %v690_v26  ;;  %v3880_v36 = vsel %vm589_vm1, %v3874_v27, 2147483647 }
 0x2d3   : > { %v2943_v38 = vsel %vm714_vm15, 1.0, %v3474_v60  ;;  %800 = vmin.xlane.f32.xlu1 %v3870_v17  ;;  %v2022_v40 = vld [vmem:[#allocation2] sm:$0xff]  ;;  %v3884_v29 = vcvt.s32.f32 %v782_v55  ;;  %v827_v8 = vshra.s32 %v3880_v36, 16  ;;  %v3888_v41 = vsel %vm714_vm15, 2147483647, %v3709_v2 }
 0x2d4   : > { %738 = vst.msk [vmem:[#allocation2 + $0x20] sm:$0xff] %vm589_vm1, %v2943_v38  ;;  %vm717_vm0 = vcmp.eq.s32.totalorder %v3714_v18, %v709_v32  ;;  %v694_v43 = vadd.s32 %v693_v61, %v691_v34  ;;  %3230 = vmatprep.mubr.msk.f32.mxu0 %vm589_vm1, %v2022_v40  ;;  %v3895_v45 = vsel %vm589_vm1, %v3888_v41, 2147483647  ;;  %v766_v9 = vand.u32 65535, %v3828_v59 }
 0x2d5   : > { %v2946_v48 = vsel %vm717_vm0, 1.0, %v3474_v60  ;;  %3231 = vmatmul.mubr.msk.f32.vlgmr.msra.gmra.mxu0 %vm589_vm1, %v2023_v44  ;;  %785 = vmin.xlane.f32.xlu0 %v3884_v29  ;;  %v3900_v2 = vcvt.s32.f32 %v827_v8  ;;  %v812_v49 = vshra.s32 %v3895_v45, 16  ;;  %v3904_v50 = vsel %vm717_vm0, 2147483647, %v3714_v18  ;;  %v2025_v18 = vld [vmem:[#allocation2 + $0x18] sm:$0xff] }
 0x2d6   : > { %741 = vst.msk [vmem:[#allocation2 + $0x38] sm:$0xff] %vm589_vm1, %v2946_v48  ;;  %vm716_vm2 = vcmp.eq.s32.totalorder %v3719_v0, %v694_v43  ;;  %v3910_v51 = vsel %vm589_vm1, %v3904_v50, 2147483647  ;;  %v751_v10 = vand.u32 65535, %v3839_v6  ;;  %v768_v13 = vcvt.s32.f32 %v766_v9 }
 0x2d7   : > { %v2945_v46 = vsel %vm716_vm2, 1.0, %v3474_v60  ;;  %830 = vmin.xlane.f32.xlu1 %v3900_v2  ;;  %v2024_v52 = vld [vmem:[#allocation2 + $0x10] sm:$0xff]  ;;  %v814_v53 = vcvt.s32.f32 %v812_v49  ;;  %v857_v54 = vshra.s32 %v3910_v51, 16  ;;  %v3916_v58 = vsel %vm716_vm2, 2147483647, %v3719_v0 }
 0x2d8   : > { %740 = vst.msk [vmem:[#allocation2 + $0x30] sm:$0xff] %vm589_vm1, %v2945_v46  ;;  %3233 = vmatprep.mubr.msk.f32.mxu0 %vm589_vm1, %v2024_v52  ;;  %v840_v57 = vsel %vm589_vm1, %v3916_v58, 2147483647  ;;  %v796_v14 = vand.u32 65535, %v3852_v15  ;;  %v753_v47 = vcvt.s32.f32 %v751_v10  ;;  %v781_v22 = vand.u32 65535, %v3866_v24 }
 0x2d9   : > { %3234 = vmatmul.mubr.msk.f32.gmra.mxu0 %vm589_vm1, %v2025_v18  ;;  %815 = vmin.xlane.f32.xlu0 %v814_v53  ;;  %v859_v61 = vcvt.s32.f32 %v857_v54  ;;  %v842_v63 = vshra.s32 %v840_v57, 16  ;;  %v2027_v0 = vld [vmem:[#allocation2 + $0x28] sm:$0xff]  ;;  %v826_v59 = vand.u32 65535, %v3880_v36 }
 0x2da   : > { %v798_v26 = vcvt.s32.f32 %v796_v14  ;;  %v783_v55 = vcvt.s32.f32 %v781_v22 }
 0x2db   : > { %860 = vmin.xlane.f32.xlu1 %v859_v61  ;;  %v2026_v3 = vld [vmem:[#allocation2 + $0x20] sm:$0xff]  ;;  %v844_v4 = vcvt.s32.f32 %v842_v63  ;;  %v828_v34 = vcvt.s32.f32 %v826_v59 }
 0x2dc   : > { %3236 = vmatprep.mubr.msk.f32.mxu0 %vm589_vm1, %v2026_v3 }
 0x2dd   : > { %3237 = vmatmul.mubr.msk.f32.gmra.mxu0 %vm589_vm1, %v2027_v0  ;;  %845 = vmin.xlane.f32.xlu0 %v844_v4  ;;  %v2029_v7 = vld [vmem:[#allocation2 + $0x38] sm:$0xff] }
 0x2df   : > { %v2028_v31 = vld [vmem:[#allocation2 + $0x30] sm:$0xff] }
 0x2e0   : > { %3239 = vmatprep.mubr.msk.f32.mxu0 %vm589_vm1, %v2028_v31 }
 0x2e1   : > { %3240 = vmatmul.mubr.msk.f32.gmra.mxu0 %vm589_vm1, %v2029_v7 }
 0x358   : > { %v771_v12 = vpop.xlane.xlu1 %770 }
 0x359   : > { %vm772_vm3 = vcmp.eq.f32.partialorder %v3842_v11, %v771_v12  ;;  %v811_v11 = vand.u32 65535, %v3895_v45 }
 0x35a   : > { %v756_v16 = vpop.xlane.xlu0 %755  ;;  %v773_v1 = vsel %vm772_vm3, %v768_v13, inf }
 0x35b   : > { %774 = vmin.xlane.f32.xlu1 %v773_v1  ;;  %vm757_vm4 = vcmp.eq.f32.partialorder %v3856_v20, %v756_v16  ;;  %v856_v20 = vand.u32 65535, %v3910_v51  ;;  %v813_v40 = vcvt.s32.f32 %v811_v11  ;;  %v777_v51 = vcvt.f32.s32 %v771_v12 }
 0x35c   : > { %v801_v23 = vpop.xlane.xlu1 %800  ;;  %v758_v25 = vsel %vm757_vm4, %v753_v47, inf }
 0x35d   : > { %759 = vmin.xlane.f32.xlu0 %v758_v25  ;;  %vm802_vm5 = vcmp.eq.f32.partialorder %v3870_v17, %v801_v23  ;;  %v841_v17 = vand.u32 65535, %v840_v57  ;;  %v858_v44 = vcvt.s32.f32 %v856_v20  ;;  %v807_v46 = vcvt.f32.s32 %v801_v23 }
 0x35e   : > { %v786_v6 = vpop.xlane.xlu0 %785  ;;  %v803_v15 = vsel %vm802_vm5, %v798_v26, inf  ;;  %v778_v18 = vshll.u32 %v777_v51, 16 }
 0x35f   : > { %804 = vmin.xlane.f32.xlu1 %v803_v15  ;;  %vm787_vm6 = vcmp.eq.f32.partialorder %v3884_v29, %v786_v6  ;;  %v843_v48 = vcvt.s32.f32 %v841_v17  ;;  %v792_v52 = vcvt.f32.s32 %v786_v6  ;;  %v808_v9 = vshll.u32 %v807_v46, 16 }
 0x360   : > { %v831_v24 = vpop.xlane.xlu1 %830  ;;  %v788_v32 = vsel %vm787_vm6, %v783_v55, inf }
 0x361   : > { %789 = vmin.xlane.f32.xlu0 %v788_v32  ;;  %vm832_vm7 = vcmp.eq.f32.partialorder %v3900_v2, %v831_v24  ;;  %v762_v2 = vcvt.f32.s32 %v756_v16  ;;  %v837_v57 = vcvt.f32.s32 %v831_v24  ;;  %v793_v10 = vshll.u32 %v792_v52, 16 }
 0x362   : > { %v816_v36 = vpop.xlane.xlu0 %815  ;;  %v833_v38 = vsel %vm832_vm7, %v828_v34, inf }
 0x363   : > { %834 = vmin.xlane.f32.xlu1 %v833_v38  ;;  %vm817_vm8 = vcmp.eq.f32.partialorder %v814_v53, %v816_v36  ;;  %v822_v63 = vcvt.f32.s32 %v816_v36  ;;  %v763_v31 = vshll.u32 %v762_v2, 16  ;;  %v838_v14 = vshll.u32 %v837_v57, 16 }
 0x364   : > { %v861_v8 = vpop.xlane.xlu1 %860  ;;  %v818_v43 = vsel %vm817_vm8, %v813_v40, inf }
 0x365   : > { %819 = vmin.xlane.f32.xlu0 %v818_v43  ;;  %vm862_vm9 = vcmp.eq.f32.partialorder %v859_v61, %v861_v8  ;;  %v867_v3 = vcvt.f32.s32 %v861_v8  ;;  %v823_v1 = vshll.u32 %v822_v63, 16 }
 0x366   : > { %v846_v29 = vpop.xlane.xlu0 %845  ;;  %v863_v45 = vsel %vm862_vm9, %v858_v44, inf }
 0x367   : > { %864 = vmin.xlane.f32.xlu1 %v863_v45  ;;  %vm847_vm10 = vcmp.eq.f32.partialorder %v844_v4, %v846_v29  ;;  %v852_v13 = vcvt.f32.s32 %v846_v29  ;;  %v868_v47 = vshll.u32 %v867_v3, 16 }
 0x368   : > { %v848_v49 = vsel %vm847_vm10, %v843_v48, inf }
 0x369   : > { %849 = vmin.xlane.f32.xlu0 %v848_v49  ;;  %v853_v15 = vshll.u32 %v852_v13, 16 }
 0x3e4   : > { %v775_v54 = vpop.xlane.xlu1 %774 }
 0x3e5   : > { %v776_v53 = vcvt.f32.s32 %v775_v54 }
 0x3e6   : > { %v760_v0 = vpop.xlane.xlu0 %759 }
 0x3e7   : > { %v779_v61 = vadd.s32 %v778_v18, %v776_v53  ;;  %v761_v7 = vcvt.f32.s32 %v760_v0 }
 0x3e8   : > { %v805_v4 = vpop.xlane.xlu1 %804 }
 0x3e9   : > { %vm871_vm11 = vcmp.eq.s32.totalorder %v3822_v56, %v779_v61  ;;  %v764_v12 = vadd.s32 %v763_v31, %v761_v7  ;;  %v806_v16 = vcvt.f32.s32 %v805_v4 }
 0x3ea   : > { %v2948_v22 = vsel %vm871_vm11, 1.0, %v3474_v60  ;;  %v790_v23 = vpop.xlane.xlu0 %789  ;;  %v3942_v25 = vsel %vm871_vm11, 2147483647, %v3822_v56 }
 0x3eb   : > { %895 = vst.msk [vmem:[#allocation2 + $0x48] sm:$0xff] %vm589_vm1, %v2948_v22  ;;  %vm870_vm12 = vcmp.eq.s32.totalorder %v3833_v5, %v764_v12  ;;  %v809_v26 = vadd.s32 %v808_v9, %v806_v16  ;;  %v791_v59 = vcvt.f32.s32 %v790_v23  ;;  %v3948_v6 = vsel %vm589_vm1, %v3942_v25, 2147483647 }
 0x3ec   : > { %v2947_v55 = vsel %vm870_vm12, 1.0, %v3474_v60  ;;  %v835_v11 = vpop.xlane.xlu1 %834  ;;  %v927_v24 = vshra.s32 %v3948_v6, 16  ;;  %v3953_v32 = vsel %vm870_vm12, 2147483647, %v3833_v5 }
 0x3ed   : > { %894 = vst.msk [vmem:[#allocation2 + $0x40] sm:$0xff] %vm589_vm1, %v2947_v55  ;;  %vm873_vm13 = vcmp.eq.s32.totalorder %v3846_v39, %v809_v26  ;;  %v794_v56 = vadd.s32 %v793_v10, %v791_v59  ;;  %v836_v34 = vcvt.f32.s32 %v835_v11  ;;  %v3959_v20 = vsel %vm589_vm1, %v3953_v32, 2147483647 }
 0x3ee   : > { %v2950_v36 = vsel %vm873_vm13, 1.0, %v3474_v60  ;;  %v820_v38 = vpop.xlane.xlu0 %819  ;;  %v3962_v40 = vcvt.s32.f32 %v927_v24  ;;  %v912_v17 = vshra.s32 %v3959_v20, 16  ;;  %v3966_v5 = vsel %vm873_vm13, 2147483647, %v3846_v39 }
 0x3ef   : > { %897 = vst.msk [vmem:[#allocation2 + $0x58] sm:$0xff] %vm589_vm1, %v2950_v36  ;;  %vm872_vm14 = vcmp.eq.s32.totalorder %v3860_v21, %v794_v56  ;;  %v839_v8 = vadd.s32 %v838_v14, %v836_v34  ;;  %v821_v43 = vcvt.f32.s32 %v820_v38  ;;  %v3972_v44 = vsel %vm589_vm1, %v3966_v5, 2147483647 }
 0x3f0   : > { %v2949_v29 = vsel %vm872_vm14, 1.0, %v3474_v60  ;;  %930 = vmin.xlane.f32.xlu1 %v3962_v40  ;;  %v865_v45 = vpop.xlane.xlu1 %864  ;;  %v3976_v48 = vcvt.s32.f32 %v912_v17  ;;  %v957_v39 = vshra.s32 %v3972_v44, 16  ;;  %v3980_v49 = vsel %vm872_vm14, 2147483647, %v3860_v21 }
 0x3f1   : > { %896 = vst.msk [vmem:[#allocation2 + $0x50] sm:$0xff] %vm589_vm1, %v2949_v29  ;;  %vm875_vm15 = vcmp.eq.s32.totalorder %v3874_v27, %v839_v8  ;;  %v824_v51 = vadd.s32 %v823_v1, %v821_v43  ;;  %v866_v2 = vcvt.f32.s32 %v865_v45  ;;  %v3986_v46 = vsel %vm589_vm1, %v3980_v49, 2147483647 }
 0x3f2   : > { %v2952_v52 = vsel %vm875_vm15, 1.0, %v3474_v60  ;;  %915 = vmin.xlane.f32.xlu0 %v3976_v48  ;;  %v850_v54 = vpop.xlane.xlu0 %849  ;;  %v3990_v18 = vcvt.s32.f32 %v957_v39  ;;  %v942_v21 = vshra.s32 %v3986_v46, 16  ;;  %v3994_v57 = vsel %vm875_vm15, 2147483647, %v3874_v27  ;;  %v2031_v10 = vld [vmem:[#allocation2 + $0x48] sm:$0xff] }
 0x3f3   : > { %899 = vst.msk [vmem:[#allocation2 + $0x68] sm:$0xff] %vm589_vm1, %v2952_v52  ;;  %vm874_vm0 = vcmp.eq.s32.totalorder %v3888_v41, %v824_v51  ;;  %v869_v53 = vadd.s32 %v868_v47, %v866_v2  ;;  %v851_v63 = vcvt.f32.s32 %v850_v54  ;;  %v4000_v3 = vsel %vm589_vm1, %v3994_v57, 2147483647 }
 0x3f4   : > { %v2951_v0 = vsel %vm874_vm0, 1.0, %v3474_v60  ;;  %960 = vmin.xlane.f32.xlu1 %v3990_v18  ;;  %v2030_v31 = vld [vmem:[#allocation2 + $0x40] sm:$0xff]  ;;  %v4004_v61 = vcvt.s32.f32 %v942_v21  ;;  %v987_v27 = vshra.s32 %v4000_v3, 16  ;;  %v4008_v7 = vsel %vm874_vm0, 2147483647, %v3888_v41 }
 0x3f5   : > { %898 = vst.msk [vmem:[#allocation2 + $0x60] sm:$0xff] %vm589_vm1, %v2951_v0  ;;  %vm877_vm2 = vcmp.eq.s32.totalorder %v3904_v50, %v869_v53  ;;  %v854_v9 = vadd.s32 %v853_v15, %v851_v63  ;;  %3242 = vmatprep.mubr.msk.f32.mxu0 %vm589_vm1, %v2030_v31  ;;  %v4015_v13 = vsel %vm589_vm1, %v4008_v7, 2147483647  ;;  %v926_v36 = vand.u32 65535, %v3948_v6 }
 0x3f6   : > { %v2954_v4 = vsel %vm877_vm2, 1.0, %v3474_v60  ;;  %3243 = vmatmul.mubr.msk.f32.gmra.mxu0 %vm589_vm1, %v2031_v10  ;;  %945 = vmin.xlane.f32.xlu0 %v4004_v61  ;;  %v4020_v41 = vcvt.s32.f32 %v987_v27  ;;  %v972_v14 = vshra.s32 %v4015_v13, 16  ;;  %v4024_v12 = vsel %vm877_vm2, 2147483647, %v3904_v50  ;;  %v2033_v50 = vld [vmem:[#allocation2 + $0x58] sm:$0xff] }
 0x3f7   : > { %901 = vst.msk [vmem:[#allocation2 + $0x78] sm:$0xff] %vm589_vm1, %v2954_v4  ;;  %vm876_vm3 = vcmp.eq.s32.totalorder %v3916_v58, %v854_v9  ;;  %v4030_v16 = vsel %vm589_vm1, %v4024_v12, 2147483647  ;;  %v911_v38 = vand.u32 65535, %v3959_v20  ;;  %v928_v8 = vcvt.s32.f32 %v926_v36 }
 0x3f8   : > { %v2953_v1 = vsel %vm876_vm3, 1.0, %v3474_v60  ;;  %990 = vmin.xlane.f32.xlu1 %v4020_v41  ;;  %v2032_v47 = vld [vmem:[#allocation2 + $0x50] sm:$0xff]  ;;  %v974_v22 = vcvt.s32.f32 %v972_v14  ;;  %v1017_v23 = vshra.s32 %v4030_v16, 16  ;;  %v4036_v26 = vsel %vm876_vm3, 2147483647, %v3916_v58 }
 0x3f9   : > { %900 = vst.msk [vmem:[#allocation2 + $0x70] sm:$0xff] %vm589_vm1, %v2953_v1  ;;  %3245 = vmatprep.mubr.msk.f32.mxu0 %vm589_vm1, %v2032_v47  ;;  %v1000_v59 = vsel %vm589_vm1, %v4036_v26, 2147483647  ;;  %v956_v43 = vand.u32 65535, %v3972_v44  ;;  %v913_v39 = vcvt.s32.f32 %v911_v38  ;;  %v941_v51 = vand.u32 65535, %v3986_v46 }
 0x3fa   : > { %3246 = vmatmul.mubr.msk.f32.gmra.mxu0 %vm589_vm1, %v2033_v50  ;;  %975 = vmin.xlane.f32.xlu0 %v974_v22  ;;  %v1019_v15 = vcvt.s32.f32 %v1017_v23  ;;  %v1002_v55 = vshra.s32 %v1000_v59, 16  ;;  %v2035_v58 = vld [vmem:[#allocation2 + $0x68] sm:$0xff]  ;;  %v986_v6 = vand.u32 65535, %v4000_v3 }
 0x3fb   : > { %v958_v54 = vcvt.s32.f32 %v956_v43  ;;  %v943_v21 = vcvt.s32.f32 %v941_v51 }
 0x3fc   : > { %1020 = vmin.xlane.f32.xlu1 %v1019_v15  ;;  %v2034_v11 = vld [vmem:[#allocation2 + $0x60] sm:$0xff]  ;;  %v1004_v24 = vcvt.s32.f32 %v1002_v55  ;;  %v988_v63 = vcvt.s32.f32 %v986_v6 }
 0x3fd   : > { %3248 = vmatprep.mubr.msk.f32.mxu0 %vm589_vm1, %v2034_v11 }
 0x3fe   : > { %3249 = vmatmul.mubr.msk.f32.gmra.mxu0 %vm589_vm1, %v2035_v58  ;;  %1005 = vmin.xlane.f32.xlu0 %v1004_v24  ;;  %v2037_v34 = vld [vmem:[#allocation2 + $0x78] sm:$0xff] }
 0x400   : > { %v2036_v56 = vld [vmem:[#allocation2 + $0x70] sm:$0xff] }
 0x401   : > { %3251 = vmatprep.mubr.msk.f32.mxu0 %vm589_vm1, %v2036_v56 }
 0x402   : > { %3252 = vmatmul.mubr.msk.f32.gmra.mxu0 %vm589_vm1, %v2037_v34 }
 0x479   : > { %v931_v17 = vpop.xlane.xlu1 %930 }
 0x47a   : > { %vm932_vm4 = vcmp.eq.f32.partialorder %v3962_v40, %v931_v17  ;;  %v971_v40 = vand.u32 65535, %v4015_v13 }
 0x47b   : > { %v916_v29 = vpop.xlane.xlu0 %915  ;;  %v933_v45 = vsel %vm932_vm4, %v928_v8, inf }
 0x47c   : > { %934 = vmin.xlane.f32.xlu1 %v933_v45  ;;  %vm917_vm5 = vcmp.eq.f32.partialorder %v3976_v48, %v916_v29  ;;  %v1016_v48 = vand.u32 65535, %v4030_v16  ;;  %v973_v31 = vcvt.s32.f32 %v971_v40  ;;  %v937_v16 = vcvt.f32.s32 %v931_v17 }
 0x47d   : > { %v961_v2 = vpop.xlane.xlu1 %960  ;;  %v918_v52 = vsel %vm917_vm5, %v913_v39, inf }
 0x47e   : > { %919 = vmin.xlane.f32.xlu0 %v918_v52  ;;  %vm962_vm6 = vcmp.eq.f32.partialorder %v3990_v18, %v961_v2  ;;  %v1001_v18 = vand.u32 65535, %v1000_v59  ;;  %v1018_v10 = vcvt.s32.f32 %v1016_v48  ;;  %v967_v1 = vcvt.f32.s32 %v961_v2 }
 0x47f   : > { %v946_v20 = vpop.xlane.xlu0 %945  ;;  %v963_v44 = vsel %vm962_vm6, %v958_v54, inf  ;;  %v938_v50 = vshll.u32 %v937_v16, 16 }
 0x480   : > { %964 = vmin.xlane.f32.xlu1 %v963_v44  ;;  %vm947_vm7 = vcmp.eq.f32.partialorder %v4004_v61, %v946_v20  ;;  %v1003_v4 = vcvt.s32.f32 %v1001_v18  ;;  %v952_v47 = vcvt.f32.s32 %v946_v20  ;;  %v968_v36 = vshll.u32 %v967_v1, 16 }
 0x481   : > { %v991_v46 = vpop.xlane.xlu1 %990  ;;  %v948_v53 = vsel %vm947_vm7, %v943_v21, inf }
 0x482   : > { %949 = vmin.xlane.f32.xlu0 %v948_v53  ;;  %vm992_vm8 = vcmp.eq.f32.partialorder %v4020_v41, %v991_v46  ;;  %v922_v41 = vcvt.f32.s32 %v916_v29  ;;  %v997_v59 = vcvt.f32.s32 %v991_v46  ;;  %v953_v38 = vshll.u32 %v952_v47, 16 }
 0x483   : > { %v976_v3 = vpop.xlane.xlu0 %975  ;;  %v993_v0 = vsel %vm992_vm8, %v988_v63, inf }
 0x484   : > { %994 = vmin.xlane.f32.xlu1 %v993_v0  ;;  %vm977_vm9 = vcmp.eq.f32.partialorder %v974_v22, %v976_v3  ;;  %v982_v55 = vcvt.f32.s32 %v976_v3  ;;  %v923_v56 = vshll.u32 %v922_v41, 16  ;;  %v998_v43 = vshll.u32 %v997_v59, 16 }
 0x485   : > { %v1021_v27 = vpop.xlane.xlu1 %1020  ;;  %v978_v9 = vsel %vm977_vm9, %v973_v31, inf }
 0x486   : > { %979 = vmin.xlane.f32.xlu0 %v978_v9  ;;  %vm1022_vm10 = vcmp.eq.f32.partialorder %v1019_v15, %v1021_v27  ;;  %v1027_v11 = vcvt.f32.s32 %v1021_v27  ;;  %v983_v45 = vshll.u32 %v982_v55, 16 }
 0x487   : > { %v1006_v61 = vpop.xlane.xlu0 %1005  ;;  %v1023_v13 = vsel %vm1022_vm10, %v1018_v10, inf }
 0x488   : > { %1024 = vmin.xlane.f32.xlu1 %v1023_v13  ;;  %vm1007_vm11 = vcmp.eq.f32.partialorder %v1004_v24, %v1006_v61  ;;  %v1012_v8 = vcvt.f32.s32 %v1006_v61  ;;  %v1028_v39 = vshll.u32 %v1027_v11, 16 }
 0x489   : > { %v1008_v14 = vsel %vm1007_vm11, %v1003_v4, inf }
 0x48a   : > { %1009 = vmin.xlane.f32.xlu0 %v1008_v14  ;;  %v1013_v44 = vshll.u32 %v1012_v8, 16 }
 0x505   : > { %v935_v23 = vpop.xlane.xlu1 %934 }
 0x506   : > { %v936_v22 = vcvt.f32.s32 %v935_v23 }
 0x507   : > { %v920_v58 = vpop.xlane.xlu0 %919 }
 0x508   : > { %v939_v15 = vadd.s32 %v938_v50, %v936_v22  ;;  %v921_v34 = vcvt.f32.s32 %v920_v58 }
 0x509   : > { %v965_v24 = vpop.xlane.xlu1 %964 }
 0x50a   : > { %vm1031_vm12 = vcmp.eq.s32.totalorder %v3942_v25, %v939_v15  ;;  %v924_v17 = vadd.s32 %v923_v56, %v921_v34  ;;  %v966_v29 = vcvt.f32.s32 %v965_v24 }
 0x50b   : > { %v2956_v51 = vsel %vm1031_vm12, 1.0, %v3474_v60  ;;  %v950_v2 = vpop.xlane.xlu0 %949  ;;  %v4062_v52 = vsel %vm1031_vm12, 2147483647, %v3942_v25 }
 0x50c   : > { %1055 = vst.msk [vmem:[#allocation2 + $0x88] sm:$0xff] %vm589_vm1, %v2956_v51  ;;  %vm1030_vm13 = vcmp.eq.s32.totalorder %v3953_v32, %v924_v17  ;;  %v969_v54 = vadd.s32 %v968_v36, %v966_v29  ;;  %v951_v6 = vcvt.f32.s32 %v950_v2  ;;  %v4068_v20 = vsel %vm589_vm1, %v4062_v52, 2147483647 }
 0x50d   : > { %v2955_v21 = vsel %vm1030_vm13, 1.0, %v3474_v60  ;;  %v995_v40 = vpop.xlane.xlu1 %994  ;;  %v1087_v46 = vshra.s32 %v4068_v20, 16  ;;  %v4073_v53 = vsel %vm1030_vm13, 2147483647, %v3953_v32 }
 0x50e   : > { %1054 = vst.msk [vmem:[#allocation2 + $0x80] sm:$0xff] %vm589_vm1, %v2955_v21  ;;  %vm1033_vm14 = vcmp.eq.s32.totalorder %v3966_v5, %v969_v54  ;;  %v954_v25 = vadd.s32 %v953_v38, %v951_v6  ;;  %v996_v63 = vcvt.f32.s32 %v995_v40  ;;  %v4079_v48 = vsel %vm589_vm1, %v4073_v53, 2147483647 }
 0x50f   : > { %v2958_v3 = vsel %vm1033_vm14, 1.0, %v3474_v60  ;;  %v980_v0 = vpop.xlane.xlu0 %979  ;;  %v4082_v31 = vcvt.s32.f32 %v1087_v46  ;;  %v1072_v18 = vshra.s32 %v4079_v48, 16  ;;  %v4086_v32 = vsel %vm1033_vm14, 2147483647, %v3966_v5 }
 0x510   : > { %1057 = vst.msk [vmem:[#allocation2 + $0x98] sm:$0xff] %vm589_vm1, %v2958_v3  ;;  %vm1032_vm15 = vcmp.eq.s32.totalorder %v3980_v49, %v954_v25  ;;  %v999_v27 = vadd.s32 %v998_v43, %v996_v63  ;;  %v981_v9 = vcvt.f32.s32 %v980_v0  ;;  %v4092_v10 = vsel %vm589_vm1, %v4086_v32, 2147483647 }
 0x511   : > { %v2957_v61 = vsel %vm1032_vm15, 1.0, %v3474_v60  ;;  %1090 = vmin.xlane.f32.xlu1 %v4082_v31  ;;  %v1025_v13 = vpop.xlane.xlu1 %1024  ;;  %v4096_v4 = vcvt.s32.f32 %v1072_v18  ;;  %v1117_v5 = vshra.s32 %v4092_v10, 16  ;;  %v4100_v14 = vsel %vm1032_vm15, 2147483647, %v3980_v49 }
 0x512   : > { %1056 = vst.msk [vmem:[#allocation2 + $0x90] sm:$0xff] %vm589_vm1, %v2957_v61  ;;  %vm1035_vm0 = vcmp.eq.s32.totalorder %v3994_v57, %v999_v27  ;;  %v984_v16 = vadd.s32 %v983_v45, %v981_v9  ;;  %v1026_v41 = vcvt.f32.s32 %v1025_v13  ;;  %v4106_v1 = vsel %vm589_vm1, %v4100_v14, 2147483647 }
 0x513   : > { %v2960_v47 = vsel %vm1035_vm0, 1.0, %v3474_v60  ;;  %1075 = vmin.xlane.f32.xlu0 %v4096_v4  ;;  %v1010_v23 = vpop.xlane.xlu0 %1009  ;;  %v4110_v50 = vcvt.s32.f32 %v1117_v5  ;;  %v1102_v49 = vshra.s32 %v4106_v1, 16  ;;  %v4114_v59 = vsel %vm1035_vm0, 2147483647, %v3994_v57  ;;  %v2039_v38 = vld [vmem:[#allocation2 + $0x88] sm:$0xff] }
 0x514   : > { %1059 = vst.msk [vmem:[#allocation2 + $0xa8] sm:$0xff] %vm589_vm1, %v2960_v47  ;;  %vm1034_vm2 = vcmp.eq.s32.totalorder %v4008_v7, %v984_v16  ;;  %v1029_v22 = vadd.s32 %v1028_v39, %v1026_v41  ;;  %v1011_v55 = vcvt.f32.s32 %v1010_v23  ;;  %v4120_v11 = vsel %vm589_vm1, %v4114_v59, 2147483647 }
 0x515   : > { %v2959_v58 = vsel %vm1034_vm2, 1.0, %v3474_v60  ;;  %1120 = vmin.xlane.f32.xlu1 %v4110_v50  ;;  %v2038_v56 = vld [vmem:[#allocation2 + $0x80] sm:$0xff]  ;;  %v4124_v15 = vcvt.s32.f32 %v1102_v49  ;;  %v1147_v57 = vshra.s32 %v4120_v11, 16  ;;  %v4128_v34 = vsel %vm1034_vm2, 2147483647, %v4008_v7 }
 0x516   : > { %1058 = vst.msk [vmem:[#allocation2 + $0xa0] sm:$0xff] %vm589_vm1, %v2959_v58  ;;  %vm1037_vm3 = vcmp.eq.s32.totalorder %v4024_v12, %v1029_v22  ;;  %v1014_v36 = vadd.s32 %v1013_v44, %v1011_v55  ;;  %3254 = vmatprep.mubr.msk.f32.mxu0 %vm589_vm1, %v2038_v56  ;;  %v4135_v8 = vsel %vm589_vm1, %v4128_v34, 2147483647  ;;  %v1086_v3 = vand.u32 65535, %v4068_v20 }
 0x517   : > { %v2962_v24 = vsel %vm1037_vm3, 1.0, %v3474_v60  ;;  %3255 = vmatmul.mubr.msk.f32.gmra.mxu0 %vm589_vm1, %v2039_v38  ;;  %1105 = vmin.xlane.f32.xlu0 %v4124_v15  ;;  %v4140_v7 = vcvt.s32.f32 %v1147_v57  ;;  %v1132_v43 = vshra.s32 %v4135_v8, 16  ;;  %v4144_v17 = vsel %vm1037_vm3, 2147483647, %v4024_v12  ;;  %v2041_v12 = vld [vmem:[#allocation2 + $0x98] sm:$0xff] }
 0x518   : > { %1061 = vst.msk [vmem:[#allocation2 + $0xb8] sm:$0xff] %vm589_vm1, %v2962_v24  ;;  %vm1036_vm4 = vcmp.eq.s32.totalorder %v4036_v26, %v1014_v36  ;;  %v4150_v29 = vsel %vm589_vm1, %v4144_v17, 2147483647  ;;  %v1071_v0 = vand.u32 65535, %v4079_v48  ;;  %v1088_v27 = vcvt.s32.f32 %v1086_v3 }
 0x519   : > { %v2961_v45 = vsel %vm1036_vm4, 1.0, %v3474_v60  ;;  %1150 = vmin.xlane.f32.xlu1 %v4140_v7  ;;  %v2040_v39 = vld [vmem:[#allocation2 + $0x90] sm:$0xff]  ;;  %v1134_v51 = vcvt.s32.f32 %v1132_v43  ;;  %v1177_v2 = vshra.s32 %v4150_v29, 16  ;;  %v4156_v54 = vsel %vm1036_vm4, 2147483647, %v4036_v26 }
 0x51a   : > { %1060 = vst.msk [vmem:[#allocation2 + $0xb0] sm:$0xff] %vm589_vm1, %v2961_v45  ;;  %3257 = vmatprep.mubr.msk.f32.mxu0 %vm589_vm1, %v2040_v39  ;;  %v1160_v6 = vsel %vm589_vm1, %v4156_v54, 2147483647  ;;  %v1116_v9 = vand.u32 65535, %v4092_v10  ;;  %v1073_v5 = vcvt.s32.f32 %v1071_v0  ;;  %v1101_v16 = vand.u32 65535, %v4106_v1 }
 0x51b   : > { %3258 = vmatmul.mubr.msk.f32.gmra.mxu0 %vm589_vm1, %v2041_v12  ;;  %1135 = vmin.xlane.f32.xlu0 %v1134_v51  ;;  %v1179_v44 = vcvt.s32.f32 %v1177_v2  ;;  %v1162_v21 = vshra.s32 %v1160_v6, 16  ;;  %v2043_v26 = vld [vmem:[#allocation2 + $0xa8] sm:$0xff]  ;;  %v1146_v20 = vand.u32 65535, %v4120_v11 }
 0x51c   : > { %v1118_v23 = vcvt.s32.f32 %v1116_v9  ;;  %v1103_v49 = vcvt.s32.f32 %v1101_v16 }
 0x51d   : > { %1180 = vmin.xlane.f32.xlu1 %v1179_v44  ;;  %v2042_v40 = vld [vmem:[#allocation2 + $0xa0] sm:$0xff]  ;;  %v1164_v46 = vcvt.s32.f32 %v1162_v21  ;;  %v1148_v55 = vcvt.s32.f32 %v1146_v20 }
 0x51e   : > { %3260 = vmatprep.mubr.msk.f32.mxu0 %vm589_vm1, %v2042_v40 }
 0x51f   : > { %3261 = vmatmul.mubr.msk.f32.gmra.mxu0 %vm589_vm1, %v2043_v26  ;;  %1165 = vmin.xlane.f32.xlu0 %v1164_v46  ;;  %v2045_v63 = vld [vmem:[#allocation2 + $0xb8] sm:$0xff] }
 0x521   : > { %v2044_v25 = vld [vmem:[#allocation2 + $0xb0] sm:$0xff] }
 0x522   : > { %3263 = vmatprep.mubr.msk.f32.mxu0 %vm589_vm1, %v2044_v25 }
 0x523   : > { %3264 = vmatmul.mubr.msk.f32.gmra.mxu0 %vm589_vm1, %v2045_v63 }
 0x59a   : > { %v1091_v18 = vpop.xlane.xlu1 %1090 }
 0x59b   : > { %vm1092_vm5 = vcmp.eq.f32.partialorder %v4082_v31, %v1091_v18  ;;  %v1131_v31 = vand.u32 65535, %v4135_v8 }
 0x59c   : > { %v1076_v61 = vpop.xlane.xlu0 %1075  ;;  %v1093_v13 = vsel %vm1092_vm5, %v1088_v27, inf }
 0x59d   : > { %1094 = vmin.xlane.f32.xlu1 %v1093_v13  ;;  %vm1077_vm6 = vcmp.eq.f32.partialorder %v4096_v4, %v1076_v61  ;;  %v1176_v4 = vand.u32 65535, %v4150_v29  ;;  %v1133_v56 = vcvt.s32.f32 %v1131_v31  ;;  %v1097_v29 = vcvt.f32.s32 %v1091_v18 }
 0x59e   : > { %v1121_v41 = vpop.xlane.xlu1 %1120  ;;  %v1078_v47 = vsel %vm1077_vm6, %v1073_v5, inf }
 0x59f   : > { %1079 = vmin.xlane.f32.xlu0 %v1078_v47  ;;  %vm1122_vm7 = vcmp.eq.f32.partialorder %v4110_v50, %v1121_v41  ;;  %v1161_v50 = vand.u32 65535, %v1160_v6  ;;  %v1178_v38 = vcvt.s32.f32 %v1176_v4  ;;  %v1127_v45 = vcvt.f32.s32 %v1121_v41 }
 0x5a0   : > { %v1106_v48 = vpop.xlane.xlu0 %1105  ;;  %v1123_v10 = vsel %vm1122_vm7, %v1118_v23, inf  ;;  %v1098_v12 = vshll.u32 %v1097_v29, 16 }
 0x5a1   : > { %1124 = vmin.xlane.f32.xlu1 %v1123_v10  ;;  %vm1107_vm8 = vcmp.eq.f32.partialorder %v4124_v15, %v1106_v48  ;;  %v1163_v24 = vcvt.s32.f32 %v1161_v50  ;;  %v1112_v39 = vcvt.f32.s32 %v1106_v48  ;;  %v1128_v3 = vshll.u32 %v1127_v45, 16 }
 0x5a2   : > { %v1151_v1 = vpop.xlane.xlu1 %1150  ;;  %v1108_v22 = vsel %vm1107_vm8, %v1103_v49, inf }
 0x5a3   : > { %1109 = vmin.xlane.f32.xlu0 %v1108_v22  ;;  %vm1152_vm9 = vcmp.eq.f32.partialorder %v4140_v7, %v1151_v1  ;;  %v1082_v7 = vcvt.f32.s32 %v1076_v61  ;;  %v1157_v6 = vcvt.f32.s32 %v1151_v1  ;;  %v1113_v0 = vshll.u32 %v1112_v39, 16 }
 0x5a4   : > { %v1136_v11 = vpop.xlane.xlu0 %1135  ;;  %v1153_v58 = vsel %vm1152_vm9, %v1148_v55, inf }
 0x5a5   : > { %1154 = vmin.xlane.f32.xlu1 %v1153_v58  ;;  %vm1137_vm10 = vcmp.eq.f32.partialorder %v1134_v51, %v1136_v11  ;;  %v1142_v21 = vcvt.f32.s32 %v1136_v11  ;;  %v1083_v25 = vshll.u32 %v1082_v7, 16  ;;  %v1158_v9 = vshll.u32 %v1157_v6, 16 }
 0x5a6   : > { %v1181_v57 = vpop.xlane.xlu1 %1180  ;;  %v1138_v36 = vsel %vm1137_vm10, %v1133_v56, inf }
 0x5a7   : > { %1139 = vmin.xlane.f32.xlu0 %v1138_v36  ;;  %vm1182_vm11 = vcmp.eq.f32.partialorder %v1179_v44, %v1181_v57  ;;  %v1187_v40 = vcvt.f32.s32 %v1181_v57  ;;  %v1143_v13 = vshll.u32 %v1142_v21, 16 }
 0x5a8   : > { %v1166_v15 = vpop.xlane.xlu0 %1165  ;;  %v1183_v8 = vsel %vm1182_vm11, %v1178_v38, inf }
 0x5a9   : > { %1184 = vmin.xlane.f32.xlu1 %v1183_v8  ;;  %vm1167_vm12 = vcmp.eq.f32.partialorder %v1164_v46, %v1166_v15  ;;  %v1172_v27 = vcvt.f32.s32 %v1166_v15  ;;  %v1188_v5 = vshll.u32 %v1187_v40, 16 }
 0x5aa   : > { %v1168_v43 = vsel %vm1167_vm12, %v1163_v24, inf }
 0x5ab   : > { %1169 = vmin.xlane.f32.xlu0 %v1168_v43  ;;  %v1173_v10 = vshll.u32 %v1172_v27, 16 }
 0x626   : > { %v1095_v2 = vpop.xlane.xlu1 %1094 }
 0x627   : > { %v1096_v51 = vcvt.f32.s32 %v1095_v2 }
 0x628   : > { %v1080_v26 = vpop.xlane.xlu0 %1079 }
 0x629   : > { %v1099_v44 = vadd.s32 %v1098_v12, %v1096_v51  ;;  %v1081_v63 = vcvt.f32.s32 %v1080_v26 }
 0x62a   : > { %v1125_v46 = vpop.xlane.xlu1 %1124 }
 0x62b   : > { %vm1191_vm13 = vcmp.eq.s32.totalorder %v4062_v52, %v1099_v44  ;;  %v1084_v18 = vadd.s32 %v1083_v25, %v1081_v63  ;;  %v1126_v61 = vcvt.f32.s32 %v1125_v46 }
 0x62c   : > { %v2964_v16 = vsel %vm1191_vm13, 1.0, %v3474_v60  ;;  %v1110_v41 = vpop.xlane.xlu0 %1109  ;;  %v4182_v47 = vsel %vm1191_vm13, 2147483647, %v4062_v52 }
 0x62d   : > { %1215 = vst.msk [vmem:[#allocation2 + $0xc8] sm:$0xff] %vm589_vm1, %v2964_v16  ;;  %vm1190_vm14 = vcmp.eq.s32.totalorder %v4073_v53, %v1084_v18  ;;  %v1129_v23 = vadd.s32 %v1128_v3, %v1126_v61  ;;  %v1111_v20 = vcvt.f32.s32 %v1110_v41  ;;  %v4188_v48 = vsel %vm589_vm1, %v4182_v47, 2147483647 }
 0x62e   : > { %v2963_v49 = vsel %vm1190_vm14, 1.0, %v3474_v60  ;;  %v1155_v31 = vpop.xlane.xlu1 %1154  ;;  %v1247_v1 = vshra.s32 %v4188_v48, 16  ;;  %v4193_v22 = vsel %vm1190_vm14, 2147483647, %v4073_v53 }
 0x62f   : > { %1214 = vst.msk [vmem:[#allocation2 + $0xc0] sm:$0xff] %vm589_vm1, %v2963_v49  ;;  %vm1193_vm15 = vcmp.eq.s32.totalorder %v4086_v32, %v1129_v23  ;;  %v1114_v52 = vadd.s32 %v1113_v0, %v1111_v20  ;;  %v1156_v55 = vcvt.f32.s32 %v1155_v31  ;;  %v4199_v4 = vsel %vm589_vm1, %v4193_v22, 2147483647 }
 0x630   : > { %v2966_v11 = vsel %vm1193_vm15, 1.0, %v3474_v60  ;;  %v1140_v58 = vpop.xlane.xlu0 %1139  ;;  %v4202_v56 = vcvt.s32.f32 %v1247_v1  ;;  %v1232_v50 = vshra.s32 %v4199_v4, 16  ;;  %v4206_v53 = vsel %vm1193_vm15, 2147483647, %v4086_v32 }
 0x631   : > { %1217 = vst.msk [vmem:[#allocation2 + $0xd8] sm:$0xff] %vm589_vm1, %v2966_v11  ;;  %vm1192_vm0 = vcmp.eq.s32.totalorder %v4100_v14, %v1114_v52  ;;  %v1159_v57 = vadd.s32 %v1158_v9, %v1156_v55  ;;  %v1141_v36 = vcvt.f32.s32 %v1140_v58  ;;  %v4212_v38 = vsel %vm589_vm1, %v4206_v53, 2147483647 }
 0x632   : > { %v2965_v15 = vsel %vm1192_vm0, 1.0, %v3474_v60  ;;  %1250 = vmin.xlane.f32.xlu1 %v4202_v56  ;;  %v1185_v8 = vpop.xlane.xlu1 %1184  ;;  %v4216_v24 = vcvt.s32.f32 %v1232_v50  ;;  %v1277_v32 = vshra.s32 %v4212_v38, 16  ;;  %v4220_v43 = vsel %vm1192_vm0, 2147483647, %v4100_v14 }
 0x633   : > { %1216 = vst.msk [vmem:[#allocation2 + $0xd0] sm:$0xff] %vm589_vm1, %v2965_v15  ;;  %vm1195_vm2 = vcmp.eq.s32.totalorder %v4114_v59, %v1159_v57  ;;  %v1144_v29 = vadd.s32 %v1143_v13, %v1141_v36  ;;  %v1186_v7 = vcvt.f32.s32 %v1185_v8  ;;  %v4226_v45 = vsel %vm589_vm1, %v4220_v43, 2147483647 }
 0x634   : > { %v2968_v39 = vsel %vm1195_vm2, 1.0, %v3474_v60  ;;  %1235 = vmin.xlane.f32.xlu0 %v4216_v24  ;;  %v1170_v2 = vpop.xlane.xlu0 %1169  ;;  %v4230_v12 = vcvt.s32.f32 %v1277_v32  ;;  %v1262_v14 = vshra.s32 %v4226_v45, 16  ;;  %v4234_v6 = vsel %vm1195_vm2, 2147483647, %v4114_v59  ;;  %v2047_v0 = vld [vmem:[#allocation2 + $0xc8] sm:$0xff] }
 0x635   : > { %1219 = vst.msk [vmem:[#allocation2 + $0xe8] sm:$0xff] %vm589_vm1, %v2968_v39  ;;  %vm1194_vm3 = vcmp.eq.s32.totalorder %v4128_v34, %v1144_v29  ;;  %v1189_v51 = vadd.s32 %v1188_v5, %v1186_v7  ;;  %v1171_v21 = vcvt.f32.s32 %v1170_v2  ;;  %v4240_v40 = vsel %vm589_vm1, %v4234_v6, 2147483647 }
 0x636   : > { %v2967_v26 = vsel %vm1194_vm3, 1.0, %v3474_v60  ;;  %1280 = vmin.xlane.f32.xlu1 %v4230_v12  ;;  %v2046_v25 = vld [vmem:[#allocation2 + $0xc0] sm:$0xff]  ;;  %v4244_v44 = vcvt.s32.f32 %v1262_v14  ;;  %v1307_v59 = vshra.s32 %v4240_v40, 16  ;;  %v4248_v63 = vsel %vm1194_vm3, 2147483647, %v4128_v34 }
 0x637   : > { %1218 = vst.msk [vmem:[#allocation2 + $0xe0] sm:$0xff] %vm589_vm1, %v2967_v26  ;;  %vm1197_vm4 = vcmp.eq.s32.totalorder %v4144_v17, %v1189_v51  ;;  %v1174_v3 = vadd.s32 %v1173_v10, %v1171_v21  ;;  %3266 = vmatprep.mubr.msk.f32.mxu0 %vm589_vm1, %v2046_v25  ;;  %v4255_v27 = vsel %vm589_vm1, %v4248_v63, 2147483647  ;;  %v1246_v11 = vand.u32 65535, %v4188_v48 }
 0x638   : > { %v2970_v46 = vsel %vm1197_vm4, 1.0, %v3474_v60  ;;  %3267 = vmatmul.mubr.msk.f32.gmra.mxu0 %vm589_vm1, %v2047_v0  ;;  %1265 = vmin.xlane.f32.xlu0 %v4244_v44  ;;  %v4260_v34 = vcvt.s32.f32 %v1307_v59  ;;  %v1292_v9 = vshra.s32 %v4255_v27, 16  ;;  %v4264_v18 = vsel %vm1197_vm4, 2147483647, %v4144_v17  ;;  %v2049_v17 = vld [vmem:[#allocation2 + $0xd8] sm:$0xff] }
 0x639   : > { %1221 = vst.msk [vmem:[#allocation2 + $0xf8] sm:$0xff] %vm589_vm1, %v2970_v46  ;;  %vm1196_vm5 = vcmp.eq.s32.totalorder %v4156_v54, %v1174_v3  ;;  %v4270_v61 = vsel %vm589_vm1, %v4264_v18, 2147483647  ;;  %v1231_v58 = vand.u32 65535, %v4199_v4  ;;  %v1248_v57 = vcvt.s32.f32 %v1246_v11 }
 0x63a   : > { %v2969_v13 = vsel %vm1196_vm5, 1.0, %v3474_v60  ;;  %1310 = vmin.xlane.f32.xlu1 %v4260_v34  ;;  %v2048_v5 = vld [vmem:[#allocation2 + $0xd0] sm:$0xff]  ;;  %v1294_v16 = vcvt.s32.f32 %v1292_v9  ;;  %v1337_v41 = vshra.s32 %v4270_v61, 16  ;;  %v4276_v23 = vsel %vm1196_vm5, 2147483647, %v4156_v54 }
 0x63b   : > { %1220 = vst.msk [vmem:[#allocation2 + $0xf0] sm:$0xff] %vm589_vm1, %v2969_v13  ;;  %3269 = vmatprep.mubr.msk.f32.mxu0 %vm589_vm1, %v2048_v5  ;;  %v1320_v20 = vsel %vm589_vm1, %v4276_v23, 2147483647  ;;  %v1276_v36 = vand.u32 65535, %v4212_v38  ;;  %v1233_v32 = vcvt.s32.f32 %v1231_v58  ;;  %v1261_v29 = vand.u32 65535, %v4226_v45 }
 0x63c   : > { %3270 = vmatmul.mubr.msk.f32.gmra.mxu0 %vm589_vm1, %v2049_v17  ;;  %1295 = vmin.xlane.f32.xlu0 %v1294_v16  ;;  %v1339_v10 = vcvt.s32.f32 %v1337_v41  ;;  %v1322_v49 = vshra.s32 %v1320_v20, 16  ;;  %v2051_v54 = vld [vmem:[#allocation2 + $0xe8] sm:$0xff]  ;;  %v1306_v48 = vand.u32 65535, %v4240_v40 }
 0x63d   : > { %v1278_v2 = vcvt.s32.f32 %v1276_v36  ;;  %v1263_v14 = vcvt.s32.f32 %v1261_v29 }
 0x63e   : > { %1340 = vmin.xlane.f32.xlu1 %v1339_v10  ;;  %v2050_v31 = vld [vmem:[#allocation2 + $0xe0] sm:$0xff]  ;;  %v1324_v1 = vcvt.s32.f32 %v1322_v49  ;;  %v1308_v21 = vcvt.s32.f32 %v1306_v48 }
 0x63f   : > { %3272 = vmatprep.mubr.msk.f32.mxu0 %vm589_vm1, %v2050_v31 }
 0x640   : > { %3273 = vmatmul.mubr.msk.f32.gmra.mxu0 %vm589_vm1, %v2051_v54  ;;  %1325 = vmin.xlane.f32.xlu0 %v1324_v1  ;;  %v2053_v55 = vld [vmem:[#allocation2 + $0xf8] sm:$0xff] }
 0x642   : > { %v2052_v52 = vld [vmem:[#allocation2 + $0xf0] sm:$0xff] }
 0x643   : > { %3275 = vmatprep.mubr.msk.f32.mxu0 %vm589_vm1, %v2052_v52 }
 0x644   : > { %3276 = vmatmul.mubr.msk.f32.gmra.mxu0 %vm589_vm1, %v2053_v55 }
 0x6bb   : > { %v1251_v50 = vpop.xlane.xlu1 %1250 }
 0x6bc   : > { %vm1252_vm6 = vcmp.eq.f32.partialorder %v4202_v56, %v1251_v50  ;;  %v1291_v56 = vand.u32 65535, %v4255_v27 }
 0x6bd   : > { %v1236_v15 = vpop.xlane.xlu0 %1235  ;;  %v1253_v8 = vsel %vm1252_vm6, %v1248_v57, inf }
 0x6be   : > { %1254 = vmin.xlane.f32.xlu1 %v1253_v8  ;;  %vm1237_vm7 = vcmp.eq.f32.partialorder %v4216_v24, %v1236_v15  ;;  %v1336_v24 = vand.u32 65535, %v4270_v61  ;;  %v1293_v25 = vcvt.s32.f32 %v1291_v56  ;;  %v1257_v61 = vcvt.f32.s32 %v1251_v50 }
 0x6bf   : > { %v1281_v7 = vpop.xlane.xlu1 %1280  ;;  %v1238_v39 = vsel %vm1237_vm7, %v1233_v32, inf }
 0x6c0   : > { %1239 = vmin.xlane.f32.xlu0 %v1238_v39  ;;  %vm1282_vm8 = vcmp.eq.f32.partialorder %v4230_v12, %v1281_v7  ;;  %v1321_v12 = vand.u32 65535, %v1320_v20  ;;  %v1338_v0 = vcvt.s32.f32 %v1336_v24  ;;  %v1287_v13 = vcvt.f32.s32 %v1281_v7 }
 0x6c1   : > { %v1266_v4 = vpop.xlane.xlu0 %1265  ;;  %v1283_v38 = vsel %vm1282_vm8, %v1278_v2, inf  ;;  %v1258_v17 = vshll.u32 %v1257_v61, 16 }
 0x6c2   : > { %1284 = vmin.xlane.f32.xlu1 %v1283_v38  ;;  %vm1267_vm9 = vcmp.eq.f32.partialorder %v4244_v44, %v1266_v4  ;;  %v1323_v46 = vcvt.s32.f32 %v1321_v12  ;;  %v1272_v5 = vcvt.f32.s32 %v1266_v4  ;;  %v1288_v11 = vshll.u32 %v1287_v13, 16 }
 0x6c3   : > { %v1311_v45 = vpop.xlane.xlu1 %1310  ;;  %v1268_v51 = vsel %vm1267_vm9, %v1263_v14, inf }
 0x6c4   : > { %1269 = vmin.xlane.f32.xlu0 %v1268_v51  ;;  %vm1312_vm10 = vcmp.eq.f32.partialorder %v4260_v34, %v1311_v45  ;;  %v1242_v34 = vcvt.f32.s32 %v1236_v15  ;;  %v1317_v20 = vcvt.f32.s32 %v1311_v45  ;;  %v1273_v58 = vshll.u32 %v1272_v5, 16 }
 0x6c5   : > { %v1296_v40 = vpop.xlane.xlu0 %1295  ;;  %v1313_v26 = vsel %vm1312_vm10, %v1308_v21, inf }
 0x6c6   : > { %1314 = vmin.xlane.f32.xlu1 %v1313_v26  ;;  %vm1297_vm11 = vcmp.eq.f32.partialorder %v1294_v16, %v1296_v40  ;;  %v1302_v49 = vcvt.f32.s32 %v1296_v40  ;;  %v1243_v52 = vshll.u32 %v1242_v34, 16 }
 0x6c7   : > { %v1341_v59 = vpop.xlane.xlu1 %1340  ;;  %v1298_v3 = vsel %vm1297_vm11, %v1293_v25, inf }
 0x6c8   : > { %1299 = vmin.xlane.f32.xlu0 %v1298_v3  ;;  %vm1342_vm12 = vcmp.eq.f32.partialorder %v1339_v10, %v1341_v59  ;;  %v1347_v31 = vcvt.f32.s32 %v1341_v59  ;;  %v1303_v15 = vshll.u32 %v1302_v49, 16 }
 0x6c9   : > { %v1326_v44 = vpop.xlane.xlu0 %1325  ;;  %v1343_v27 = vsel %vm1342_vm12, %v1338_v0, inf }
 0x6ca   : > { %1344 = vmin.xlane.f32.xlu1 %v1343_v27  ;;  %vm1327_vm13 = vcmp.eq.f32.partialorder %v1324_v1, %v1326_v44  ;;  %v1318_v1 = vshll.u32 %v1317_v20, 16  ;;  %v1348_v8 = vshll.u32 %v1347_v31, 16  ;;  %v1332_v4 = vcvt.f32.s32 %v1326_v44 }
 0x6cb   : > { %v1328_v9 = vsel %vm1327_vm13, %v1323_v46, inf }
 0x6cc   : > { %1329 = vmin.xlane.f32.xlu0 %v1328_v9  ;;  %v1333_v0 = vshll.u32 %v1332_v4, 16 }
 0x747   : > { %v1255_v41 = vpop.xlane.xlu1 %1254 }
 0x748   : > { %v1256_v16 = vcvt.f32.s32 %v1255_v41 }
 0x749   : > { %v1240_v54 = vpop.xlane.xlu0 %1239 }
 0x74a   : > { %v1259_v10 = vadd.s32 %v1258_v17, %v1256_v16  ;;  %v1241_v55 = vcvt.f32.s32 %v1240_v54 }
 0x74b   : > { %v1285_v57 = vpop.xlane.xlu1 %1284 }
 0x74c   : > { %vm1351_vm14 = vcmp.eq.s32.totalorder %v4182_v47, %v1259_v10  ;;  %v1244_v50 = vadd.s32 %v1243_v52, %v1241_v55  ;;  %v1286_v36 = vcvt.f32.s32 %v1285_v57 }
 0x74d   : > { %v2972_v32 = vsel %vm1351_vm14, 1.0, %v3474_v60  ;;  %v1270_v29 = vpop.xlane.xlu0 %1269  ;;  %v4302_v7 = vsel %vm1351_vm14, 2147483647, %v4182_v47 }
 0x74e   : > { %1375 = vst.msk [vmem:[#allocation2 + $0x108] sm:$0xff] %vm589_vm1, %v2972_v32  ;;  %vm1350_vm15 = vcmp.eq.s32.totalorder %v4193_v22, %v1244_v50  ;;  %v1289_v39 = vadd.s32 %v1288_v11, %v1286_v36  ;;  %v1271_v2 = vcvt.f32.s32 %v1270_v29  ;;  %v4308_v48 = vsel %vm589_vm1, %v4302_v7, 2147483647 }
 0x74f   : > { %v2971_v38 = vsel %vm1350_vm15, 1.0, %v3474_v60  ;;  %v1315_v14 = vpop.xlane.xlu1 %1314  ;;  %v1407_v56 = vshra.s32 %v4308_v48, 16  ;;  %v4313_v45 = vsel %vm1350_vm15, 2147483647, %v4193_v22 }
 0x750   : > { %1374 = vst.msk [vmem:[#allocation2 + $0x100] sm:$0xff] %vm589_vm1, %v2971_v38  ;;  %vm1353_vm0 = vcmp.eq.s32.totalorder %v4206_v53, %v1289_v39  ;;  %v1274_v47 = vadd.s32 %v1273_v58, %v1271_v2  ;;  %v1316_v51 = vcvt.f32.s32 %v1315_v14  ;;  %v4319_v21 = vsel %vm589_vm1, %v4313_v45, 2147483647 }
 0x751   : > { %v2974_v24 = vsel %vm1353_vm0, 1.0, %v3474_v60  ;;  %v1300_v40 = vpop.xlane.xlu0 %1299  ;;  %v4322_v26 = vcvt.s32.f32 %v1407_v56  ;;  %v1392_v25 = vshra.s32 %v4319_v21, 16  ;;  %v4326_v22 = vsel %vm1353_vm0, 2147483647, %v4206_v53 }
 0x752   : > { %1377 = vst.msk [vmem:[#allocation2 + $0x118] sm:$0xff] %vm589_vm1, %v2974_v24  ;;  %vm1352_vm2 = vcmp.eq.s32.totalorder %v4220_v43, %v1274_v47  ;;  %v1319_v12 = vadd.s32 %v1318_v1, %v1316_v51  ;;  %v1301_v59 = vcvt.f32.s32 %v1300_v40  ;;  %v4332_v3 = vsel %vm589_vm1, %v4326_v22, 2147483647 }
 0x753   : > { %v2973_v44 = vsel %vm1352_vm2, 1.0, %v3474_v60  ;;  %1410 = vmin.xlane.f32.xlu1 %v4322_v26  ;;  %v1345_v27 = vpop.xlane.xlu1 %1344  ;;  %v4336_v46 = vcvt.s32.f32 %v1392_v25  ;;  %v1437_v53 = vshra.s32 %v4332_v3, 16  ;;  %v4342_v34 = vsel %vm1352_vm2, 2147483647, %v4220_v43 }
 0x754   : > { %1376 = vst.msk [vmem:[#allocation2 + $0x110] sm:$0xff] %vm589_vm1, %v2973_v44  ;;  %vm1355_vm3 = vcmp.eq.s32.totalorder %v4234_v6, %v1319_v12  ;;  %v1304_v9 = vadd.s32 %v1303_v15, %v1301_v59  ;;  %v1346_v61 = vcvt.f32.s32 %v1345_v27  ;;  %v4350_v17 = vsel %vm589_vm1, %v4342_v34, 2147483647 }
 0x755   : > { %v2976_v13 = vsel %vm1355_vm3, 1.0, %v3474_v60  ;;  %1395 = vmin.xlane.f32.xlu0 %v4336_v46  ;;  %v1330_v5 = vpop.xlane.xlu0 %1329  ;;  %v4346_v41 = vcvt.s32.f32 %v1437_v53  ;;  %v4353_v20 = vsel %vm1355_vm3, 2147483647, %v4234_v6  ;;  %v1422_v49 = vshra.s32 %v4350_v17, 16  ;;  %v2055_v10 = vld [vmem:[#allocation2 + $0x108] sm:$0xff] }
 0x756   : > { %1379 = vst.msk [vmem:[#allocation2 + $0x128] sm:$0xff] %vm589_vm1, %v2976_v13  ;;  %vm1354_vm4 = vcmp.eq.s32.totalorder %v4248_v63, %v1304_v9  ;;  %v1349_v43 = vadd.s32 %v1348_v8, %v1346_v61  ;;  %v1331_v16 = vcvt.f32.s32 %v1330_v5  ;;  %v4364_v52 = vsel %vm589_vm1, %v4353_v20, 2147483647 }
 0x757   : > { %v2975_v31 = vsel %vm1354_vm4, 1.0, %v3474_v60  ;;  %1440 = vmin.xlane.f32.xlu1 %v4346_v41  ;;  %v2054_v54 = vld [vmem:[#allocation2 + $0x100] sm:$0xff]  ;;  %v4369_v55 = vcvt.s32.f32 %v1422_v49  ;;  %v1467_v11 = vshra.s32 %v4364_v52, 16  ;;  %v4377_v57 = vsel %vm1354_vm4, 2147483647, %v4248_v63 }
 0x758   : > { %1378 = vst.msk [vmem:[#allocation2 + $0x120] sm:$0xff] %vm589_vm1, %v2975_v31  ;;  %vm1357_vm5 = vcmp.eq.s32.totalorder %v4264_v18, %v1349_v43  ;;  %v1334_v6 = vadd.s32 %v1333_v0, %v1331_v16  ;;  %3278 = vmatprep.mubr.msk.f32.mxu0 %vm589_vm1, %v2054_v54  ;;  %v4384_v50 = vsel %vm589_vm1, %v4377_v57, 2147483647  ;;  %v1406_v40 = vand.u32 65535, %v4308_v48 }
 0x759   : > { %v2978_v58 = vsel %vm1357_vm5, 1.0, %v3474_v60  ;;  %3279 = vmatmul.mubr.msk.f32.gmra.mxu0 %vm589_vm1, %v2055_v10  ;;  %1425 = vmin.xlane.f32.xlu0 %v4369_v55  ;;  %v1469_v1 = vcvt.s32.f32 %v1467_v11  ;;  %v4387_v36 = vsel %vm1357_vm5, 2147483647, %v4264_v18  ;;  %v1452_v63 = vshra.s32 %v4384_v50, 16  ;;  %v2057_v29 = vld [vmem:[#allocation2 + $0x118] sm:$0xff] }
 0x75a   : > { %1381 = vst.msk [vmem:[#allocation2 + $0x138] sm:$0xff] %vm589_vm1, %v2978_v58  ;;  %vm1356_vm6 = vcmp.eq.s32.totalorder %v4276_v23, %v1334_v6  ;;  %v1495_v32 = vsel %vm589_vm1, %v4387_v36, 2147483647  ;;  %v1391_v25 = vand.u32 65535, %v4319_v21  ;;  %v1436_v12 = vand.u32 65535, %v4332_v3 }
 0x75b   : > { %v2977_v15 = vsel %vm1356_vm6, 1.0, %v3474_v60  ;;  %v2056_v8 = vld [vmem:[#allocation2 + $0x110] sm:$0xff]  ;;  %1470 = vmin.xlane.f32.xlu1 %v1469_v1  ;;  %v1497_v39 = vshra.s32 %v1495_v32, 16  ;;  %v4396_v2 = vsel %vm1356_vm6, 2147483647, %v4276_v23  ;;  %v1454_v18 = vcvt.s32.f32 %v1452_v63 }
 0x75c   : > { %1380 = vst.msk [vmem:[#allocation2 + $0x130] sm:$0xff] %vm589_vm1, %v2977_v15  ;;  %3281 = vmatprep.mubr.msk.f32.mxu1 %vm589_vm1, %v2056_v8  ;;  %v1480_v4 = vsel %vm589_vm1, %v4396_v2, 2147483647  ;;  %v1408_v0 = vcvt.s32.f32 %v1406_v40  ;;  %v1393_v53 = vcvt.s32.f32 %v1391_v25  ;;  %v1421_v9 = vand.u32 65535, %v4350_v17 }
 0x75d   : > { %3282 = vmatmul.mubr.msk.f32.vlgmr.msra.gmra.mxu1 %vm589_vm1, %v2057_v29  ;;  %v1499_v38 = vcvt.s32.f32 %v1497_v39  ;;  %v1482_v14 = vshra.s32 %v1480_v4, 16  ;;  %1455 = vmin.xlane.f32.xlu0 %v1454_v18  ;;  %v2059_v47 = vld [vmem:[#allocation2 + $0x128] sm:$0xff]  ;;  %v1438_v5 = vcvt.s32.f32 %v1436_v12  ;;  %v1466_v48 = vand.u32 65535, %v4364_v52 }
 0x75e   : > { %v1451_v43 = vand.u32 65535, %v4384_v50  ;;  %v1496_v17 = vand.u32 65535, %v1495_v32  ;;  %v1481_v54 = vand.u32 65535, %v1480_v4 }
 0x75f   : > { %v2058_v56 = vld [vmem:[#allocation2 + $0x120] sm:$0xff]  ;;  %1500 = vmin.xlane.f32.xlu1 %v1499_v38  ;;  %v1484_v51 = vcvt.s32.f32 %v1482_v14 }
 0x760   : > { %3284 = vmatprep.mubr.msk.f32.mxu1 %vm589_vm1, %v2058_v56  ;;  %v1498_v10 = vcvt.s32.f32 %v1496_v17 }
 0x761   : > { %3285 = vmatmul.mubr.msk.f32.gmra.mxu1 %vm589_vm1, %v2059_v47  ;;  %1485 = vmin.xlane.f32.xlu0 %v1484_v51  ;;  %v2061_v24 = vld [vmem:[#allocation2 + $0x138] sm:$0xff] }
 0x763   : > { %v2060_v23 = vld [vmem:[#allocation2 + $0x130] sm:$0xff] }
 0x764   : > { %3287 = vmatprep.mubr.msk.f32.mxu1 %vm589_vm1, %v2060_v23 }
 0x765   : > { %3288 = vmatmul.mubr.msk.f32.gmra.mxu1 %vm589_vm1, %v2061_v24 }
 0x7dc   : > { %v1411_v59 = vpop.xlane.xlu1 %1410 }
 0x7dd   : > { %vm1412_vm7 = vcmp.eq.f32.partialorder %v4322_v26, %v1411_v59  ;;  %v1423_v26 = vcvt.s32.f32 %v1421_v9  ;;  %v1417_v15 = vcvt.f32.s32 %v1411_v59 }
 0x7de   : > { %v1396_v44 = vpop.xlane.xlu0 %1395  ;;  %v1413_v27 = vsel %vm1412_vm7, %v1408_v0, inf }
 0x7df   : > { %1414 = vmin.xlane.f32.xlu1 %v1413_v27  ;;  %vm1397_vm8 = vcmp.eq.f32.partialorder %v4336_v46, %v1396_v44  ;;  %v1468_v46 = vcvt.s32.f32 %v1466_v48  ;;  %v1402_v8 = vcvt.f32.s32 %v1396_v44  ;;  %v1418_v29 = vshll.u32 %v1417_v15, 16 }
 0x7e0   : > { %v1441_v61 = vpop.xlane.xlu1 %1440  ;;  %v1398_v13 = vsel %vm1397_vm8, %v1393_v53, inf }
 0x7e1   : > { %vm1442_vm9 = vcmp.eq.f32.partialorder %v4346_v41, %v1441_v61  ;;  %1399 = vmin.xlane.f32.xlu0 %v1398_v13  ;;  %v1453_v41 = vcvt.s32.f32 %v1451_v43  ;;  %v1447_v63 = vcvt.f32.s32 %v1441_v61 }
 0x7e2   : > { %v1443_v21 = vsel %vm1442_vm9, %v1438_v5, inf  ;;  %v1426_v3 = vpop.xlane.xlu0 %1425 }
 0x7e3   : > { %1444 = vmin.xlane.f32.xlu1 %v1443_v21  ;;  %vm1427_vm10 = vcmp.eq.f32.partialorder %v4369_v55, %v1426_v3  ;;  %v1483_v55 = vcvt.s32.f32 %v1481_v54  ;;  %v1448_v47 = vshll.u32 %v1447_v63, 16 }
 0x7e4   : > { %v1471_v16 = vpop.xlane.xlu1 %1470  ;;  %v1428_v49 = vsel %vm1427_vm10, %v1423_v26, inf }
 0x7e5   : > { %vm1472_vm11 = vcmp.eq.f32.partialorder %v1469_v1, %v1471_v16  ;;  %1429 = vmin.xlane.f32.xlu0 %v1428_v49  ;;  %v1477_v23 = vcvt.f32.s32 %v1471_v16 }
 0x7e6   : > { %v1473_v31 = vsel %vm1472_vm11, %v1468_v46, inf  ;;  %v1456_v52 = vpop.xlane.xlu0 %1455 }
 0x7e7   : > { %1474 = vmin.xlane.f32.xlu1 %v1473_v31  ;;  %vm1457_vm12 = vcmp.eq.f32.partialorder %v1454_v18, %v1456_v52  ;;  %v1432_v18 = vcvt.f32.s32 %v1426_v3  ;;  %v1462_v40 = vcvt.f32.s32 %v1456_v52  ;;  %v1478_v48 = vshll.u32 %v1477_v23, 16 }
 0x7e8   : > { %v1501_v6 = vpop.xlane.xlu1 %1500  ;;  %v1458_v11 = vsel %vm1457_vm12, %v1453_v41, inf }
 0x7e9   : > { %vm1502_vm13 = vcmp.eq.f32.partialorder %v1499_v38, %v1501_v6  ;;  %1459 = vmin.xlane.f32.xlu0 %v1458_v11  ;;  %v1403_v38 = vshll.u32 %v1402_v8, 16  ;;  %v1433_v12 = vshll.u32 %v1432_v18, 16  ;;  %v1507_v44 = vcvt.f32.s32 %v1501_v6 }
 0x7ea   : > { %v1503_v58 = vsel %vm1502_vm13, %v1498_v10, inf  ;;  %v4415_v50 = vpop.xlane.xlu0 %1485  ;;  %v1463_v21 = vshll.u32 %v1462_v40, 16 }
 0x7eb   : > { %1504 = vmin.xlane.f32.xlu1 %v1503_v58  ;;  %vm1487_vm14 = vcmp.eq.f32.partialorder %v1484_v51, %v4415_v50  ;;  %v1508_v49 = vshll.u32 %v1507_v44, 16  ;;  %v1492_v52 = vcvt.f32.s32 %v4415_v50 }
 0x7ec   : > { %v1488_v1 = vsel %vm1487_vm14, %v1483_v55, inf }
 0x7ed   : > { %1489 = vmin.xlane.f32.xlu0 %v1488_v1 }
 0x868   : > { %v1415_v32 = vpop.xlane.xlu1 %1414 }
 0x869   : > { %v1416_v39 = vcvt.f32.s32 %v1415_v32 }
 0x86a   : > { %v1400_v4 = vpop.xlane.xlu0 %1399 }
 0x86b   : > { %v1419_v14 = vadd.s32 %v1418_v29, %v1416_v39  ;;  %v1401_v56 = vcvt.f32.s32 %v1400_v4  ;;  %v1493_v39 = vshll.u32 %v1492_v52, 16 }
 0x86c   : > { %v1445_v24 = vpop.xlane.xlu1 %1444 }
 0x86d   : > { %vm1511_vm15 = vcmp.eq.s32.totalorder %v4302_v7, %v1419_v14  ;;  %v1404_v51 = vadd.s32 %v1403_v38, %v1401_v56  ;;  %v1446_v25 = vcvt.f32.s32 %v1445_v24 }
 0x86e   : > { %v2980_v59 = vsel %vm1511_vm15, 1.0, %v3474_v60  ;;  %v4421_v0 = vsel %vm1511_vm15, 2147483647, %v4302_v7  ;;  %v1430_v53 = vpop.xlane.xlu0 %1429 }
 0x86f   : > { %1535 = vst.msk [vmem:[#allocation2 + $0x148] sm:$0xff] %vm589_vm1, %v2980_v59  ;;  %vm1510_vm0 = vcmp.eq.s32.totalorder %v4313_v45, %v1404_v51  ;;  %v1449_v27 = vadd.s32 %v1448_v47, %v1446_v25  ;;  %v4427_v9 = vsel %vm589_vm1, %v4421_v0, 2147483647  ;;  %v1431_v5 = vcvt.f32.s32 %v1430_v53 }
 0x870   : > { %v2979_v61 = vsel %vm1510_vm0, 1.0, %v3474_v60  ;;  %v4431_v13 = vsel %vm1510_vm0, 2147483647, %v4313_v45  ;;  %v1567_v7 = vshra.s32 %v4427_v9, 16  ;;  %v1475_v3 = vpop.xlane.xlu1 %1474  ;;  %v1566_v52 = vand.u32 65535, %v4427_v9 }
 0x871   : > { %1534 = vst.msk [vmem:[#allocation2 + $0x140] sm:$0xff] %vm589_vm1, %v2979_v61  ;;  %vm1513_vm2 = vcmp.eq.s32.totalorder %v4326_v22, %v1449_v27  ;;  %v4438_v26 = vsel %vm589_vm1, %v4431_v13, 2147483647  ;;  %v1434_v45 = vadd.s32 %v1433_v12, %v1431_v5  ;;  %v1476_v16 = vcvt.f32.s32 %v1475_v3 }
 0x872   : > { %v2982_v43 = vsel %vm1513_vm2, 1.0, %v3474_v60  ;;  %v4442_v17 = vsel %vm1513_vm2, 2147483647, %v4326_v22  ;;  %v4445_v46 = vcvt.s32.f32 %v1567_v7  ;;  %v1552_v31 = vshra.s32 %v4438_v26, 16  ;;  %v1460_v22 = vpop.xlane.xlu0 %1459 }
 0x873   : > { %1537 = vst.msk [vmem:[#allocation2 + $0x158] sm:$0xff] %vm589_vm1, %v2982_v43  ;;  %v4450_v54 = vsel %vm589_vm1, %v4442_v17, 2147483647  ;;  %vm1512_vm3 = vcmp.eq.s32.totalorder %v4342_v34, %v1434_v45  ;;  %v1479_v41 = vadd.s32 %v1478_v48, %v1476_v16  ;;  %v1461_v58 = vcvt.f32.s32 %v1460_v22 }
 0x874   : > { %v1597_v6 = vshra.s32 %v4450_v54, 16  ;;  %v2981_v10 = vsel %vm1512_vm3, 1.0, %v3474_v60  ;;  %v4457_v11 = vsel %vm1512_vm3, 2147483647, %v4342_v34  ;;  %1570 = vmin.xlane.f32.xlu1 %v4445_v46  ;;  %v1505_v55 = vpop.xlane.xlu1 %1504  ;;  %v4460_v1 = vcvt.s32.f32 %v1552_v31 }
 0x875   : > { %1536 = vst.msk [vmem:[#allocation2 + $0x150] sm:$0xff] %vm589_vm1, %v2981_v10  ;;  %vm1515_vm4 = vcmp.eq.s32.totalorder %v4353_v20, %v1479_v41  ;;  %v1506_v50 = vcvt.f32.s32 %v1505_v55  ;;  %v4468_v8 = vsel %vm589_vm1, %v4457_v11, 2147483647  ;;  %v1464_v32 = vadd.s32 %v1463_v21, %v1461_v58 }
 0x876   : > { %v4464_v15 = vcvt.s32.f32 %v1597_v6  ;;  %v2984_v34 = vsel %vm1515_vm4, 1.0, %v3474_v60  ;;  %v4472_v63 = vsel %vm1515_vm4, 2147483647, %v4353_v20  ;;  %1555 = vmin.xlane.f32.xlu0 %v4460_v1  ;;  %v1582_v29 = vshra.s32 %v4468_v8, 16  ;;  %v1490_v4 = vpop.xlane.xlu0 %1489  ;;  %v2063_v20 = vld [vmem:[#allocation2 + $0x148] sm:$0xff] }
 0x877   : > { %1539 = vst.msk [vmem:[#allocation2 + $0x168] sm:$0xff] %vm589_vm1, %v2984_v34  ;;  %v1509_v18 = vadd.s32 %v1508_v49, %v1506_v50  ;;  %v4479_v14 = vsel %vm589_vm1, %v4472_v63, 2147483647  ;;  %vm1514_vm5 = vcmp.eq.s32.totalorder %v4377_v57, %v1464_v32  ;;  %v1491_v56 = vcvt.f32.s32 %v1490_v4 }
 0x878   : > { %v2062_v38 = vld [vmem:[#allocation2 + $0x140] sm:$0xff]  ;;  %1600 = vmin.xlane.f32.xlu1 %v4464_v15  ;;  %v4484_v47 = vcvt.s32.f32 %v1582_v29  ;;  %v1627_v23 = vshra.s32 %v4479_v14, 16  ;;  %v2983_v24 = vsel %vm1514_vm5, 1.0, %v3474_v60  ;;  %v4489_v40 = vsel %vm1514_vm5, 2147483647, %v4377_v57 }
 0x879   : > { %3290 = vmatprep.mubr.msk.f32.mxu1 %vm589_vm1, %v2062_v38  ;;  %vm1517_vm6 = vcmp.eq.s32.totalorder %v4387_v36, %v1509_v18  ;;  %1538 = vst.msk [vmem:[#allocation2 + $0x160] sm:$0xff] %vm589_vm1, %v2983_v24  ;;  %v1494_v12 = vadd.s32 %v1493_v39, %v1491_v56  ;;  %v4502_v57 = vsel %vm589_vm1, %v4489_v40, 2147483647  ;;  %v1551_v41 = vand.u32 65535, %v4438_v26 }
 0x87a   : > { %3291 = vmatmul.mubr.msk.f32.gmra.mxu1 %vm589_vm1, %v2063_v20  ;;  %v2986_v51 = vsel %vm1517_vm6, 1.0, %v3474_v60  ;;  %v4496_v25 = vsel %vm1517_vm6, 2147483647, %v4387_v36  ;;  %1585 = vmin.xlane.f32.xlu0 %v4484_v47  ;;  %v1629_v59 = vcvt.s32.f32 %v1627_v23  ;;  %v1612_v36 = vshra.s32 %v4502_v57, 16  ;;  %v2065_v7 = vld [vmem:[#allocation2 + $0x158] sm:$0xff] }
 0x87b   : > { %1541 = vst.msk [vmem:[#allocation2 + $0x178] sm:$0xff] %vm589_vm1, %v2986_v51  ;;  %v4506_v44 = vsel %vm589_vm1, %v4496_v25, 2147483647  ;;  %vm1516_vm7 = vcmp.eq.s32.totalorder %v4396_v2, %v1494_v12  ;;  %v1568_v6 = vcvt.s32.f32 %v1566_v52  ;;  %v1596_v10 = vand.u32 65535, %v4450_v54 }
 0x87c   : > { %1630 = vmin.xlane.f32.xlu1 %v1629_v59  ;;  %v2064_v27 = vld [vmem:[#allocation2 + $0x150] sm:$0xff]  ;;  %v1657_v53 = vshra.s32 %v4506_v44, 16  ;;  %v2985_v61 = vsel %vm1516_vm7, 1.0, %v3474_v60  ;;  %v4513_v5 = vsel %vm1516_vm7, 2147483647, %v4396_v2  ;;  %v1614_v48 = vcvt.s32.f32 %v1612_v36 }
 0x87d   : > { %3293 = vmatprep.mubr.msk.f32.mxu1 %vm589_vm1, %v2064_v27  ;;  %1540 = vst.msk [vmem:[#allocation2 + $0x170] sm:$0xff] %vm589_vm1, %v2985_v61  ;;  %v1640_v3 = vsel %vm589_vm1, %v4513_v5, 2147483647  ;;  %v1553_v50 = vcvt.s32.f32 %v1551_v41  ;;  %v1581_v34 = vand.u32 65535, %v4468_v8  ;;  %v1598_v39 = vcvt.s32.f32 %v1596_v10 }
 0x87e   : > { %3294 = vmatmul.mubr.msk.f32.gmra.mxu1 %vm589_vm1, %v2065_v7  ;;  %v1659_v21 = vcvt.s32.f32 %v1657_v53  ;;  %v1642_v43 = vshra.s32 %v1640_v3, 16  ;;  %1615 = vmin.xlane.f32.xlu0 %v1614_v48  ;;  %v2067_v2 = vld [vmem:[#allocation2 + $0x168] sm:$0xff]  ;;  %v1626_v9 = vand.u32 65535, %v4479_v14  ;;  %v1656_v38 = vand.u32 65535, %v4506_v44 }
 0x87f   : > { %v1583_v18 = vcvt.s32.f32 %v1581_v34  ;;  %v1641_v24 = vand.u32 65535, %v1640_v3 }
 0x880   : > { %1660 = vmin.xlane.f32.xlu1 %v1659_v21  ;;  %v2066_v45 = vld [vmem:[#allocation2 + $0x160] sm:$0xff]  ;;  %v1644_v16 = vcvt.s32.f32 %v1642_v43  ;;  %v1628_v8 = vcvt.s32.f32 %v1626_v9  ;;  %v1658_v23 = vcvt.s32.f32 %v1656_v38 }
 0x881   : > { %3296 = vmatprep.mubr.msk.f32.mxu1 %vm589_vm1, %v2066_v45 }
 0x882   : > { %3297 = vmatmul.mubr.msk.f32.gmra.mxu1 %vm589_vm1, %v2067_v2  ;;  %1645 = vmin.xlane.f32.xlu0 %v1644_v16  ;;  %v2069_v31 = vld [vmem:[#allocation2 + $0x178] sm:$0xff] }
 0x884   : > { %v2068_v49 = vld [vmem:[#allocation2 + $0x170] sm:$0xff] }
 0x885   : > { %3299 = vmatprep.mubr.msk.f32.mxu1 %vm589_vm1, %v2068_v49 }
 0x886   : > { %3300 = vmatmul.mubr.msk.f32.gmra.mxu1 %vm589_vm1, %v2069_v31 }
 0x8fd   : > { %v1571_v22 = vpop.xlane.xlu1 %1570 }
 0x8fe   : > { %vm1572_vm8 = vcmp.eq.f32.partialorder %v4445_v46, %v1571_v22  ;;  %v1577_v44 = vcvt.f32.s32 %v1571_v22 }
 0x8ff   : > { %v1556_v58 = vpop.xlane.xlu0 %1555  ;;  %v1573_v55 = vsel %vm1572_vm8, %v1568_v6, inf }
 0x900   : > { %vm1557_vm9 = vcmp.eq.f32.partialorder %v4460_v1, %v1556_v58  ;;  %1574 = vmin.xlane.f32.xlu1 %v1573_v55  ;;  %v1611_v1 = vand.u32 65535, %v4502_v57  ;;  %v1643_v57 = vcvt.s32.f32 %v1641_v24  ;;  %v1562_v27 = vcvt.f32.s32 %v1556_v58 }
 0x901   : > { %v1601_v32 = vpop.xlane.xlu1 %1600  ;;  %v1558_v29 = vsel %vm1557_vm9, %v1553_v50, inf  ;;  %v1578_v61 = vshll.u32 %v1577_v44, 16 }
 0x902   : > { %vm1602_vm10 = vcmp.eq.f32.partialorder %v4464_v15, %v1601_v32  ;;  %1559 = vmin.xlane.f32.xlu0 %v1558_v29  ;;  %v1613_v20 = vcvt.s32.f32 %v1611_v1  ;;  %v1607_v36 = vcvt.f32.s32 %v1601_v32  ;;  %v1563_v45 = vshll.u32 %v1562_v27, 16 }
 0x903   : > { %v1586_v26 = vpop.xlane.xlu0 %1585  ;;  %v1603_v54 = vsel %vm1602_vm10, %v1598_v39, inf }
 0x904   : > { %vm1587_vm11 = vcmp.eq.f32.partialorder %v4484_v47, %v1586_v26  ;;  %1604 = vmin.xlane.f32.xlu1 %v1603_v54  ;;  %v1592_v7 = vcvt.f32.s32 %v1586_v26  ;;  %v1608_v31 = vshll.u32 %v1607_v36, 16 }
 0x905   : > { %v1631_v46 = vpop.xlane.xlu1 %1630  ;;  %v1588_v4 = vsel %vm1587_vm11, %v1583_v18, inf }
 0x906   : > { %vm1632_vm12 = vcmp.eq.f32.partialorder %v1629_v59, %v1631_v46  ;;  %1589 = vmin.xlane.f32.xlu0 %v1588_v4  ;;  %v1593_v6 = vshll.u32 %v1592_v7, 16 }
 0x907   : > { %v1633_v56 = vsel %vm1632_vm12, %v1628_v8, inf  ;;  %v1616_v14 = vpop.xlane.xlu0 %1615 }
 0x908   : > { %1634 = vmin.xlane.f32.xlu1 %v1633_v56  ;;  %vm1617_vm13 = vcmp.eq.f32.partialorder %v1614_v48, %v1616_v14  ;;  %v1637_v48 = vcvt.f32.s32 %v1631_v46 }
 0x909   : > { %v1661_v15 = vpop.xlane.xlu1 %1660  ;;  %v1618_v47 = vsel %vm1617_vm13, %v1613_v20, inf }
 0x90a   : > { %vm1662_vm14 = vcmp.eq.f32.partialorder %v1659_v21, %v1661_v15  ;;  %1619 = vmin.xlane.f32.xlu0 %v1618_v47  ;;  %v1622_v21 = vcvt.f32.s32 %v1616_v14  ;;  %v1667_v52 = vcvt.f32.s32 %v1661_v15  ;;  %v1638_v10 = vshll.u32 %v1637_v48, 16 }
 0x90b   : > { %v1663_v51 = vsel %vm1662_vm14, %v1658_v23, inf  ;;  %v4535_v12 = vpop.xlane.xlu0 %1645 }
 0x90c   : > { %1664 = vmin.xlane.f32.xlu1 %v1663_v51  ;;  %vm1647_vm15 = vcmp.eq.f32.partialorder %v1644_v16, %v4535_v12  ;;  %v1623_v58 = vshll.u32 %v1622_v21, 16  ;;  %v1668_v9 = vshll.u32 %v1667_v52, 16  ;;  %v1652_v14 = vcvt.f32.s32 %v4535_v12 }
 0x90d   : > { %v1648_v59 = vsel %vm1647_vm15, %v1643_v57, inf }
 0x90e   : > { %1649 = vmin.xlane.f32.xlu0 %v1648_v59 }
 0x989   : > { %v1575_v53 = vpop.xlane.xlu1 %1574 }
 0x98a   : > { %v1576_v3 = vcvt.f32.s32 %v1575_v53 }
 0x98b   : > { %v1560_v43 = vpop.xlane.xlu0 %1559 }
 0x98c   : > { %v1579_v2 = vadd.s32 %v1578_v61, %v1576_v3  ;;  %v1561_v49 = vcvt.f32.s32 %v1560_v43 }
 0x98d   : > { %v1605_v41 = vpop.xlane.xlu1 %1604 }
 0x98e   : > { %vm1671_vm0 = vcmp.eq.s32.totalorder %v4421_v0, %v1579_v2  ;;  %v1564_v16 = vadd.s32 %v1563_v45, %v1561_v49  ;;  %v1606_v22 = vcvt.f32.s32 %v1605_v41  ;;  %v1653_v45 = vshll.u32 %v1652_v14, 16 }
 0x98f   : > { %v2988_v55 = vsel %vm1671_vm0, 1.0, %v3474_v60  ;;  %v4541_v50 = vsel %vm1671_vm0, 2147483647, %v4421_v0  ;;  %v1590_v34 = vpop.xlane.xlu0 %1589 }
 0x990   : > { %1695 = vst.msk [vmem:[#allocation2 + $0x188] sm:$0xff] %vm589_vm1, %v2988_v55  ;;  %vm1670_vm2 = vcmp.eq.s32.totalorder %v4431_v13, %v1564_v16  ;;  %v1609_v32 = vadd.s32 %v1608_v31, %v1606_v22  ;;  %v1591_v29 = vcvt.f32.s32 %v1590_v34  ;;  %v4547_v39 = vsel %vm589_vm1, %v4541_v50, 2147483647 }
 0x991   : > { %v2987_v26 = vsel %vm1670_vm2, 1.0, %v3474_v60  ;;  %v4551_v54 = vsel %vm1670_vm2, 2147483647, %v4431_v13  ;;  %v1635_v18 = vpop.xlane.xlu1 %1634  ;;  %v1727_v0 = vshra.s32 %v4547_v39, 16  ;;  %v1726_v14 = vand.u32 65535, %v4547_v39 }
 0x992   : > { %1694 = vst.msk [vmem:[#allocation2 + $0x180] sm:$0xff] %vm589_vm1, %v2987_v26  ;;  %vm1673_vm3 = vcmp.eq.s32.totalorder %v4442_v17, %v1609_v32  ;;  %v1594_v46 = vadd.s32 %v1593_v6, %v1591_v29  ;;  %v1636_v4 = vcvt.f32.s32 %v1635_v18  ;;  %v4558_v8 = vsel %vm589_vm1, %v4551_v54, 2147483647 }
 0x993   : > { %v2990_v1 = vsel %vm1673_vm3, 1.0, %v3474_v60  ;;  %v4562_v38 = vsel %vm1673_vm3, 2147483647, %v4442_v17  ;;  %v4564_v13 = vcvt.s32.f32 %v1727_v0  ;;  %v1712_v56 = vshra.s32 %v4558_v8, 16  ;;  %v1620_v24 = vpop.xlane.xlu0 %1619 }
 0x994   : > { %1697 = vst.msk [vmem:[#allocation2 + $0x198] sm:$0xff] %vm589_vm1, %v2990_v1  ;;  %vm1672_vm4 = vcmp.eq.s32.totalorder %v4457_v11, %v1594_v46  ;;  %v1639_v15 = vadd.s32 %v1638_v10, %v1636_v4  ;;  %v4572_v20 = vsel %vm589_vm1, %v4562_v38, 2147483647  ;;  %v1621_v57 = vcvt.f32.s32 %v1620_v24 }
 0x995   : > { %v2989_v23 = vsel %vm1672_vm4, 1.0, %v3474_v60  ;;  %v4576_v17 = vsel %vm1672_vm4, 2147483647, %v4457_v11  ;;  %1730 = vmin.xlane.f32.xlu1 %v4564_v13  ;;  %v1665_v47 = vpop.xlane.xlu1 %1664  ;;  %v4579_v51 = vcvt.s32.f32 %v1712_v56  ;;  %v1757_v12 = vshra.s32 %v4572_v20, 16 }
 0x996   : > { %1696 = vst.msk [vmem:[#allocation2 + $0x190] sm:$0xff] %vm589_vm1, %v2989_v23  ;;  %vm1675_vm5 = vcmp.eq.s32.totalorder %v4472_v63, %v1639_v15  ;;  %v1666_v59 = vcvt.f32.s32 %v1665_v47  ;;  %v4586_v44 = vsel %vm589_vm1, %v4576_v17, 2147483647  ;;  %v1624_v61 = vadd.s32 %v1623_v58, %v1621_v57 }
 0x997   : > { %v2992_v11 = vsel %vm1675_vm5, 1.0, %v3474_v60  ;;  %v4590_v27 = vsel %vm1675_vm5, 2147483647, %v4472_v63  ;;  %1715 = vmin.xlane.f32.xlu0 %v4579_v51  ;;  %v4593_v36 = vcvt.s32.f32 %v1757_v12  ;;  %v1742_v53 = vshra.s32 %v4586_v44, 16  ;;  %v1650_v48 = vpop.xlane.xlu0 %1649  ;;  %v2071_v49 = vld [vmem:[#allocation2 + $0x188] sm:$0xff] }
 0x998   : > { %1699 = vst.msk [vmem:[#allocation2 + $0x1a8] sm:$0xff] %vm589_vm1, %v2992_v11  ;;  %v1669_v7 = vadd.s32 %v1668_v9, %v1666_v59  ;;  %v4599_v3 = vsel %vm589_vm1, %v4590_v27, 2147483647  ;;  %vm1674_vm6 = vcmp.eq.s32.totalorder %v4489_v40, %v1624_v61  ;;  %v1651_v2 = vcvt.f32.s32 %v1650_v48 }
 0x999   : > { %1760 = vmin.xlane.f32.xlu1 %v4593_v36  ;;  %v2070_v21 = vld [vmem:[#allocation2 + $0x180] sm:$0xff]  ;;  %v4602_v63 = vcvt.s32.f32 %v1742_v53  ;;  %v1787_v43 = vshra.s32 %v4599_v3, 16  ;;  %v2991_v31 = vsel %vm1674_vm6, 1.0, %v3474_v60  ;;  %v4610_v52 = vsel %vm1674_vm6, 2147483647, %v4489_v40 }
 0x99a   : > { %vm1677_vm7 = vcmp.eq.s32.totalorder %v4496_v25, %v1669_v7  ;;  %3302 = vmatprep.mubr.msk.f32.mxu1 %vm589_vm1, %v2070_v21  ;;  %1698 = vst.msk [vmem:[#allocation2 + $0x1a0] sm:$0xff] %vm589_vm1, %v2991_v31  ;;  %v1654_v16 = vadd.s32 %v1653_v45, %v1651_v2  ;;  %v1770_v10 = vsel %vm589_vm1, %v4610_v52, 2147483647  ;;  %v1711_v15 = vand.u32 65535, %v4558_v8 }
 0x99b   : > { %v2994_v41 = vsel %vm1677_vm7, 1.0, %v3474_v60  ;;  %v4614_v6 = vsel %vm1677_vm7, 2147483647, %v4496_v25  ;;  %3303 = vmatmul.mubr.msk.f32.gmra.mxu1 %vm589_vm1, %v2071_v49  ;;  %1745 = vmin.xlane.f32.xlu0 %v4602_v63  ;;  %v1789_v22 = vcvt.s32.f32 %v1787_v43  ;;  %v1772_v25 = vshra.s32 %v1770_v10, 16  ;;  %v2073_v34 = vld [vmem:[#allocation2 + $0x198] sm:$0xff] }
 0x99c   : > { %1701 = vst.msk [vmem:[#allocation2 + $0x1b8] sm:$0xff] %vm589_vm1, %v2994_v41  ;;  %v4624_v40 = vsel %vm589_vm1, %v4614_v6, 2147483647  ;;  %vm1676_vm8 = vcmp.eq.s32.totalorder %v4513_v5, %v1654_v16  ;;  %v1728_v24 = vcvt.s32.f32 %v1726_v14  ;;  %v1756_v47 = vand.u32 65535, %v4572_v20 }
 0x99d   : > { %v2072_v58 = vld [vmem:[#allocation2 + $0x190] sm:$0xff]  ;;  %v1817_v55 = vshra.s32 %v4624_v40, 16  ;;  %1790 = vmin.xlane.f32.xlu1 %v1789_v22  ;;  %v2993_v32 = vsel %vm1676_vm8, 1.0, %v3474_v60  ;;  %v4631_v29 = vsel %vm1676_vm8, 2147483647, %v4513_v5  ;;  %v1774_v9 = vcvt.s32.f32 %v1772_v25 }
 0x99e   : > { %3305 = vmatprep.mubr.msk.f32.mxu1 %vm589_vm1, %v2072_v58  ;;  %1700 = vst.msk [vmem:[#allocation2 + $0x1b0] sm:$0xff] %vm589_vm1, %v2993_v32  ;;  %v1800_v18 = vsel %vm589_vm1, %v4631_v29, 2147483647  ;;  %v1713_v59 = vcvt.s32.f32 %v1711_v15  ;;  %v1741_v11 = vand.u32 65535, %v4586_v44  ;;  %v1758_v7 = vcvt.s32.f32 %v1756_v47 }
 0x99f   : > { %3306 = vmatmul.mubr.msk.f32.gmra.mxu1 %vm589_vm1, %v2073_v34  ;;  %v1819_v26 = vcvt.s32.f32 %v1817_v55  ;;  %1775 = vmin.xlane.f32.xlu0 %v1774_v9  ;;  %v1802_v0 = vshra.s32 %v1800_v18, 16  ;;  %v2075_v1 = vld [vmem:[#allocation2 + $0x1a8] sm:$0xff]  ;;  %v1786_v39 = vand.u32 65535, %v4599_v3  ;;  %v1771_v21 = vand.u32 65535, %v1770_v10 }
 0x9a0   : > { %v1743_v48 = vcvt.s32.f32 %v1741_v11  ;;  %v1816_v43 = vand.u32 65535, %v4624_v40  ;;  %v1801_v49 = vand.u32 65535, %v1800_v18 }
 0x9a1   : > { %1820 = vmin.xlane.f32.xlu1 %v1819_v26  ;;  %v2074_v46 = vld [vmem:[#allocation2 + $0x1a0] sm:$0xff]  ;;  %v1804_v4 = vcvt.s32.f32 %v1802_v0 }
 0x9a2   : > { %3308 = vmatprep.mubr.msk.f32.mxu1 %vm589_vm1, %v2074_v46  ;;  %v1818_v31 = vcvt.s32.f32 %v1816_v43  ;;  %v1803_v10 = vcvt.s32.f32 %v1801_v49 }
 0x9a3   : > { %3309 = vmatmul.mubr.msk.f32.gmra.mxu1 %vm589_vm1, %v2075_v1  ;;  %1805 = vmin.xlane.f32.xlu0 %v1804_v4  ;;  %v2077_v56 = vld [vmem:[#allocation2 + $0x1b8] sm:$0xff] }
 0x9a5   : > { %v2076_v5 = vld [vmem:[#allocation2 + $0x1b0] sm:$0xff] }
 0x9a6   : > { %3311 = vmatprep.mubr.msk.f32.mxu1 %vm589_vm1, %v2076_v5 }
 0x9a7   : > { %3312 = vmatmul.mubr.msk.f32.gmra.mxu1 %vm589_vm1, %v2077_v56 }
 0xa1e   : > { %v1731_v23 = vpop.xlane.xlu1 %1730 }
 0xa1f   : > { %vm1732_vm9 = vcmp.eq.f32.partialorder %v4564_v13, %v1731_v23 }
 0xa20   : > { %v1716_v12 = vpop.xlane.xlu0 %1715  ;;  %v1733_v57 = vsel %vm1732_vm9, %v1728_v24, inf }
 0xa21   : > { %vm1717_vm10 = vcmp.eq.f32.partialorder %v4579_v51, %v1716_v12  ;;  %1734 = vmin.xlane.f32.xlu1 %v1733_v57  ;;  %v1788_v51 = vcvt.s32.f32 %v1786_v39  ;;  %v1722_v58 = vcvt.f32.s32 %v1716_v12 }
 0xa22   : > { %v1761_v53 = vpop.xlane.xlu1 %1760  ;;  %v1718_v61 = vsel %vm1717_vm10, %v1713_v59, inf }
 0xa23   : > { %vm1762_vm11 = vcmp.eq.f32.partialorder %v4593_v36, %v1761_v53  ;;  %1719 = vmin.xlane.f32.xlu0 %v1718_v61  ;;  %v1773_v36 = vcvt.s32.f32 %v1771_v21  ;;  %v1767_v25 = vcvt.f32.s32 %v1761_v53 }
 0xa24   : > { %v1746_v8 = vpop.xlane.xlu0 %1745  ;;  %v1763_v20 = vsel %vm1762_vm11, %v1758_v7, inf }
 0xa25   : > { %vm1747_vm12 = vcmp.eq.f32.partialorder %v4602_v63, %v1746_v8  ;;  %1764 = vmin.xlane.f32.xlu1 %v1763_v20  ;;  %v1768_v1 = vshll.u32 %v1767_v25, 16 }
 0xa26   : > { %v1748_v13 = vsel %vm1747_vm12, %v1743_v48, inf  ;;  %v1791_v44 = vpop.xlane.xlu1 %1790 }
 0xa27   : > { %1749 = vmin.xlane.f32.xlu0 %v1748_v13  ;;  %vm1792_vm13 = vcmp.eq.f32.partialorder %v1789_v22, %v1791_v44  ;;  %v1737_v22 = vcvt.f32.s32 %v1731_v23  ;;  %v1797_v5 = vcvt.f32.s32 %v1791_v44 }
 0xa28   : > { %v1793_v45 = vsel %vm1792_vm13, %v1788_v51, inf  ;;  %v1776_v2 = vpop.xlane.xlu0 %1775 }
 0xa29   : > { %1794 = vmin.xlane.f32.xlu1 %v1793_v45  ;;  %vm1777_vm14 = vcmp.eq.f32.partialorder %v1774_v9, %v1776_v2  ;;  %v1738_v34 = vshll.u32 %v1737_v22, 16  ;;  %v1752_v9 = vcvt.f32.s32 %v1746_v8  ;;  %v1782_v14 = vcvt.f32.s32 %v1776_v2 }
 0xa2a   : > { %v1821_v3 = vpop.xlane.xlu1 %1820  ;;  %v1778_v41 = vsel %vm1777_vm14, %v1773_v36, inf  ;;  %v1798_v61 = vshll.u32 %v1797_v5, 16 }
 0xa2b   : > { %vm1822_vm15 = vcmp.eq.f32.partialorder %v1819_v26, %v1821_v3  ;;  %1779 = vmin.xlane.f32.xlu0 %v1778_v41  ;;  %v1723_v26 = vshll.u32 %v1722_v58, 16  ;;  %v1753_v24 = vshll.u32 %v1752_v9, 16  ;;  %v1827_v23 = vcvt.f32.s32 %v1821_v3 }
 0xa2c   : > { %v1823_v63 = vsel %vm1822_vm15, %v1818_v31, inf  ;;  %v4651_v16 = vpop.xlane.xlu0 %1805  ;;  %v1783_v8 = vshll.u32 %v1782_v14, 16 }
 0xa2d   : > { %1824 = vmin.xlane.f32.xlu1 %v1823_v63  ;;  %vm1807_vm0 = vcmp.eq.f32.partialorder %v1804_v4, %v4651_v16  ;;  %v1828_v43 = vshll.u32 %v1827_v23, 16  ;;  %v1812_v41 = vcvt.f32.s32 %v4651_v16 }
 0xa2e   : > { %v1808_v40 = vsel %vm1807_vm0, %v1803_v10, inf }
 0xa2f   : > { %1809 = vmin.xlane.f32.xlu0 %v1808_v40 }
 0xaaa   : > { %v1735_v55 = vpop.xlane.xlu1 %1734 }
 0xaab   : > { %v1736_v32 = vcvt.f32.s32 %v1735_v55 }
 0xaac   : > { %v1720_v18 = vpop.xlane.xlu0 %1719 }
 0xaad   : > { %v1739_v0 = vadd.s32 %v1738_v34, %v1736_v32  ;;  %v1721_v46 = vcvt.f32.s32 %v1720_v18 }
 0xaae   : > { %v1765_v56 = vpop.xlane.xlu1 %1764 }
 0xaaf   : > { %vm1831_vm2 = vcmp.eq.s32.totalorder %v4541_v50, %v1739_v0  ;;  %v1724_v4 = vadd.s32 %v1723_v26, %v1721_v46  ;;  %v1766_v15 = vcvt.f32.s32 %v1765_v56  ;;  %v1813_v46 = vshll.u32 %v1812_v41, 16 }
 0xab0   : > { %v2996_v47 = vsel %vm1831_vm2, 1.0, %v3474_v60  ;;  %v4657_v12 = vsel %vm1831_vm2, 2147483647, %v4541_v50  ;;  %v1750_v57 = vpop.xlane.xlu0 %1749 }
 0xab1   : > { %1855 = vst.msk [vmem:[#allocation2 + $0x1c8] sm:$0xff] %vm589_vm1, %v2996_v47  ;;  %vm1830_vm3 = vcmp.eq.s32.totalorder %v4551_v54, %v1724_v4  ;;  %v1769_v59 = vadd.s32 %v1768_v1, %v1766_v15  ;;  %v1751_v11 = vcvt.f32.s32 %v1750_v57  ;;  %v4663_v53 = vsel %vm589_vm1, %v4657_v12, 2147483647 }
 0xab2   : > { %v2995_v7 = vsel %vm1830_vm3, 1.0, %v3474_v60  ;;  %v4667_v39 = vsel %vm1830_vm3, 2147483647, %v4551_v54  ;;  %v1887_v50 = vshra.s32 %v4663_v53, 16  ;;  %v1795_v48 = vpop.xlane.xlu1 %1794 }
 0xab3   : > { %1854 = vst.msk [vmem:[#allocation2 + $0x1c0] sm:$0xff] %vm589_vm1, %v2995_v7  ;;  %vm1833_vm4 = vcmp.eq.s32.totalorder %v4562_v38, %v1769_v59  ;;  %v1754_v20 = vadd.s32 %v1753_v24, %v1751_v11  ;;  %v4674_v13 = vsel %vm589_vm1, %v4667_v39, 2147483647  ;;  %v1796_v54 = vcvt.f32.s32 %v1795_v48 }
 0xab4   : > { %v2998_v21 = vsel %vm1833_vm4, 1.0, %v3474_v60  ;;  %v4678_v44 = vsel %vm1833_vm4, 2147483647, %v4562_v38  ;;  %v4680_v51 = vcvt.s32.f32 %v1887_v50  ;;  %v1872_v45 = vshra.s32 %v4674_v13, 16  ;;  %v1780_v3 = vpop.xlane.xlu0 %1779 }
 0xab5   : > { %1857 = vst.msk [vmem:[#allocation2 + $0x1d8] sm:$0xff] %vm589_vm1, %v2998_v21  ;;  %vm1832_vm5 = vcmp.eq.s32.totalorder %v4576_v17, %v1754_v20  ;;  %v4687_v2 = vsel %vm589_vm1, %v4678_v44, 2147483647  ;;  %v1799_v38 = vadd.s32 %v1798_v61, %v1796_v54  ;;  %v1781_v63 = vcvt.f32.s32 %v1780_v3 }
 0xab6   : > { %v2997_v36 = vsel %vm1832_vm5, 1.0, %v3474_v60  ;;  %v4691_v49 = vsel %vm1832_vm5, 2147483647, %v4576_v17  ;;  %1890 = vmin.xlane.f32.xlu1 %v4680_v51  ;;  %v1917_v31 = vshra.s32 %v4687_v2, 16  ;;  %v1825_v10 = vpop.xlane.xlu1 %1824  ;;  %v4697_v40 = vcvt.s32.f32 %v1872_v45 }
 0xab7   : > { %1856 = vst.msk [vmem:[#allocation2 + $0x1d0] sm:$0xff] %vm589_vm1, %v2997_v36  ;;  %v4701_v22 = vsel %vm589_vm1, %v4691_v49, 2147483647  ;;  %vm1835_vm6 = vcmp.eq.s32.totalorder %v4590_v27, %v1799_v38  ;;  %v1826_v17 = vcvt.f32.s32 %v1825_v10  ;;  %v1784_v34 = vadd.s32 %v1783_v8, %v1781_v63 }
 0xab8   : > { %v4704_v58 = vcvt.s32.f32 %v1917_v31  ;;  %v1902_v25 = vshra.s32 %v4701_v22, 16  ;;  %v3000_v55 = vsel %vm1835_vm6, 1.0, %v3474_v60  ;;  %v4709_v16 = vsel %vm1835_vm6, 2147483647, %v4590_v27  ;;  %1875 = vmin.xlane.f32.xlu0 %v4697_v40  ;;  %v1810_v9 = vpop.xlane.xlu0 %1809  ;;  %v2079_v1 = vld [vmem:[#allocation2 + $0x1c8] sm:$0xff] }
 0xab9   : > { %1859 = vst.msk [vmem:[#allocation2 + $0x1e8] sm:$0xff] %vm589_vm1, %v3000_v55  ;;  %v1829_v32 = vadd.s32 %v1828_v43, %v1826_v17  ;;  %v4718_v0 = vsel %vm589_vm1, %v4709_v16, 2147483647  ;;  %vm1834_vm7 = vcmp.eq.s32.totalorder %v4610_v52, %v1784_v34  ;;  %v1811_v27 = vcvt.f32.s32 %v1810_v9 }
 0xaba   : > { %1920 = vmin.xlane.f32.xlu1 %v4704_v58  ;;  %v2078_v18 = vld [vmem:[#allocation2 + $0x1c0] sm:$0xff]  ;;  %v4714_v26 = vcvt.s32.f32 %v1902_v25  ;;  %v1947_v5 = vshra.s32 %v4718_v0, 16  ;;  %v2999_v56 = vsel %vm1834_vm7, 1.0, %v3474_v60  ;;  %v4725_v14 = vsel %vm1834_vm7, 2147483647, %v4610_v52 }
 0xabb   : > { %3314 = vmatprep.mubr.msk.f32.mxu1 %vm589_vm1, %v2078_v18  ;;  %vm1837_vm8 = vcmp.eq.s32.totalorder %v4614_v6, %v1829_v32  ;;  %1858 = vst.msk [vmem:[#allocation2 + $0x1e0] sm:$0xff] %vm589_vm1, %v2999_v56  ;;  %v1814_v24 = vadd.s32 %v1813_v46, %v1811_v27  ;;  %v1930_v52 = vsel %vm589_vm1, %v4725_v14, 2147483647  ;;  %v1886_v36 = vand.u32 65535, %v4663_v53 }
 0xabc   : > { %3315 = vmatmul.mubr.msk.f32.gmra.mxu1 %vm589_vm1, %v2079_v1  ;;  %v3002_v4 = vsel %vm1837_vm8, 1.0, %v3474_v60  ;;  %v4732_v15 = vsel %vm1837_vm8, 2147483647, %v4614_v6  ;;  %1905 = vmin.xlane.f32.xlu0 %v4714_v26  ;;  %v1949_v23 = vcvt.s32.f32 %v1947_v5  ;;  %v2081_v6 = vld [vmem:[#allocation2 + $0x1d8] sm:$0xff]  ;;  %v1932_v59 = vshra.s32 %v1930_v52, 16 }
 0xabd   : > { %1861 = vst.msk [vmem:[#allocation2 + $0x1f8] sm:$0xff] %vm589_vm1, %v3002_v4  ;;  %v1975_v57 = vsel %vm589_vm1, %v4732_v15, 2147483647  ;;  %vm1836_vm9 = vcmp.eq.s32.totalorder %v4631_v29, %v1814_v24  ;;  %v1871_v38 = vand.u32 65535, %v4674_v13  ;;  %v1888_v31 = vcvt.s32.f32 %v1886_v36 }
 0xabe   : > { %v2080_v47 = vld [vmem:[#allocation2 + $0x1d0] sm:$0xff]  ;;  %1950 = vmin.xlane.f32.xlu1 %v1949_v23  ;;  %v1977_v11 = vshra.s32 %v1975_v57, 16  ;;  %v3001_v61 = vsel %vm1836_vm9, 1.0, %v3474_v60  ;;  %v4744_v7 = vsel %vm1836_vm9, 2147483647, %v4631_v29  ;;  %v1934_v50 = vcvt.s32.f32 %v1932_v59 }
 0xabf   : > { %3317 = vmatprep.mubr.msk.f32.mxu1 %vm589_vm1, %v2080_v47  ;;  %1860 = vst.msk [vmem:[#allocation2 + $0x1f0] sm:$0xff] %vm589_vm1, %v3001_v61  ;;  %v1960_v20 = vsel %vm589_vm1, %v4744_v7, 2147483647  ;;  %v1916_v41 = vand.u32 65535, %v4687_v2  ;;  %v1873_v17 = vcvt.s32.f32 %v1871_v38  ;;  %v1901_v25 = vand.u32 65535, %v4701_v22 }
 0xac0   : > { %3318 = vmatmul.mubr.msk.f32.gmra.mxu1 %vm589_vm1, %v2081_v6  ;;  %v1979_v8 = vcvt.s32.f32 %v1977_v11  ;;  %v1962_v48 = vshra.s32 %v1960_v20, 16  ;;  %1935 = vmin.xlane.f32.xlu0 %v1934_v50  ;;  %v2083_v43 = vld [vmem:[#allocation2 + $0x1e8] sm:$0xff]  ;;  %v1946_v13 = vand.u32 65535, %v4718_v0  ;;  %v1931_v22 = vand.u32 65535, %v1930_v52 }
 0xac1   : > { %v1918_v34 = vcvt.s32.f32 %v1916_v41  ;;  %v1976_v27 = vand.u32 65535, %v1975_v57  ;;  %v1961_v56 = vand.u32 65535, %v1960_v20 }
 0xac2   : > { %1980 = vmin.xlane.f32.xlu1 %v1979_v8  ;;  %v2082_v21 = vld [vmem:[#allocation2 + $0x1e0] sm:$0xff]  ;;  %v1964_v54 = vcvt.s32.f32 %v1962_v48  ;;  %v1948_v46 = vcvt.s32.f32 %v1946_v13  ;;  %v1933_v5 = vcvt.s32.f32 %v1931_v22 }
 0xac3   : > { %3320 = vmatprep.mubr.msk.f32.mxu1 %vm589_vm1, %v2082_v21  ;;  %v1978_v0 = vcvt.s32.f32 %v1976_v27  ;;  %v1963_v47 = vcvt.s32.f32 %v1961_v56 }
 0xac4   : > { %3321 = vmatmul.mubr.msk.f32.gmra.mxu1 %vm589_vm1, %v2083_v43  ;;  %1965 = vmin.xlane.f32.xlu0 %v1964_v54  ;;  %v2085_v45 = vld [vmem:[#allocation2 + $0x1f8] sm:$0xff] }
 0xac6   : > { %v2084_v29 = vld [vmem:[#allocation2 + $0x1f0] sm:$0xff] }
 0xac7   : > { %3323 = vmatprep.mubr.msk.f32.mxu1 %vm589_vm1, %v2084_v29 }
 0xac8   : > { %3324 = vmatmul.mubr.msk.f32.gmra.mxu1 %vm589_vm1, %v2085_v45 }
 0xb3f   : > { %v1891_v3 = vpop.xlane.xlu1 %1890 }
 0xb40   : > { %vm1892_vm10 = vcmp.eq.f32.partialorder %v4680_v51, %v1891_v3  ;;  %v1903_v51 = vcvt.s32.f32 %v1901_v25 }
 0xb41   : > { %v1893_v63 = vsel %vm1892_vm10, %v1888_v31, inf  ;;  %v1876_v10 = vpop.xlane.xlu0 %1875 }
 0xb42   : > { %1894 = vmin.xlane.f32.xlu1 %v1893_v63  ;;  %vm1877_vm11 = vcmp.eq.f32.partialorder %v4697_v40, %v1876_v10  ;;  %v1882_v57 = vcvt.f32.s32 %v1876_v10 }
 0xb43   : > { %v1921_v55 = vpop.xlane.xlu1 %1920  ;;  %v1878_v53 = vsel %vm1877_vm11, %v1873_v17, inf }
 0xb44   : > { %vm1922_vm12 = vcmp.eq.f32.partialorder %v4704_v58, %v1921_v55  ;;  %1879 = vmin.xlane.f32.xlu0 %v1878_v53  ;;  %v1927_v11 = vcvt.f32.s32 %v1921_v55  ;;  %v1883_v20 = vshll.u32 %v1882_v57, 16 }
 0xb45   : > { %v1923_v32 = vsel %vm1922_vm12, %v1918_v34, inf  ;;  %v1906_v2 = vpop.xlane.xlu0 %1905 }
 0xb46   : > { %1924 = vmin.xlane.f32.xlu1 %v1923_v32  ;;  %vm1907_vm13 = vcmp.eq.f32.partialorder %v4714_v26, %v1906_v2  ;;  %v1928_v29 = vshll.u32 %v1927_v11, 16 }
 0xb47   : > { %v1951_v9 = vpop.xlane.xlu1 %1950  ;;  %v1908_v18 = vsel %vm1907_vm13, %v1903_v51, inf }
 0xb48   : > { %vm1952_vm14 = vcmp.eq.f32.partialorder %v1949_v23, %v1951_v9  ;;  %1909 = vmin.xlane.f32.xlu0 %v1908_v18  ;;  %v1897_v23 = vcvt.f32.s32 %v1891_v3  ;;  %v1957_v36 = vcvt.f32.s32 %v1951_v9 }
 0xb49   : > { %v1953_v40 = vsel %vm1952_vm14, %v1948_v46, inf  ;;  %v1936_v58 = vpop.xlane.xlu0 %1935 }
 0xb4a   : > { %1954 = vmin.xlane.f32.xlu1 %v1953_v40  ;;  %vm1937_vm15 = vcmp.eq.f32.partialorder %v1934_v50, %v1936_v58  ;;  %v1898_v59 = vshll.u32 %v1897_v23, 16  ;;  %v1912_v50 = vcvt.f32.s32 %v1906_v2  ;;  %v1942_v10 = vcvt.f32.s32 %v1936_v58 }
 0xb4b   : > { %v1981_v1 = vpop.xlane.xlu1 %1980  ;;  %v1938_v4 = vsel %vm1937_vm15, %v1933_v5, inf  ;;  %v1958_v55 = vshll.u32 %v1957_v36, 16 }
 0xb4c   : > { %vm1982_vm0 = vcmp.eq.f32.partialorder %v1979_v8, %v1981_v1  ;;  %1939 = vmin.xlane.f32.xlu0 %v1938_v4  ;;  %v1913_v41 = vshll.u32 %v1912_v50, 16  ;;  %v1987_v17 = vcvt.f32.s32 %v1981_v1  ;;  %v1943_v32 = vshll.u32 %v1942_v10, 16 }
 0xb4d   : > { %v1983_v24 = vsel %vm1982_vm0, %v1978_v0, inf  ;;  %v1966_v26 = vpop.xlane.xlu0 %1965 }
 0xb4e   : > { %1984 = vmin.xlane.f32.xlu1 %v1983_v24  ;;  %vm1967_vm2 = vcmp.eq.f32.partialorder %v1964_v54, %v1966_v26  ;;  %v1988_v2 = vshll.u32 %v1987_v17, 16 }
 0xb4f   : > { %v1968_v52 = vsel %vm1967_vm2, %v1963_v47, inf }
 0xb50   : > { %1969 = vmin.xlane.f32.xlu0 %v1968_v52 }
 0xbcb   : > { %v1895_v6 = vpop.xlane.xlu1 %1894 }
 0xbcc   : > { %v1896_v61 = vcvt.f32.s32 %v1895_v6 }
 0xbcd   : > { %v1880_v21 = vpop.xlane.xlu0 %1879 }
 0xbce   : > { %v1899_v48 = vadd.s32 %v1898_v59, %v1896_v61  ;;  %v1881_v8 = vcvt.f32.s32 %v1880_v21 }
 0xbcf   : > { %v1925_v43 = vpop.xlane.xlu1 %1924 }
 0xbd0   : > { %vm1991_vm3 = vcmp.eq.s32.totalorder %v4657_v12, %v1899_v48  ;;  %v1926_v45 = vcvt.f32.s32 %v1925_v43  ;;  %v1884_v38 = vadd.s32 %v1883_v20, %v1881_v8  ;;  %v4807_v48 = vpop.f32.mrf.mxu1 }
 0xbd1   : > { %v3004_v54 = vsel %vm1991_vm3, 1.0, %v3474_v60  ;;  %v1910_v31 = vpop.xlane.xlu0 %1909 }
 0xbd2   : > { %2015 = vst.msk [vmem:[#allocation2 + $0x208] sm:$0xff] %vm589_vm1, %v3004_v54  ;;  %v1929_v3 = vadd.s32 %v1928_v29, %v1926_v45  ;;  %vm1990_vm4 = vcmp.eq.s32.totalorder %v4667_v39, %v1884_v38  ;;  %v1911_v63 = vcvt.f32.s32 %v1910_v31  ;;  %v4811_v20 = vpop.f32.mrf.mxu1 }
 0xbd3   : > { %v3003_v25 = vsel %vm1990_vm4, 1.0, %v3474_v60  ;;  %v1955_v12 = vpop.xlane.xlu1 %1954 }
 0xbd4   : > { %vm1993_vm5 = vcmp.eq.s32.totalorder %v4678_v44, %v1929_v3  ;;  %2014 = vst.msk [vmem:[#allocation2 + $0x200] sm:$0xff] %vm589_vm1, %v3003_v25  ;;  %v1914_v53 = vadd.s32 %v1913_v41, %v1911_v63  ;;  %v1956_v13 = vcvt.f32.s32 %v1955_v12  ;;  %v1972_v44 = vcvt.f32.s32 %v1966_v26  ;;  %v4815_v8 = vpop.f32.mrf.mxu1 }
 0xbd5   : > { %v3006_v34 = vsel %vm1993_vm5, 1.0, %v3474_v60  ;;  %v1940_v9 = vpop.xlane.xlu0 %1939 }
 0xbd6   : > { %2017 = vst.msk [vmem:[#allocation2 + $0x218] sm:$0xff] %vm589_vm1, %v3006_v34  ;;  %vm1992_vm6 = vcmp.eq.s32.totalorder %v4691_v49, %v1914_v53  ;;  %v1959_v39 = vadd.s32 %v1958_v55, %v1956_v13  ;;  %v1941_v46 = vcvt.f32.s32 %v1940_v9  ;;  %v1973_v5 = vshll.u32 %v1972_v44, 16  ;;  %v4817_v29 = vpop.f32.mrf.mxu1 }
 0xbd7   : > { %v3005_v51 = vsel %vm1992_vm6, 1.0, %v3474_v60  ;;  %v1985_v18 = vpop.xlane.xlu1 %1984 }
 0xbd8   : > { %2016 = vst.msk [vmem:[#allocation2 + $0x210] sm:$0xff] %vm589_vm1, %v3005_v51  ;;  %vm1995_vm7 = vcmp.eq.s32.totalorder %v4709_v16, %v1959_v39  ;;  %v1986_v22 = vcvt.f32.s32 %v1985_v18  ;;  %v1944_v40 = vadd.s32 %v1943_v32, %v1941_v46  ;;  %v4819_v36 = vpop.f32.mrf.mxu1 }
 0xbd9   : > { %v3008_v27 = vsel %vm1995_vm7, 1.0, %v3474_v60  ;;  %v1970_v58 = vpop.xlane.xlu0 %1969  ;;  %v2087_v56 = vld [vmem:[#allocation2 + $0x208] sm:$0xff]  ;;  %5014 = vst [vmem:[#allocation11_spill] sm:$0xff] %v4819_v36 }
 0xbda   : > { %2019 = vst.msk [vmem:[#allocation2 + $0x228] sm:$0xff] %vm589_vm1, %v3008_v27  ;;  %v1989_v49 = vadd.s32 %v1988_v2, %v1986_v22  ;;  %vm1994_vm8 = vcmp.eq.s32.totalorder %v4725_v14, %v1944_v40  ;;  %v1971_v0 = vcvt.f32.s32 %v1970_v58  ;;  %v4821_v38 = vpop.f32.mrf.mxu1 }
 0xbdb   : > { %v2086_v1 = vld [vmem:[#allocation2 + $0x200] sm:$0xff]  ;;  %v3007_v16 = vsel %vm1994_vm8, 1.0, %v3474_v60  ;;  %5015 = vst [vmem:[#allocation12_spill] sm:$0xff] %v4821_v38 }
 0xbdc   : > { %vm1997_vm9 = vcmp.eq.s32.totalorder %v4732_v15, %v1989_v49  ;;  %3326 = vmatprep.mubr.msk.f32.mxu1 %vm589_vm1, %v2086_v1  ;;  %2018 = vst.msk [vmem:[#allocation2 + $0x220] sm:$0xff] %vm589_vm1, %v3007_v16  ;;  %v1974_v24 = vadd.s32 %v1973_v5, %v1971_v0  ;;  %v4823_v31 = vpop.f32.mrf.mxu1 }
 0xbdd   : > { %v3010_v4 = vsel %vm1997_vm9, 1.0, %v3474_v60  ;;  %3327 = vmatmul.mubr.msk.f32.gmra.mxu1 %vm589_vm1, %v2087_v56  ;;  %v2089_v14 = vld [vmem:[#allocation2 + $0x218] sm:$0xff] }
 0xbde   : > { %2021 = vst.msk [vmem:[#allocation2 + $0x238] sm:$0xff] %vm589_vm1, %v3010_v4  ;;  %vm1996_vm10 = vcmp.eq.s32.totalorder %v4744_v7, %v1974_v24  ;;  %v4795_v7 = vpop.f32.mrf.mxu0  ;;  %v4827_v63 = vpop.f32.mrf.mxu1 }
 0xbdf   : > { %v2088_v26 = vld [vmem:[#allocation2 + $0x210] sm:$0xff]  ;;  %v3009_v15 = vsel %vm1996_vm10, 1.0, %v3474_v60 }
 0xbe0   : > { %3329 = vmatprep.mubr.msk.f32.mxu1 %vm589_vm1, %v2088_v26  ;;  %2020 = vst.msk [vmem:[#allocation2 + $0x230] sm:$0xff] %vm589_vm1, %v3009_v15  ;;  %v4797_v6 = vpop.f32.mrf.mxu0  ;;  %v4831_v17 = vpop.f32.mrf.mxu1 }
 0xbe1   : > { %3330 = vmatmul.mubr.msk.f32.gmra.mxu1 %vm589_vm1, %v2089_v14  ;;  %v2091_v52 = vld [vmem:[#allocation2 + $0x228] sm:$0xff] }
 0xbe2   : > { %v4799_v60 = vpop.f32.mrf.mxu0  ;;  %v4835_v12 = vpop.f32.mrf.mxu1 }
 0xbe3   : > { %v2090_v47 = vld [vmem:[#allocation2 + $0x220] sm:$0xff] }
 0xbe4   : > { %3332 = vmatprep.mubr.msk.f32.mxu1 %vm589_vm1, %v2090_v47  ;;  %v4801_v59 = vpop.f32.mrf.mxu0  ;;  %v4839_v34 = vpop.f32.mrf.mxu1 }
 0xbe5   : > { %3333 = vmatmul.mubr.msk.f32.gmra.mxu1 %vm589_vm1, %v2091_v52  ;;  %v2093_v57 = vld [vmem:[#allocation2 + $0x238] sm:$0xff]  ;;  %5016 = vst [vmem:[#allocation13_spill] sm:$0xff] %v4839_v34 }
 0xbe6   : > { %v4803_v11 = vpop.f32.mrf.mxu0  ;;  %v4841_v13 = vpop.f32.mrf.mxu1 }
 0xbe7   : > { %v2092_v23 = vld [vmem:[#allocation2 + $0x230] sm:$0xff]  ;;  %5017 = vst [vmem:[#allocation14_spill] sm:$0xff] %v4841_v13 }
 0xbe8   : > { %3335 = vmatprep.mubr.msk.f32.mxu1 %vm589_vm1, %v2092_v23  ;;  %v4805_v61 = vpop.f32.mrf.mxu0  ;;  %v4843_v32 = vpop.f32.mrf.mxu1 }
 0xbe9   : > { %3336 = vmatmul.mubr.msk.f32.gmra.mxu1 %vm589_vm1, %v2093_v57  ;;  %5018 = vst [vmem:[#allocation15_spill] sm:$0xff] %v4843_v32 }
 0xbea   : > { %v4809_v21 = vpop.f32.mrf.mxu0  ;;  %v4845_v51 = vpop.f32.mrf.mxu1 }
 0xbeb   : > { %5019 = vst [vmem:[#allocation16_spill] sm:$0xff] %v4845_v51 }
 0xbec   : > { %v4813_v50 = vpop.f32.mrf.mxu0  ;;  %v3304_v18 = vpop.f32.mrf.mxu1 }
 0xbee   : > { %v3244_v43 = vpop.f32.mrf.mxu0  ;;  %v2616_v46 = vpop.f32.mrf.mxu1 }
 0xbf0   : > { %v2416_v45 = vpop.f32.mrf.mxu0  ;;  %v3307_v27 = vpop.f32.mrf.mxu1 }
 0xbf2   : > { %v3247_v54 = vpop.f32.mrf.mxu0  ;;  %v4849_v49 = vpop.f32.mrf.mxu1 }
 0xbf3   : > { %v2738_v32 = vmax.f32 %v4799_v60, %v3247_v54 }
 0xbf4   : > { %v2426_v3 = vpop.f32.mrf.mxu0  ;;  %v4853_v1 = vpop.f32.mrf.mxu1 }
 0xbf5   : > { %5020 = vst [vmem:[#allocation17_spill] sm:$0xff] %v4853_v1  ;;  %v2737_v36 = vmax.f32 %v4801_v59, %v2426_v3 }
 0xbf6   : > { %v4825_v41 = vpop.f32.mrf.mxu0  ;;  %v4855_v0 = vpop.f32.mrf.mxu1 }
 0xbf7   : > { %5021 = vst [vmem:[#allocation18_spill] sm:$0xff] %v4855_v0 }
 0xbf8   : > { %v4829_v10 = vpop.f32.mrf.mxu0  ;;  %v4857_v16 = vpop.f32.mrf.mxu1 }
 0xbf9   : > { %5022 = vst [vmem:[#allocation19_spill] sm:$0xff] %v4857_v16  ;;  %v2736_v16 = vmax.f32 %v4795_v7, %v3244_v43  ;;  %v4882_v7 = vld [vmem:[%s5005_s2] ss:$0 sm:$0xff] }
 0xbfa   : > { %v4833_v25 = vpop.f32.mrf.mxu0  ;;  %v4859_v24 = vpop.f32.mrf.mxu1 }
 0xbfb   : > { %5023 = vst [vmem:[#allocation20_spill] sm:$0xff] %v4859_v24  ;;  %v2735_v24 = vmax.f32 %v4797_v6, %v2416_v45 }
 0xbfc   : > { %v4837_v55 = vpop.f32.mrf.mxu0  ;;  %v3316_v14 = vpop.f32.mrf.mxu1 }
 0xbfe   : > { %v3256_v53 = vpop.f32.mrf.mxu0  ;;  %v2656_v47 = vpop.f32.mrf.mxu1 }
 0xbff   : > { %v2744_v42 = vmax.f32 %v2736_v16, %v3256_v53  ;;  %v581_v53 = vadd.f32 %v4882_v7, %v3734_v28  ;;  %v584_v28 = vadd.f32 %v4882_v7, %v3746_v35  ;;  %v5028_v16 = vld [vmem:[#allocation6_spill] sm:$0xff] }
 0xc00   : > { %v2456_v39 = vpop.f32.mrf.mxu0  ;;  %v4861_v23 = vpop.f32.mrf.mxu1 }
 0xc01   : > { %v2743_v38 = vmax.f32 %v2735_v24, %v2456_v39  ;;  %v582_v39 = vadd.f32 %v4882_v7, %v3738_v30  ;;  %v2742_v30 = vmax.f32 %v4809_v21, %v4833_v25 }
 0xc02   : > { %v3259_v2 = vpop.f32.mrf.mxu0  ;;  %v4865_v62 = vpop.f32.mrf.mxu1 }
 0xc03   : > { %5024 = vst [vmem:[#allocation21_spill] sm:$0xff] %v4865_v62  ;;  %v2746_v33 = vmax.f32 %v2738_v32, %v3259_v2 }
 0xc04   : > { %v2466_v9 = vpop.f32.mrf.mxu0  ;;  %v4869_v37 = vpop.f32.mrf.mxu1 }
 0xc05   : > { %v2745_v6 = vmax.f32 %v2737_v36, %v2466_v9 }
 0xc06   : > { %v3262_v44 = vpop.f32.mrf.mxu0  ;;  %v4873_v0 = vpop.f32.mrf.mxu1 }
 0xc08   : > { %v2476_v22 = vpop.f32.mrf.mxu0  ;;  %v4877_v34 = vpop.f32.mrf.mxu1 }
 0xc0a   : > { %v4847_v40 = vpop.f32.mrf.mxu0 }
 0xc0b   : > { %v2750_v2 = vmax.f32 %v2742_v30, %v4847_v40  ;;  %v5027_v40 = vld [vmem:[#allocation21_spill] sm:$0xff] }
 0xc0c   : > { %v4851_v58 = vpop.f32.mrf.mxu0 }
 0xc0e   : > { %v3268_v5 = vpop.f32.mrf.mxu0 }
 0xc0f   : > { %v2752_v1 = vmax.f32 %v2744_v42, %v3268_v5  ;;  %v2740_v42 = vmax.f32 %v4803_v11, %v4825_v41 }
 0xc10   : > { %v2496_v56 = vpop.f32.mrf.mxu0 }
 0xc11   : > { %v2751_v62 = vmax.f32 %v2743_v38, %v2496_v56 }
 0xc12   : > { %v3271_v4 = vpop.f32.mrf.mxu0 }
 0xc13   : > { %v2754_v43 = vmax.f32 %v2746_v33, %v3271_v4  ;;  %v2739_v33 = vmax.f32 %v4805_v61, %v4829_v10 }
 0xc14   : > { %v2506_v26 = vpop.f32.mrf.mxu0 }
 0xc15   : > { %v2753_v59 = vmax.f32 %v2745_v6, %v2506_v26  ;;  %v2762_v54 = vmax.f32 %v2754_v43, %v4807_v48  ;;  %v2747_v41 = vmax.f32 %v2739_v33, %v2476_v22  ;;  %v5030_v26 = vld [vmem:[#allocation11_spill] sm:$0xff]  ;;  %v5033_v43 = vld [vmem:[#allocation12_spill] sm:$0xff] }
 0xc16   : > { %v3274_v15 = vpop.f32.mrf.mxu0 }
 0xc17   : > { %v2761_v11 = vmax.f32 %v2753_v59, %v4811_v20  ;;  %v2770_v48 = vmax.f32 %v2762_v54, %v4831_v17  ;;  %v2741_v17 = vmax.f32 %v4813_v50, %v4837_v55  ;;  %v5035_v59 = vld [vmem:[#allocation18_spill] sm:$0xff] }
 0xc18   : > { %v2516_v52 = vpop.f32.mrf.mxu0 }
 0xc19   : > { %v2769_v10 = vmax.f32 %v2761_v11, %v4835_v12 }
 0xc1a   : > { %v4863_v57 = vpop.f32.mrf.mxu0 }
 0xc1b   : > { %v2777_v21 = vmax.f32 %v2769_v10, %v4849_v49  ;;  %v583_v49 = vadd.f32 %v4882_v7, %v5028_v16  ;;  %v5040_v10 = vld [vmem:[#allocation20_spill] sm:$0xff] }
 0xc1c   : > { %v4867_v19 = vpop.f32.mrf.mxu0 }
 0xc1d   : > { %5025 = vst [vmem:[#allocation22_spill] sm:$0xff] %v4867_v19 }
 0xc1e   : > { %v3280_v51 = vpop.f32.mrf.mxu0 }
 0xc1f   : > { %v2760_v19 = vmax.f32 %v2752_v1, %v3280_v51  ;;  %v2755_v51 = vmax.f32 %v2747_v41, %v2516_v52  ;;  %v2785_v1 = vmax.f32 %v2777_v21, %v5027_v40  ;;  %v5032_v52 = vld [vmem:[#allocation17_spill] sm:$0xff] }
 0xc20   : > { %v2536_v13 = vpop.f32.mrf.mxu0 }
 0xc21   : > { %v2759_v45 = vmax.f32 %v2751_v62, %v2536_v13  ;;  %v2768_v60 = vmax.f32 %v2760_v19, %v4823_v31  ;;  %v2748_v62 = vmax.f32 %v2740_v42, %v3262_v44  ;;  %v4895_v19 = vpop.f32.mrf.mxu1  ;;  %v2778_v13 = vmax.f32 %v2770_v48, %v3307_v27  ;;  %v5026_v27 = vld [vmem:[#allocation13_spill] sm:$0xff] }
 0xc22   : > { %v2749_v44 = vmax.f32 %v2741_v17, %v4851_v58  ;;  %v2763_v22 = vmax.f32 %v2755_v51, %v4817_v29  ;;  %v5031_v58 = vld [vmem:[#allocation14_spill] sm:$0xff] }
 0xc23   : > { %v2767_v38 = vmax.f32 %v2759_v45, %v4827_v63  ;;  %v2776_v3 = vmax.f32 %v2768_v60, %v3304_v18  ;;  %v2756_v63 = vmax.f32 %v2748_v62, %v3274_v15  ;;  %v2786_v25 = vmax.f32 %v2778_v13, %v4861_v23  ;;  %v5034_v60 = vld [vmem:[#allocation15_spill] sm:$0xff]  ;;  %v5037_v62 = vld [vmem:[#allocation16_spill] sm:$0xff] }
 0xc24   : > { %v5029_v4 = vld [vmem:[#allocation22_spill] sm:$0xff]  ;;  %v2771_v15 = vmax.f32 %v2763_v22, %v5031_v58 }
 0xc25   : > { %v2775_v36 = vmax.f32 %v2767_v38, %v2616_v46  ;;  %v2784_v31 = vmax.f32 %v2776_v3, %v3316_v14  ;;  %v2764_v35 = vmax.f32 %v2756_v63, %v4815_v8  ;;  %v2758_v46 = vmax.f32 %v2750_v2, %v4863_v57  ;;  %v5039_v63 = vld [vmem:[#allocation7_spill] sm:$0xff]  ;;  %v5041_v2 = vld [vmem:[#allocation10_spill] sm:$0xff] }
 0xc26   : > { %v2757_v24 = vmax.f32 %v2749_v44, %v5029_v4  ;;  %v2779_v54 = vmax.f32 %v2771_v15, %v5035_v59 }
 0xc27   : > { %v2783_v32 = vmax.f32 %v2775_v36, %v2656_v47  ;;  %v2772_v50 = vmax.f32 %v2764_v35, %v5026_v27  ;;  %v2766_v14 = vmax.f32 %v2758_v46, %v5030_v26  ;;  %v5038_v36 = vld [vmem:[#allocation19_spill] sm:$0xff] }
 0xc28   : > { %v2765_v45 = vmax.f32 %v2757_v24, %v5033_v43 }
 0xc29   : > { %v2780_v29 = vmax.f32 %v2772_v50, %v5032_v52  ;;  %v2774_v42 = vmax.f32 %v2766_v14, %v5034_v60 }
 0xc2a   : > { %v2773_v11 = vmax.f32 %v2765_v45, %v5037_v62 }
 0xc2b   : > { %v2788_v38 = vmax.f32 %v2780_v29, %v4869_v37  ;;  %v585_v37 = vadd.f32 %v4882_v7, %v5039_v63 }
 0xc2c   : > { %v2781_v13 = vmax.f32 %v2773_v11, %v5040_v10 }
 0xc2e   : > { %v2789_v35 = vmax.f32 %v2781_v13, %v4895_v19 }
 0xc9d   : > { %v3328_v61 = vpop.f32.mrf.mxu1 }
 0xc9e   : > { %v2792_v20 = vmax.f32 %v2784_v31, %v3328_v61  ;;  %v2782_v31 = vmax.f32 %v2774_v42, %v5038_v36 }
 0xc9f   : > { %v2696_v9 = vpop.f32.mrf.mxu1 }
 0xca0   : > { %v2800_v18 = vadd.f32 %v2792_v20, %v582_v39  ;;  %v2791_v12 = vmax.f32 %v2783_v32, %v2696_v9  ;;  %v5036_v39 = vld [vmem:[#allocation8_spill] sm:$0xff]  ;;  %v2790_v32 = vmax.f32 %v2782_v31, %v4877_v34 }
 0xca1   : > { %v3331_v55 = vpop.f32.mrf.mxu1  ;;  %v586_v33 = vadd.f32 %v4882_v7, %v5036_v39 }
 0xca2   : > { %v2808_v5 = vmax.f32 %v2800_v18, 0.0  ;;  %v2799_v8 = vadd.f32 %v2791_v12, %v581_v53  ;;  %v2794_v56 = vmax.f32 %v2786_v25, %v3331_v55  ;;  %v5042_v12 = vld [vmem:[#allocation9_spill] sm:$0xff] }
 0xca3   : > { %v2706_v47 = vpop.f32.mrf.mxu1  ;;  %v587_v34 = vadd.f32 %v4882_v7, %v5042_v12 }
 0xca4   : > { %2816 = vst [vmem:[%s4924_s4 + $0x8] sm:$0xff] %v2808_v5  ;;  %v2807_v23 = vmax.f32 %v2799_v8, 0.0  ;;  %v2802_v57 = vadd.f32 %v2794_v56, %v584_v28  ;;  %v2793_v6 = vmax.f32 %v2785_v1, %v2706_v47  ;;  %v2787_v28 = vmax.f32 %v2779_v54, %v4873_v0 }
 0xca5   : > { %v3334_v48 = vpop.f32.mrf.mxu1  ;;  %v588_v0 = vadd.f32 %v4882_v7, %v5041_v2 }
 0xca6   : > { %2815 = vst [vmem:[%s4924_s4] sm:$0xff] %v2807_v23  ;;  %v2810_v3 = vmax.f32 %v2802_v57, 0.0  ;;  %v2801_v53 = vadd.f32 %v2793_v6, %v583_v49  ;;  %v2796_v41 = vmax.f32 %v2788_v38, %v3334_v48 }
 0xca7   : > { %v2716_v61 = vpop.f32.mrf.mxu1 }
 0xca8   : > { %2818 = vst [vmem:[%s4924_s4 + $0x18] sm:$0xff] %v2810_v3  ;;  %v2809_v30 = vmax.f32 %v2801_v53, 0.0  ;;  %v2804_v20 = vadd.f32 %v2796_v41, %v586_v33  ;;  %v2795_v17 = vmax.f32 %v2787_v28, %v2716_v61 }
 0xca9   : > { %v3337_v51 = vpop.f32.mrf.mxu1 }
 0xcaa   : > { %2817 = vst [vmem:[%s4924_s4 + $0x10] sm:$0xff] %v2809_v30  ;;  %v2812_v9 = vmax.f32 %v2804_v20, 0.0  ;;  %v2803_v21 = vadd.f32 %v2795_v17, %v585_v37  ;;  %v2798_v25 = vmax.f32 %v2790_v32, %v3337_v51 }
 0xcab   : > { %v2726_v18 = vpop.f32.mrf.mxu1 }
 0xcac   : > { %2820 = vst [vmem:[%s4924_s4 + $0x28] sm:$0xff] %v2812_v9  ;;  %v2811_v44 = vmax.f32 %v2803_v21, 0.0  ;;  %v2806_v46 = vadd.f32 %v2798_v25, %v588_v0  ;;  %v2797_v22 = vmax.f32 %v2789_v35, %v2726_v18 }
 0xcae   : > { %2819 = vst [vmem:[%s4924_s4 + $0x20] sm:$0xff] %v2811_v44  ;;  %v2814_v27 = vmax.f32 %v2806_v46, 0.0  ;;  %v2805_v19 = vadd.f32 %v2797_v22, %v587_v34 }
 0xcb0   : > { %2822 = vst [vmem:[%s4924_s4 + $0x38] sm:$0xff] %v2814_v27  ;;  %v2813_v7 = vmax.f32 %v2805_v19, 0.0 }
 0xcb2   : > { %2821 = vst [vmem:[%s4924_s4 + $0x30] sm:$0xff] %v2813_v7 }
 0xcb3   : > { %3425 = shalt.err (!%p3422_p3)
}
 0xcb4   : > { %s3426_s20 = scalar_lea.hbm %s4955_s9, 1024  ;;  %s3430_s26 = scalar_lea.hbm %s5006_s3, 2048 }
 0xcb5   : > { %p3427_p4 = scmp.ne.s32.totalorder %s4955_s9, %s3426_s20  ;;  %p3431_p9 = scmp.lt.s32.totalorder %s4955_s9, %s5006_s3 }
 0xcb6   : > { %p3432_p10 = scmp.lt.s32.totalorder %s3430_s26, %s3426_s20 }
 0xcb7   : > { %p3428_p7 = pnand %p3427_p4, %p3536_p5 }
 0xcb8   : > { %p3433_p11 = por %p3432_p10, %p3431_p9 }
 0xcb9   : > { %p3429_p8 = pneg %p3428_p7 }
 0xcbb   : > { %p3434_p12 = pnand %p3433_p11, %p3429_p8 }
 0xcbd   : > { %3437 = shalt.err (!%p3434_p12)
}
 0xcbe   : > { %s3476_s29 = smov 128   ;;  %s3477_s30 = smov 8  }
 0xcbf   : > { %3354 = dma.vmem_to_hbm [thread:$0]  (%p3536_p5), %s4957_s6, 1024, %s4955_s9, %s4963_s10, %s3476_s29, %s3476_s29, %s3477_s30  }
 0xcc0 PF: > { %p3360_p13 = scmp.ge.s32.totalorder %s3472_s15, 2  ;;  %s2852_s4 = sand.u32 1, %s3460_s12  }
 0xcc1   : > { %s2853_s5 = scalar_lea.sflag [#allocation4], %s2852_s4 }
 0xcc2   : > { %p3357_p0 = pnand %p3360_p13, %p3540_p6 }
 0xcc4   : > { %p3358_p1 = pneg %p3357_p0 }
 0xcc6   : > { %3455 = dma.done.wait (%p3358_p1), %s2853_s5, 1024  }
 0xcc7   : > { %3457 = vsyncadd (%p3358_p1), %s2853_s5, 4294966272  ;;  %p13_p2 = scmp.ge.s32.totalorder %s3523_s18, 4   ;;  %s5043_s12 = smov %s3464_s13 }
 0xcc8   : > { %s5044_s13 = smov %s3468_s14  ;;  %s5045_s14 = smov %s3534_s21 }
 0xcc9   : > { %s5046_s15 = smov %s3523_s18  ;;  %15 = sbr.rel (!%p13_p2) target bundleno = 3 (0x3), region = 67 }
 0xcce   :  { %2858 = vsyncpa [#allocation4], 1 }
 0xccf   :  { %2860 = vsyncpa [#allocation4 + $0x1], 1 }

</bundles_post_ra>
